<compile_context>
chip_gen: v6e
topology: v6e:2x2x1
jax: 0.10.0
libtpu: 0.0.40
codegen_flags: <defaults>
</compile_context>

<pallas_src>
import numpy as np
import jax
import jax.numpy as jnp
from jax import lax
from jax.experimental import pallas as pl
from jax.experimental.pallas import tpu as pltpu

_BN_EPS = 1e-5


# ----------------------------- small host helpers -----------------------------

def _pad_w(wc):
    """Smallest lane-friendly padded width >= wc whose multiples never straddle
    a 128-lane tile (divisor of 128, or a multiple of 128)."""
    for cand in (8, 16, 32, 64, 128):
        if wc <= cand:
            return cand
    return ((wc + 127) // 128) * 128


def _bilinear_matrix(in_size, out_size):
    """1-D bilinear interpolation matrix, PyTorch align_corners=False."""
    dst = np.arange(out_size, dtype=np.float64)
    src = (dst + 0.5) * (in_size / out_size) - 0.5
    src = np.maximum(src, 0.0)
    i0 = np.minimum(np.floor(src), in_size - 1).astype(np.int64)
    i1 = np.minimum(i0 + 1, in_size - 1)
    frac = src - i0
    m = np.zeros((out_size, in_size), dtype=np.float64)
    m[np.arange(out_size), i0] += 1.0 - frac
    m[np.arange(out_size), i1] += frac
    return m


# --------------------------------- kernels ------------------------------------

def _make_stage1_kernel(weight_y):
    """conv (as one MXU matmul) + separable bilinear upsample + ReLU -> z."""
    def kernel(pat_ref, y_ref, w_ref, b_ref, mh_ref, mwt_ref, z_ref, cs_ref):
        Ho, Hc = mh_ref.shape
        Wcp, Wo = mwt_ref.shape
        Cout = w_ref.shape[0]

        # Conv(weight_x * x) as a single matmul; weight_x is folded into w_ref
        # on the host.  Default precision (bf16 MXU passes) is enough here.
        c = jnp.dot(w_ref[...], pat_ref[0],
                    preferred_element_type=jnp.float32) + b_ref[...]  # (Cout, Hc*Wcp)

        # Unfuse the per-row-padded spatial lanes into a (Cout, Hc, Wcp) scratch
        # so H and W sit on separate tiled dims for the separable upsample.
        # Slices are Wcp-aligned (Wcp divides 128), so they never cross a lane
        # tile.  The inner per-channel row stores are cheap at these sizes.
        for i in range(Hc):
            slab = c[:, i * Wcp:(i + 1) * Wcp]                 # (Cout, Wcp)
            for ch in range(Cout):
                cs_ref[ch, i:i + 1, :] = slab[ch:ch + 1, :]

        mh = mh_ref[...]     # (Ho, Hc)
        mwt = mwt_ref[...]   # (Wcp, Wo); zero rows beyond Wc kill the padding
        for ch in range(Cout):
            t = jnp.dot(mh, cs_ref[ch], preferred_element_type=jnp.float32)  # (Ho, Wcp)
            u = jnp.dot(t, mwt, preferred_element_type=jnp.float32)          # (Ho, Wo)
            z_ref[0, ch] = jnp.maximum(weight_y * y_ref[0, ch] + u, 0.0)
    return kernel


def _make_stage2_kernel(delta, weight_y):
    """BatchNorm affine (precomputed scale/shift) + residual combine."""
    def kernel(z_ref, y_ref, ypl_ref, sc_ref, sh_ref, ynext_ref, yleft_ref):
        zn = z_ref[0] * sc_ref[...] + sh_ref[...]
        yb = y_ref[0]
        yl = delta * (weight_y * yb + zn)
        yleft_ref[0] = yl
        ynext_ref[0] = yb - 1.5 * yl + 0.5 * ypl_ref[0]
    return kernel


# ----------------------------- forward (wrapper) ------------------------------

def c_rb_forward(x, y, y_pre_left, conv_w, conv_b, bn_gamma, bn_beta,
                 delta, weight_x, weight_y, scale):
    B, Cin, H, W = x.shape
    Cout, _, K, _ = conv_w.shape
    Hc, Wc = H - K + 1, W - K + 1
    Ho, Wo = int(Hc * scale), int(Wc * scale)
    assert y.shape == (B, Cout, Ho, Wo) and y_pre_left.shape == y.shape
    Wcp = _pad_w(Wc)
    CKK = Cin * K * K

    # ---- host-side prep (tiny, one-time) ----
    cols = []
    for kh in range(K):
        for kw in range(K):
            cols.append(x[:, :, kh:kh + Hc, kw:kw + Wc])
    pat = jnp.stack(cols, axis=2).reshape(B, CKK, Hc, Wc)
    pat = jnp.pad(pat, ((0, 0), (0, 0), (0, 0), (0, Wcp - Wc)))
    pat = pat.reshape(B, CKK, Hc * Wcp).astype(jnp.float32)

    w2f = (weight_x * conv_w).reshape(Cout, CKK).astype(jnp.float32)  # fold weight_x
    bias2 = conv_b.reshape(Cout, 1).astype(jnp.float32)

    mh = jnp.asarray(_bilinear_matrix(Hc, Ho), jnp.float32)           # (Ho, Hc)
    mwt_np = np.zeros((Wcp, Wo), np.float32)
    mwt_np[:Wc, :] = _bilinear_matrix(Wc, Wo).T
    mwt = jnp.asarray(mwt_np)                                         # (Wcp, Wo)

    y4 = y.astype(jnp.float32)
    ypl4 = y_pre_left.astype(jnp.float32)

    params = pltpu.CompilerParams(dimension_semantics=("parallel",))

    # ---- stage 1: conv + separable bilinear upsample + ReLU, per-batch grid ----
    z4 = pl.pallas_call(
        _make_stage1_kernel(float(weight_y)),
        out_shape=jax.ShapeDtypeStruct((B, Cout, Ho, Wo), jnp.float32),
        grid_spec=pltpu.PrefetchScalarGridSpec(
            num_scalar_prefetch=0,
            grid=(B,),
            in_specs=[
                pl.BlockSpec((1, CKK, Hc * Wcp), lambda b: (b, 0, 0)),
                pl.BlockSpec((1, Cout, Ho, Wo), lambda b: (b, 0, 0, 0)),
                pl.BlockSpec((Cout, CKK), lambda b: (0, 0)),
                pl.BlockSpec((Cout, 1), lambda b: (0, 0)),
                pl.BlockSpec((Ho, Hc), lambda b: (0, 0)),
                pl.BlockSpec((Wcp, Wo), lambda b: (0, 0)),
            ],
            out_specs=pl.BlockSpec((1, Cout, Ho, Wo), lambda b: (b, 0, 0, 0)),
            scratch_shapes=[pltpu.VMEM((Cout, Hc, Wcp), jnp.float32)],
        ),
        compiler_params=params,
    )(pat, y4, w2f, bias2, mh, mwt)

    # ---- BatchNorm2d training-mode batch statistics (centered, biased var) ----
    mean = jnp.mean(z4, axis=(0, 2, 3))
    var = jnp.mean(jnp.square(z4 - mean[None, :, None, None]), axis=(0, 2, 3))
    scale_c = bn_gamma.astype(jnp.float32) * lax.rsqrt(var + _BN_EPS)
    shift_c = bn_beta.astype(jnp.float32) - mean * scale_c
    scale_c = scale_c.reshape(Cout, 1)
    shift_c = shift_c.reshape(Cout, 1)

    # Free re-interpretations (row-major element order is unchanged).
    S = Ho * Wo
    z2 = z4.reshape(B, Cout, S)
    y2 = y4.reshape(B, Cout, S)
    ypl2 = ypl4.reshape(B, Cout, S)

    # ---- stage 2: BN affine + residual combine (lane-dense outputs) ----
    y_next2, y_left2 = pl.pallas_call(
        _make_stage2_kernel(float(delta), float(weight_y)),
        out_shape=(jax.ShapeDtypeStruct((B, Cout, S), jnp.float32),
                   jax.ShapeDtypeStruct((B, Cout, S), jnp.float32)),
        grid_spec=pltpu.PrefetchScalarGridSpec(
            num_scalar_prefetch=0,
            grid=(B,),
            in_specs=[
                pl.BlockSpec((1, Cout, S), lambda b: (b, 0, 0)),
                pl.BlockSpec((1, Cout, S), lambda b: (b, 0, 0)),
                pl.BlockSpec((1, Cout, S), lambda b: (b, 0, 0)),
                pl.BlockSpec((Cout, 1), lambda b: (0, 0)),
                pl.BlockSpec((Cout, 1), lambda b: (0, 0)),
            ],
            out_specs=(pl.BlockSpec((1, Cout, S), lambda b: (b, 0, 0)),
                       pl.BlockSpec((1, Cout, S), lambda b: (b, 0, 0))),
        ),
        compiler_params=params,
    )(z2, y2, ypl2, scale_c, shift_c)

    return (y_next2.reshape(B, Cout, Ho, Wo),
            y_left2.reshape(B, Cout, Ho, Wo))


# ------------------------- pure-JAX reference check -------------------------

def _reference(x, y, y_pre_left, conv_w, conv_b, bn_gamma, bn_beta,
               delta, weight_x, weight_y, scale):
    B, Cin, H, W = x.shape
    Cout, _, K, _ = conv_w.shape
    Hc, Wc = H - K + 1, W - K + 1
    Ho, Wo = int(Hc * scale), int(Wc * scale)
    conv = lax.conv_general_dilated(
        weight_x * x, conv_w, window_strides=(1, 1), padding="VALID",
        dimension_numbers=("NCHW", "OIHW", "NCHW"),
        precision=lax.Precision.HIGHEST) + conv_b.reshape(1, Cout, 1, 1)
    mh = jnp.asarray(_bilinear_matrix(Hc, Ho), jnp.float32)
    mw = jnp.asarray(_bilinear_matrix(Wc, Wo), jnp.float32)
    u = jnp.einsum("Hh,bchw,Ww->bcHW", mh, conv, mw,
                   precision=lax.Precision.HIGHEST)
    z = jnp.maximum(weight_y * y + u, 0.0)
    mean = z.mean(axis=(0, 2, 3), keepdims=True)
    var = ((z - mean) ** 2).mean(axis=(0, 2, 3), keepdims=True)
    zn = ((z - mean) * lax.rsqrt(var + _BN_EPS) * bn_gamma.reshape(1, Cout, 1, 1)
          + bn_beta.reshape(1, Cout, 1, 1))
    y_left = delta * weight_y * y + delta * zn
    y_next = y - 1.5 * y_left + 0.5 * y_pre_left
    return y_next, y_left


if __name__ == "__main__":
    key = jax.random.PRNGKey(0)
    kx, ky, kp, kw, kb = jax.random.split(key, 5)

    B, Cin, H, W = 2, 4, 16, 16
    Cout, K, scale = 8, 3, 2
    Hc, Wc = H - K + 1, W - K + 1
    Ho, Wo = Hc * scale, Wc * scale

    x = jax.random.normal(kx, (B, Cin, H, W), jnp.float32)
    y = jax.random.normal(ky, (B, Cout, Ho, Wo), jnp.float32)
    y_pre_left = jax.random.normal(kp, (B, Cout, Ho, Wo), jnp.float32)

    # Deterministic parameter init (shapes from nn.Conv2d / nn.BatchNorm2d).
    conv_w = 0.1 * jax.random.normal(kw, (Cout, Cin, K, K), jnp.float32)
    conv_b = 0.1 * jax.random.normal(kb, (Cout,), jnp.float32)
    bn_gamma = jnp.ones((Cout,), jnp.float32)   # BatchNorm2d default weight
    bn_beta = jnp.zeros((Cout,), jnp.float32)   # BatchNorm2d default bias

    delta, weight_x, weight_y = 0.1, 0.8, 1.2

    y_next, y_left = c_rb_forward(x, y, y_pre_left, conv_w, conv_b,
                                  bn_gamma, bn_beta, delta, weight_x,
                                  weight_y, scale)
    jax.block_until_ready((y_next, y_left))

    yn_ref, yl_ref = _reference(x, y, y_pre_left, conv_w, conv_b,
                                bn_gamma, bn_beta, delta, weight_x,
                                weight_y, scale)
    np.testing.assert_allclose(np.asarray(y_next), np.asarray(yn_ref),
                               rtol=2e-2, atol=2e-2)
    np.testing.assert_allclose(np.asarray(y_left), np.asarray(yl_ref),
                               rtol=2e-2, atol=2e-2)
    print("KERNEL_OK")
</pallas_src>

<mosaic_0001>
module attributes {stable_mosaic.version = 11 : i64} {
  func.func @kernel(%arg0: i32, %arg1: memref<1x36x224xf32, #tpu.memory_space<vmem>>, %arg2: memref<1x8x28x28xf32, #tpu.memory_space<vmem>>, %arg3: memref<8x36xf32, #tpu.memory_space<vmem>>, %arg4: memref<8x1xf32, #tpu.memory_space<vmem>>, %arg5: memref<28x14xf32, #tpu.memory_space<vmem>>, %arg6: memref<16x28xf32, #tpu.memory_space<vmem>>, %arg7: memref<1x8x28x28xf32, #tpu.memory_space<vmem>>, %arg8: memref<8x14x16xf32, #tpu.memory_space<vmem>>) attributes {dimension_semantics = [#tpu.dimension_semantics<parallel>], iteration_bounds = array<i64: 2>, scalar_prefetch = 0 : i64, scratch_operands = 1 : i64, tpu.core_type = #tpu.core_type<tc>, window_params = [{transform_indices = @transform_0, window_bounds = array<i64: 1, 36, 224>}, {transform_indices = @transform_1, window_bounds = array<i64: 1, 8, 28, 28>}, {pipeline_mode = #tpu.pipeline_mode<synchronous>, transform_indices = @transform_2, window_bounds = array<i64: 8, 36>}, {pipeline_mode = #tpu.pipeline_mode<synchronous>, transform_indices = @transform_3, window_bounds = array<i64: 8, 1>}, {pipeline_mode = #tpu.pipeline_mode<synchronous>, transform_indices = @transform_4, window_bounds = array<i64: 28, 14>}, {pipeline_mode = #tpu.pipeline_mode<synchronous>, transform_indices = @transform_5, window_bounds = array<i64: 16, 28>}, {transform_indices = @transform_6, window_bounds = array<i64: 1, 8, 28, 28>}]} {
    %c0 = arith.constant 0 : index
    %c0_0 = arith.constant 0 : index
    %0 = vector.load %arg3[%c0, %c0_0] : memref<8x36xf32, #tpu.memory_space<vmem>>, vector<8x36xf32>
    %c0_1 = arith.constant 0 : index
    %c0_2 = arith.constant 0 : index
    %c0_3 = arith.constant 0 : index
    %1 = vector.load %arg1[%c0_1, %c0_2, %c0_3] : memref<1x36x224xf32, #tpu.memory_space<vmem>>, vector<1x36x224xf32>
    %2 = vector.shape_cast %1 : vector<1x36x224xf32> to vector<36x224xf32>
    %cst = arith.constant dense<0.000000e+00> : vector<8x224xf32>
    %3 = tpu.matmul %0, %2, %cst {dimension_numbers = #tpu.dot_dimension_numbers<[1], [0], [0], [1], [0, 0, 1, 1], [], []>} : vector<8x36xf32>, vector<36x224xf32>, vector<8x224xf32> -> vector<8x224xf32>
    %c0_4 = arith.constant 0 : index
    %c0_5 = arith.constant 0 : index
    %4 = vector.load %arg4[%c0_4, %c0_5] : memref<8x1xf32, #tpu.memory_space<vmem>>, vector<8x1xf32>
    %5 = vector.broadcast %4 : vector<8x1xf32> to vector<8x224xf32>
    %6 = arith.addf %3, %5 : vector<8x224xf32>
    %7 = vector.extract_strided_slice %6 {offsets = [0, 0], sizes = [8, 16], strides = [1, 1]} : vector<8x224xf32> to vector<8x16xf32>
    %8 = vector.extract_strided_slice %7 {offsets = [0, 0], sizes = [1, 16], strides = [1, 1]} : vector<8x16xf32> to vector<1x16xf32>
    %c0_6 = arith.constant 0 : index
    %c0_7 = arith.constant 0 : index
    %c0_8 = arith.constant 0 : index
    %9 = vector.load %arg8[%c0_6, %c0_7, %c0_8] : memref<8x14x16xf32, #tpu.memory_space<vmem>>, vector<1x1x16xf32>
    %10 = vector.shape_cast %9 : vector<1x1x16xf32> to vector<1x16xf32>
    %11 = vector.shape_cast %8 : vector<1x16xf32> to vector<1x1x16xf32>
    tpu.vector_store %arg8[%c0_6, %c0_7, %c0_8], %11 {strides = array<i32>} : memref<8x14x16xf32, #tpu.memory_space<vmem>>, vector<1x1x16xf32>,
    %12 = vector.extract_strided_slice %7 {offsets = [1, 0], sizes = [1, 16], strides = [1, 1]} : vector<8x16xf32> to vector<1x16xf32>
    %c1 = arith.constant 1 : index
    %c0_9 = arith.constant 0 : index
    %c0_10 = arith.constant 0 : index
    %13 = vector.load %arg8[%c1, %c0_9, %c0_10] : memref<8x14x16xf32, #tpu.memory_space<vmem>>, vector<1x1x16xf32>
    %14 = vector.shape_cast %13 : vector<1x1x16xf32> to vector<1x16xf32>
    %15 = vector.shape_cast %12 : vector<1x16xf32> to vector<1x1x16xf32>
    tpu.vector_store %arg8[%c1, %c0_9, %c0_10], %15 {strides = array<i32>} : memref<8x14x16xf32, #tpu.memory_space<vmem>>, vector<1x1x16xf32>,
    %16 = vector.extract_strided_slice %7 {offsets = [2, 0], sizes = [1, 16], strides = [1, 1]} : vector<8x16xf32> to vector<1x16xf32>
    %c2 = arith.constant 2 : index
    %c0_11 = arith.constant 0 : index
    %c0_12 = arith.constant 0 : index
    %17 = vector.load %arg8[%c2, %c0_11, %c0_12] : memref<8x14x16xf32, #tpu.memory_space<vmem>>, vector<1x1x16xf32>
    %18 = vector.shape_cast %17 : vector<1x1x16xf32> to vector<1x16xf32>
    %19 = vector.shape_cast %16 : vector<1x16xf32> to vector<1x1x16xf32>
    tpu.vector_store %arg8[%c2, %c0_11, %c0_12], %19 {strides = array<i32>} : memref<8x14x16xf32, #tpu.memory_space<vmem>>, vector<1x1x16xf32>,
    %20 = vector.extract_strided_slice %7 {offsets = [3, 0], sizes = [1, 16], strides = [1, 1]} : vector<8x16xf32> to vector<1x16xf32>
    %c3 = arith.constant 3 : index
    %c0_13 = arith.constant 0 : index
    %c0_14 = arith.constant 0 : index
    %21 = vector.load %arg8[%c3, %c0_13, %c0_14] : memref<8x14x16xf32, #tpu.memory_space<vmem>>, vector<1x1x16xf32>
    %22 = vector.shape_cast %21 : vector<1x1x16xf32> to vector<1x16xf32>
    %23 = vector.shape_cast %20 : vector<1x16xf32> to vector<1x1x16xf32>
    tpu.vector_store %arg8[%c3, %c0_13, %c0_14], %23 {strides = array<i32>} : memref<8x14x16xf32, #tpu.memory_space<vmem>>, vector<1x1x16xf32>,
    %24 = vector.extract_strided_slice %7 {offsets = [4, 0], sizes = [1, 16], strides = [1, 1]} : vector<8x16xf32> to vector<1x16xf32>
    %c4 = arith.constant 4 : index
    %c0_15 = arith.constant 0 : index
    %c0_16 = arith.constant 0 : index
    %25 = vector.load %arg8[%c4, %c0_15, %c0_16] : memref<8x14x16xf32, #tpu.memory_space<vmem>>, vector<1x1x16xf32>
    %26 = vector.shape_cast %25 : vector<1x1x16xf32> to vector<1x16xf32>
    %27 = vector.shape_cast %24 : vector<1x16xf32> to vector<1x1x16xf32>
    tpu.vector_store %arg8[%c4, %c0_15, %c0_16], %27 {strides = array<i32>} : memref<8x14x16xf32, #tpu.memory_space<vmem>>, vector<1x1x16xf32>,
    %28 = vector.extract_strided_slice %7 {offsets = [5, 0], sizes = [1, 16], strides = [1, 1]} : vector<8x16xf32> to vector<1x16xf32>
    %c5 = arith.constant 5 : index
    %c0_17 = arith.constant 0 : index
    %c0_18 = arith.constant 0 : index
    %29 = vector.load %arg8[%c5, %c0_17, %c0_18] : memref<8x14x16xf32, #tpu.memory_space<vmem>>, vector<1x1x16xf32>
    %30 = vector.shape_cast %29 : vector<1x1x16xf32> to vector<1x16xf32>
    %31 = vector.shape_cast %28 : vector<1x16xf32> to vector<1x1x16xf32>
    tpu.vector_store %arg8[%c5, %c0_17, %c0_18], %31 {strides = array<i32>} : memref<8x14x16xf32, #tpu.memory_space<vmem>>, vector<1x1x16xf32>,
    %32 = vector.extract_strided_slice %7 {offsets = [6, 0], sizes = [1, 16], strides = [1, 1]} : vector<8x16xf32> to vector<1x16xf32>
    %c6 = arith.constant 6 : index
    %c0_19 = arith.constant 0 : index
    %c0_20 = arith.constant 0 : index
    %33 = vector.load %arg8[%c6, %c0_19, %c0_20] : memref<8x14x16xf32, #tpu.memory_space<vmem>>, vector<1x1x16xf32>
    %34 = vector.shape_cast %33 : vector<1x1x16xf32> to vector<1x16xf32>
    %35 = vector.shape_cast %32 : vector<1x16xf32> to vector<1x1x16xf32>
    tpu.vector_store %arg8[%c6, %c0_19, %c0_20], %35 {strides = array<i32>} : memref<8x14x16xf32, #tpu.memory_space<vmem>>, vector<1x1x16xf32>,
    %36 = vector.extract_strided_slice %7 {offsets = [7, 0], sizes = [1, 16], strides = [1, 1]} : vector<8x16xf32> to vector<1x16xf32>
    %c7 = arith.constant 7 : index
    %c0_21 = arith.constant 0 : index
    %c0_22 = arith.constant 0 : index
    %37 = vector.load %arg8[%c7, %c0_21, %c0_22] : memref<8x14x16xf32, #tpu.memory_space<vmem>>, vector<1x1x16xf32>
    %38 = vector.shape_cast %37 : vector<1x1x16xf32> to vector<1x16xf32>
    %39 = vector.shape_cast %36 : vector<1x16xf32> to vector<1x1x16xf32>
    tpu.vector_store %arg8[%c7, %c0_21, %c0_22], %39 {strides = array<i32>} : memref<8x14x16xf32, #tpu.memory_space<vmem>>, vector<1x1x16xf32>,
    %40 = vector.extract_strided_slice %6 {offsets = [0, 16], sizes = [8, 16], strides = [1, 1]} : vector<8x224xf32> to vector<8x16xf32>
    %41 = vector.extract_strided_slice %40 {offsets = [0, 0], sizes = [1, 16], strides = [1, 1]} : vector<8x16xf32> to vector<1x16xf32>
    %c0_23 = arith.constant 0 : index
    %c1_24 = arith.constant 1 : index
    %c0_25 = arith.constant 0 : index
    %42 = vector.load %arg8[%c0_23, %c1_24, %c0_25] : memref<8x14x16xf32, #tpu.memory_space<vmem>>, vector<1x1x16xf32>
    %43 = vector.shape_cast %42 : vector<1x1x16xf32> to vector<1x16xf32>
    %44 = vector.shape_cast %41 : vector<1x16xf32> to vector<1x1x16xf32>
    tpu.vector_store %arg8[%c0_23, %c1_24, %c0_25], %44 {strides = array<i32>} : memref<8x14x16xf32, #tpu.memory_space<vmem>>, vector<1x1x16xf32>,
    %45 = vector.extract_strided_slice %40 {offsets = [1, 0], sizes = [1, 16], strides = [1, 1]} : vector<8x16xf32> to vector<1x16xf32>
    %c1_26 = arith.constant 1 : index
    %c1_27 = arith.constant 1 : index
    %c0_28 = arith.constant 0 : index
    %46 = vector.load %arg8[%c1_26, %c1_27, %c0_28] : memref<8x14x16xf32, #tpu.memory_space<vmem>>, vector<1x1x16xf32>
    %47 = vector.shape_cast %46 : vector<1x1x16xf32> to vector<1x16xf32>
    %48 = vector.shape_cast %45 : vector<1x16xf32> to vector<1x1x16xf32>
    tpu.vector_store %arg8[%c1_26, %c1_27, %c0_28], %48 {strides = array<i32>} : memref<8x14x16xf32, #tpu.memory_space<vmem>>, vector<1x1x16xf32>,
    %49 = vector.extract_strided_slice %40 {offsets = [2, 0], sizes = [1, 16], strides = [1, 1]} : vector<8x16xf32> to vector<1x16xf32>
    %c2_29 = arith.constant 2 : index
    %c1_30 = arith.constant 1 : index
    %c0_31 = arith.constant 0 : index
    %50 = vector.load %arg8[%c2_29, %c1_30, %c0_31] : memref<8x14x16xf32, #tpu.memory_space<vmem>>, vector<1x1x16xf32>
    %51 = vector.shape_cast %50 : vector<1x1x16xf32> to vector<1x16xf32>
    %52 = vector.shape_cast %49 : vector<1x16xf32> to vector<1x1x16xf32>
    tpu.vector_store %arg8[%c2_29, %c1_30, %c0_31], %52 {strides = array<i32>} : memref<8x14x16xf32, #tpu.memory_space<vmem>>, vector<1x1x16xf32>,
    %53 = vector.extract_strided_slice %40 {offsets = [3, 0], sizes = [1, 16], strides = [1, 1]} : vector<8x16xf32> to vector<1x16xf32>
    %c3_32 = arith.constant 3 : index
    %c1_33 = arith.constant 1 : index
    %c0_34 = arith.constant 0 : index
    %54 = vector.load %arg8[%c3_32, %c1_33, %c0_34] : memref<8x14x16xf32, #tpu.memory_space<vmem>>, vector<1x1x16xf32>
    %55 = vector.shape_cast %54 : vector<1x1x16xf32> to vector<1x16xf32>
    %56 = vector.shape_cast %53 : vector<1x16xf32> to vector<1x1x16xf32>
    tpu.vector_store %arg8[%c3_32, %c1_33, %c0_34], %56 {strides = array<i32>} : memref<8x14x16xf32, #tpu.memory_space<vmem>>, vector<1x1x16xf32>,
    %57 = vector.extract_strided_slice %40 {offsets = [4, 0], sizes = [1, 16], strides = [1, 1]} : vector<8x16xf32> to vector<1x16xf32>
    %c4_35 = arith.constant 4 : index
    %c1_36 = arith.constant 1 : index
    %c0_37 = arith.constant 0 : index
    %58 = vector.load %arg8[%c4_35, %c1_36, %c0_37] : memref<8x14x16xf32, #tpu.memory_space<vmem>>, vector<1x1x16xf32>
    %59 = vector.shape_cast %58 : vector<1x1x16xf32> to vector<1x16xf32>
    %60 = vector.shape_cast %57 : vector<1x16xf32> to vector<1x1x16xf32>
    tpu.vector_store %arg8[%c4_35, %c1_36, %c0_37], %60 {strides = array<i32>} : memref<8x14x16xf32, #tpu.memory_space<vmem>>, vector<1x1x16xf32>,
    %61 = vector.extract_strided_slice %40 {offsets = [5, 0], sizes = [1, 16], strides = [1, 1]} : vector<8x16xf32> to vector<1x16xf32>
    %c5_38 = arith.constant 5 : index
    %c1_39 = arith.constant 1 : index
    %c0_40 = arith.constant 0 : index
    %62 = vector.load %arg8[%c5_38, %c1_39, %c0_40] : memref<8x14x16xf32, #tpu.memory_space<vmem>>, vector<1x1x16xf32>
    %63 = vector.shape_cast %62 : vector<1x1x16xf32> to vector<1x16xf32>
    %64 = vector.shape_cast %61 : vector<1x16xf32> to vector<1x1x16xf32>
    tpu.vector_store %arg8[%c5_38, %c1_39, %c0_40], %64 {strides = array<i32>} : memref<8x14x16xf32, #tpu.memory_space<vmem>>, vector<1x1x16xf32>,
    %65 = vector.extract_strided_slice %40 {offsets = [6, 0], sizes = [1, 16], strides = [1, 1]} : vector<8x16xf32> to vector<1x16xf32>
    %c6_41 = arith.constant 6 : index
    %c1_42 = arith.constant 1 : index
    %c0_43 = arith.constant 0 : index
    %66 = vector.load %arg8[%c6_41, %c1_42, %c0_43] : memref<8x14x16xf32, #tpu.memory_space<vmem>>, vector<1x1x16xf32>
    %67 = vector.shape_cast %66 : vector<1x1x16xf32> to vector<1x16xf32>
    %68 = vector.shape_cast %65 : vector<1x16xf32> to vector<1x1x16xf32>
    tpu.vector_store %arg8[%c6_41, %c1_42, %c0_43], %68 {strides = array<i32>} : memref<8x14x16xf32, #tpu.memory_space<vmem>>, vector<1x1x16xf32>,
    %69 = vector.extract_strided_slice %40 {offsets = [7, 0], sizes = [1, 16], strides = [1, 1]} : vector<8x16xf32> to vector<1x16xf32>
    %c7_44 = arith.constant 7 : index
    %c1_45 = arith.constant 1 : index
    %c0_46 = arith.constant 0 : index
    %70 = vector.load %arg8[%c7_44, %c1_45, %c0_46] : memref<8x14x16xf32, #tpu.memory_space<vmem>>, vector<1x1x16xf32>
    %71 = vector.shape_cast %70 : vector<1x1x16xf32> to vector<1x16xf32>
    %72 = vector.shape_cast %69 : vector<1x16xf32> to vector<1x1x16xf32>
    tpu.vector_store %arg8[%c7_44, %c1_45, %c0_46], %72 {strides = array<i32>} : memref<8x14x16xf32, #tpu.memory_space<vmem>>, vector<1x1x16xf32>,
    %73 = vector.extract_strided_slice %6 {offsets = [0, 32], sizes = [8, 16], strides = [1, 1]} : vector<8x224xf32> to vector<8x16xf32>
    %74 = vector.extract_strided_slice %73 {offsets = [0, 0], sizes = [1, 16], strides = [1, 1]} : vector<8x16xf32> to vector<1x16xf32>
    %c0_47 = arith.constant 0 : index
    %c2_48 = arith.constant 2 : index
    %c0_49 = arith.constant 0 : index
    %75 = vector.load %arg8[%c0_47, %c2_48, %c0_49] : memref<8x14x16xf32, #tpu.memory_space<vmem>>, vector<1x1x16xf32>
    %76 = vector.shape_cast %75 : vector<1x1x16xf32> to vector<1x16xf32>
    %77 = vector.shape_cast %74 : vector<1x16xf32> to vector<1x1x16xf32>
    tpu.vector_store %arg8[%c0_47, %c2_48, %c0_49], %77 {strides = array<i32>} : memref<8x14x16xf32, #tpu.memory_space<vmem>>, vector<1x1x16xf32>,
    %78 = vector.extract_strided_slice %73 {offsets = [1, 0], sizes = [1, 16], strides = [1, 1]} : vector<8x16xf32> to vector<1x16xf32>
    %c1_50 = arith.constant 1 : index
    %c2_51 = arith.constant 2 : index
    %c0_52 = arith.constant 0 : index
    %79 = vector.load %arg8[%c1_50, %c2_51, %c0_52] : memref<8x14x16xf32, #tpu.memory_space<vmem>>, vector<1x1x16xf32>
    %80 = vector.shape_cast %79 : vector<1x1x16xf32> to vector<1x16xf32>
    %81 = vector.shape_cast %78 : vector<1x16xf32> to vector<1x1x16xf32>
    tpu.vector_store %arg8[%c1_50, %c2_51, %c0_52], %81 {strides = array<i32>} : memref<8x14x16xf32, #tpu.memory_space<vmem>>, vector<1x1x16xf32>,
    %82 = vector.extract_strided_slice %73 {offsets = [2, 0], sizes = [1, 16], strides = [1, 1]} : vector<8x16xf32> to vector<1x16xf32>
    %c2_53 = arith.constant 2 : index
    %c2_54 = arith.constant 2 : index
    %c0_55 = arith.constant 0 : index
    %83 = vector.load %arg8[%c2_53, %c2_54, %c0_55] : memref<8x14x16xf32, #tpu.memory_space<vmem>>, vector<1x1x16xf32>
    %84 = vector.shape_cast %83 : vector<1x1x16xf32> to vector<1x16xf32>
    %85 = vector.shape_cast %82 : vector<1x16xf32> to vector<1x1x16xf32>
    tpu.vector_store %arg8[%c2_53, %c2_54, %c0_55], %85 {strides = array<i32>} : memref<8x14x16xf32, #tpu.memory_space<vmem>>, vector<1x1x16xf32>,
    %86 = vector.extract_strided_slice %73 {offsets = [3, 0], sizes = [1, 16], strides = [1, 1]} : vector<8x16xf32> to vector<1x16xf32>
    %c3_56 = arith.constant 3 : index
    %c2_57 = arith.constant 2 : index
    %c0_58 = arith.constant 0 : index
    %87 = vector.load %arg8[%c3_56, %c2_57, %c0_58] : memref<8x14x16xf32, #tpu.memory_space<vmem>>, vector<1x1x16xf32>
    %88 = vector.shape_cast %87 : vector<1x1x16xf32> to vector<1x16xf32>
    %89 = vector.shape_cast %86 : vector<1x16xf32> to vector<1x1x16xf32>
    tpu.vector_store %arg8[%c3_56, %c2_57, %c0_58], %89 {strides = array<i32>} : memref<8x14x16xf32, #tpu.memory_space<vmem>>, vector<1x1x16xf32>,
    %90 = vector.extract_strided_slice %73 {offsets = [4, 0], sizes = [1, 16], strides = [1, 1]} : vector<8x16xf32> to vector<1x16xf32>
    %c4_59 = arith.constant 4 : index
    %c2_60 = arith.constant 2 : index
    %c0_61 = arith.constant 0 : index
    %91 = vector.load %arg8[%c4_59, %c2_60, %c0_61] : memref<8x14x16xf32, #tpu.memory_space<vmem>>, vector<1x1x16xf32>
    %92 = vector.shape_cast %91 : vector<1x1x16xf32> to vector<1x16xf32>
    %93 = vector.shape_cast %90 : vector<1x16xf32> to vector<1x1x16xf32>
    tpu.vector_store %arg8[%c4_59, %c2_60, %c0_61], %93 {strides = array<i32>} : memref<8x14x16xf32, #tpu.memory_space<vmem>>, vector<1x1x16xf32>,
    %94 = vector.extract_strided_slice %73 {offsets = [5, 0], sizes = [1, 16], strides = [1, 1]} : vector<8x16xf32> to vector<1x16xf32>
    %c5_62 = arith.constant 5 : index
    %c2_63 = arith.constant 2 : index
    %c0_64 = arith.constant 0 : index
    %95 = vector.load %arg8[%c5_62, %c2_63, %c0_64] : memref<8x14x16xf32, #tpu.memory_space<vmem>>, vector<1x1x16xf32>
    %96 = vector.shape_cast %95 : vector<1x1x16xf32> to vector<1x16xf32>
    %97 = vector.shape_cast %94 : vector<1x16xf32> to vector<1x1x16xf32>
    tpu.vector_store %arg8[%c5_62, %c2_63, %c0_64], %97 {strides = array<i32>} : memref<8x14x16xf32, #tpu.memory_space<vmem>>, vector<1x1x16xf32>,
    %98 = vector.extract_strided_slice %73 {offsets = [6, 0], sizes = [1, 16], strides = [1, 1]} : vector<8x16xf32> to vector<1x16xf32>
    %c6_65 = arith.constant 6 : index
    %c2_66 = arith.constant 2 : index
    %c0_67 = arith.constant 0 : index
    %99 = vector.load %arg8[%c6_65, %c2_66, %c0_67] : memref<8x14x16xf32, #tpu.memory_space<vmem>>, vector<1x1x16xf32>
    %100 = vector.shape_cast %99 : vector<1x1x16xf32> to vector<1x16xf32>
    %101 = vector.shape_cast %98 : vector<1x16xf32> to vector<1x1x16xf32>
    tpu.vector_store %arg8[%c6_65, %c2_66, %c0_67], %101 {strides = array<i32>} : memref<8x14x16xf32, #tpu.memory_space<vmem>>, vector<1x1x16xf32>,
    %102 = vector.extract_strided_slice %73 {offsets = [7, 0], sizes = [1, 16], strides = [1, 1]} : vector<8x16xf32> to vector<1x16xf32>
    %c7_68 = arith.constant 7 : index
    %c2_69 = arith.constant 2 : index
    %c0_70 = arith.constant 0 : index
    %103 = vector.load %arg8[%c7_68, %c2_69, %c0_70] : memref<8x14x16xf32, #tpu.memory_space<vmem>>, vector<1x1x16xf32>
    %104 = vector.shape_cast %103 : vector<1x1x16xf32> to vector<1x16xf32>
    %105 = vector.shape_cast %102 : vector<1x16xf32> to vector<1x1x16xf32>
    tpu.vector_store %arg8[%c7_68, %c2_69, %c0_70], %105 {strides = array<i32>} : memref<8x14x16xf32, #tpu.memory_space<vmem>>, vector<1x1x16xf32>,
    %106 = vector.extract_strided_slice %6 {offsets = [0, 48], sizes = [8, 16], strides = [1, 1]} : vector<8x224xf32> to vector<8x16xf32>
    %107 = vector.extract_strided_slice %106 {offsets = [0, 0], sizes = [1, 16], strides = [1, 1]} : vector<8x16xf32> to vector<1x16xf32>
    %c0_71 = arith.constant 0 : index
    %c3_72 = arith.constant 3 : index
    %c0_73 = arith.constant 0 : index
    %108 = vector.load %arg8[%c0_71, %c3_72, %c0_73] : memref<8x14x16xf32, #tpu.memory_space<vmem>>, vector<1x1x16xf32>
    %109 = vector.shape_cast %108 : vector<1x1x16xf32> to vector<1x16xf32>
    %110 = vector.shape_cast %107 : vector<1x16xf32> to vector<1x1x16xf32>
    tpu.vector_store %arg8[%c0_71, %c3_72, %c0_73], %110 {strides = array<i32>} : memref<8x14x16xf32, #tpu.memory_space<vmem>>, vector<1x1x16xf32>,
    %111 = vector.extract_strided_slice %106 {offsets = [1, 0], sizes = [1, 16], strides = [1, 1]} : vector<8x16xf32> to vector<1x16xf32>
    %c1_74 = arith.constant 1 : index
    %c3_75 = arith.constant 3 : index
    %c0_76 = arith.constant 0 : index
    %112 = vector.load %arg8[%c1_74, %c3_75, %c0_76] : memref<8x14x16xf32, #tpu.memory_space<vmem>>, vector<1x1x16xf32>
    %113 = vector.shape_cast %112 : vector<1x1x16xf32> to vector<1x16xf32>
    %114 = vector.shape_cast %111 : vector<1x16xf32> to vector<1x1x16xf32>
    tpu.vector_store %arg8[%c1_74, %c3_75, %c0_76], %114 {strides = array<i32>} : memref<8x14x16xf32, #tpu.memory_space<vmem>>, vector<1x1x16xf32>,
    %115 = vector.extract_strided_slice %106 {offsets = [2, 0], sizes = [1, 16], strides = [1, 1]} : vector<8x16xf32> to vector<1x16xf32>
    %c2_77 = arith.constant 2 : index
    %c3_78 = arith.constant 3 : index
    %c0_79 = arith.constant 0 : index
    %116 = vector.load %arg8[%c2_77, %c3_78, %c0_79] : memref<8x14x16xf32, #tpu.memory_space<vmem>>, vector<1x1x16xf32>
    %117 = vector.shape_cast %116 : vector<1x1x16xf32> to vector<1x16xf32>
    %118 = vector.shape_cast %115 : vector<1x16xf32> to vector<1x1x16xf32>
    tpu.vector_store %arg8[%c2_77, %c3_78, %c0_79], %118 {strides = array<i32>} : memref<8x14x16xf32, #tpu.memory_space<vmem>>, vector<1x1x16xf32>,
    %119 = vector.extract_strided_slice %106 {offsets = [3, 0], sizes = [1, 16], strides = [1, 1]} : vector<8x16xf32> to vector<1x16xf32>
    %c3_80 = arith.constant 3 : index
    %c3_81 = arith.constant 3 : index
    %c0_82 = arith.constant 0 : index
    %120 = vector.load %arg8[%c3_80, %c3_81, %c0_82] : memref<8x14x16xf32, #tpu.memory_space<vmem>>, vector<1x1x16xf32>
    %121 = vector.shape_cast %120 : vector<1x1x16xf32> to vector<1x16xf32>
    %122 = vector.shape_cast %119 : vector<1x16xf32> to vector<1x1x16xf32>
    tpu.vector_store %arg8[%c3_80, %c3_81, %c0_82], %122 {strides = array<i32>} : memref<8x14x16xf32, #tpu.memory_space<vmem>>, vector<1x1x16xf32>,
    %123 = vector.extract_strided_slice %106 {offsets = [4, 0], sizes = [1, 16], strides = [1, 1]} : vector<8x16xf32> to vector<1x16xf32>
    %c4_83 = arith.constant 4 : index
    %c3_84 = arith.constant 3 : index
    %c0_85 = arith.constant 0 : index
    %124 = vector.load %arg8[%c4_83, %c3_84, %c0_85] : memref<8x14x16xf32, #tpu.memory_space<vmem>>, vector<1x1x16xf32>
    %125 = vector.shape_cast %124 : vector<1x1x16xf32> to vector<1x16xf32>
    %126 = vector.shape_cast %123 : vector<1x16xf32> to vector<1x1x16xf32>
    tpu.vector_store %arg8[%c4_83, %c3_84, %c0_85], %126 {strides = array<i32>} : memref<8x14x16xf32, #tpu.memory_space<vmem>>, vector<1x1x16xf32>,
    %127 = vector.extract_strided_slice %106 {offsets = [5, 0], sizes = [1, 16], strides = [1, 1]} : vector<8x16xf32> to vector<1x16xf32>
    %c5_86 = arith.constant 5 : index
    %c3_87 = arith.constant 3 : index
    %c0_88 = arith.constant 0 : index
    %128 = vector.load %arg8[%c5_86, %c3_87, %c0_88] : memref<8x14x16xf32, #tpu.memory_space<vmem>>, vector<1x1x16xf32>
    %129 = vector.shape_cast %128 : vector<1x1x16xf32> to vector<1x16xf32>
    %130 = vector.shape_cast %127 : vector<1x16xf32> to vector<1x1x16xf32>
    tpu.vector_store %arg8[%c5_86, %c3_87, %c0_88], %130 {strides = array<i32>} : memref<8x14x16xf32, #tpu.memory_space<vmem>>, vector<1x1x16xf32>,
    %131 = vector.extract_strided_slice %106 {offsets = [6, 0], sizes = [1, 16], strides = [1, 1]} : vector<8x16xf32> to vector<1x16xf32>
    %c6_89 = arith.constant 6 : index
    %c3_90 = arith.constant 3 : index
    %c0_91 = arith.constant 0 : index
    %132 = vector.load %arg8[%c6_89, %c3_90, %c0_91] : memref<8x14x16xf32, #tpu.memory_space<vmem>>, vector<1x1x16xf32>
    %133 = vector.shape_cast %132 : vector<1x1x16xf32> to vector<1x16xf32>
    %134 = vector.shape_cast %131 : vector<1x16xf32> to vector<1x1x16xf32>
    tpu.vector_store %arg8[%c6_89, %c3_90, %c0_91], %134 {strides = array<i32>} : memref<8x14x16xf32, #tpu.memory_space<vmem>>, vector<1x1x16xf32>,
    %135 = vector.extract_strided_slice %106 {offsets = [7, 0], sizes = [1, 16], strides = [1, 1]} : vector<8x16xf32> to vector<1x16xf32>
    %c7_92 = arith.constant 7 : index
    %c3_93 = arith.constant 3 : index
    %c0_94 = arith.constant 0 : index
    %136 = vector.load %arg8[%c7_92, %c3_93, %c0_94] : memref<8x14x16xf32, #tpu.memory_space<vmem>>, vector<1x1x16xf32>
    %137 = vector.shape_cast %136 : vector<1x1x16xf32> to vector<1x16xf32>
    %138 = vector.shape_cast %135 : vector<1x16xf32> to vector<1x1x16xf32>
    tpu.vector_store %arg8[%c7_92, %c3_93, %c0_94], %138 {strides = array<i32>} : memref<8x14x16xf32, #tpu.memory_space<vmem>>, vector<1x1x16xf32>,
    %139 = vector.extract_strided_slice %6 {offsets = [0, 64], sizes = [8, 16], strides = [1, 1]} : vector<8x224xf32> to vector<8x16xf32>
    %140 = vector.extract_strided_slice %139 {offsets = [0, 0], sizes = [1, 16], strides = [1, 1]} : vector<8x16xf32> to vector<1x16xf32>
    %c0_95 = arith.constant 0 : index
    %c4_96 = arith.constant 4 : index
    %c0_97 = arith.constant 0 : index
    %141 = vector.load %arg8[%c0_95, %c4_96, %c0_97] : memref<8x14x16xf32, #tpu.memory_space<vmem>>, vector<1x1x16xf32>
    %142 = vector.shape_cast %141 : vector<1x1x16xf32> to vector<1x16xf32>
    %143 = vector.shape_cast %140 : vector<1x16xf32> to vector<1x1x16xf32>
    tpu.vector_store %arg8[%c0_95, %c4_96, %c0_97], %143 {strides = array<i32>} : memref<8x14x16xf32, #tpu.memory_space<vmem>>, vector<1x1x16xf32>,
    %144 = vector.extract_strided_slice %139 {offsets = [1, 0], sizes = [1, 16], strides = [1, 1]} : vector<8x16xf32> to vector<1x16xf32>
    %c1_98 = arith.constant 1 : index
    %c4_99 = arith.constant 4 : index
    %c0_100 = arith.constant 0 : index
    %145 = vector.load %arg8[%c1_98, %c4_99, %c0_100] : memref<8x14x16xf32, #tpu.memory_space<vmem>>, vector<1x1x16xf32>
    %146 = vector.shape_cast %145 : vector<1x1x16xf32> to vector<1x16xf32>
    %147 = vector.shape_cast %144 : vector<1x16xf32> to vector<1x1x16xf32>
    tpu.vector_store %arg8[%c1_98, %c4_99, %c0_100], %147 {strides = array<i32>} : memref<8x14x16xf32, #tpu.memory_space<vmem>>, vector<1x1x16xf32>,
    %148 = vector.extract_strided_slice %139 {offsets = [2, 0], sizes = [1, 16], strides = [1, 1]} : vector<8x16xf32> to vector<1x16xf32>
    %c2_101 = arith.constant 2 : index
    %c4_102 = arith.constant 4 : index
    %c0_103 = arith.constant 0 : index
    %149 = vector.load %arg8[%c2_101, %c4_102, %c0_103] : memref<8x14x16xf32, #tpu.memory_space<vmem>>, vector<1x1x16xf32>
    %150 = vector.shape_cast %149 : vector<1x1x16xf32> to vector<1x16xf32>
    %151 = vector.shape_cast %148 : vector<1x16xf32> to vector<1x1x16xf32>
    tpu.vector_store %arg8[%c2_101, %c4_102, %c0_103], %151 {strides = array<i32>} : memref<8x14x16xf32, #tpu.memory_space<vmem>>, vector<1x1x16xf32>,
    %152 = vector.extract_strided_slice %139 {offsets = [3, 0], sizes = [1, 16], strides = [1, 1]} : vector<8x16xf32> to vector<1x16xf32>
    %c3_104 = arith.constant 3 : index
    %c4_105 = arith.constant 4 : index
    %c0_106 = arith.constant 0 : index
    %153 = vector.load %arg8[%c3_104, %c4_105, %c0_106] : memref<8x14x16xf32, #tpu.memory_space<vmem>>, vector<1x1x16xf32>
    %154 = vector.shape_cast %153 : vector<1x1x16xf32> to vector<1x16xf32>
    %155 = vector.shape_cast %152 : vector<1x16xf32> to vector<1x1x16xf32>
    tpu.vector_store %arg8[%c3_104, %c4_105, %c0_106], %155 {strides = array<i32>} : memref<8x14x16xf32, #tpu.memory_space<vmem>>, vector<1x1x16xf32>,
    %156 = vector.extract_strided_slice %139 {offsets = [4, 0], sizes = [1, 16], strides = [1, 1]} : vector<8x16xf32> to vector<1x16xf32>
    %c4_107 = arith.constant 4 : index
    %c4_108 = arith.constant 4 : index
    %c0_109 = arith.constant 0 : index
    %157 = vector.load %arg8[%c4_107, %c4_108, %c0_109] : memref<8x14x16xf32, #tpu.memory_space<vmem>>, vector<1x1x16xf32>
    %158 = vector.shape_cast %157 : vector<1x1x16xf32> to vector<1x16xf32>
    %159 = vector.shape_cast %156 : vector<1x16xf32> to vector<1x1x16xf32>
    tpu.vector_store %arg8[%c4_107, %c4_108, %c0_109], %159 {strides = array<i32>} : memref<8x14x16xf32, #tpu.memory_space<vmem>>, vector<1x1x16xf32>,
    %160 = vector.extract_strided_slice %139 {offsets = [5, 0], sizes = [1, 16], strides = [1, 1]} : vector<8x16xf32> to vector<1x16xf32>
    %c5_110 = arith.constant 5 : index
    %c4_111 = arith.constant 4 : index
    %c0_112 = arith.constant 0 : index
    %161 = vector.load %arg8[%c5_110, %c4_111, %c0_112] : memref<8x14x16xf32, #tpu.memory_space<vmem>>, vector<1x1x16xf32>
    %162 = vector.shape_cast %161 : vector<1x1x16xf32> to vector<1x16xf32>
    %163 = vector.shape_cast %160 : vector<1x16xf32> to vector<1x1x16xf32>
    tpu.vector_store %arg8[%c5_110, %c4_111, %c0_112], %163 {strides = array<i32>} : memref<8x14x16xf32, #tpu.memory_space<vmem>>, vector<1x1x16xf32>,
    %164 = vector.extract_strided_slice %139 {offsets = [6, 0], sizes = [1, 16], strides = [1, 1]} : vector<8x16xf32> to vector<1x16xf32>
    %c6_113 = arith.constant 6 : index
    %c4_114 = arith.constant 4 : index
    %c0_115 = arith.constant 0 : index
    %165 = vector.load %arg8[%c6_113, %c4_114, %c0_115] : memref<8x14x16xf32, #tpu.memory_space<vmem>>, vector<1x1x16xf32>
    %166 = vector.shape_cast %165 : vector<1x1x16xf32> to vector<1x16xf32>
    %167 = vector.shape_cast %164 : vector<1x16xf32> to vector<1x1x16xf32>
    tpu.vector_store %arg8[%c6_113, %c4_114, %c0_115], %167 {strides = array<i32>} : memref<8x14x16xf32, #tpu.memory_space<vmem>>, vector<1x1x16xf32>,
    %168 = vector.extract_strided_slice %139 {offsets = [7, 0], sizes = [1, 16], strides = [1, 1]} : vector<8x16xf32> to vector<1x16xf32>
    %c7_116 = arith.constant 7 : index
    %c4_117 = arith.constant 4 : index
    %c0_118 = arith.constant 0 : index
    %169 = vector.load %arg8[%c7_116, %c4_117, %c0_118] : memref<8x14x16xf32, #tpu.memory_space<vmem>>, vector<1x1x16xf32>
    %170 = vector.shape_cast %169 : vector<1x1x16xf32> to vector<1x16xf32>
    %171 = vector.shape_cast %168 : vector<1x16xf32> to vector<1x1x16xf32>
    tpu.vector_store %arg8[%c7_116, %c4_117, %c0_118], %171 {strides = array<i32>} : memref<8x14x16xf32, #tpu.memory_space<vmem>>, vector<1x1x16xf32>,
    %172 = vector.extract_strided_slice %6 {offsets = [0, 80], sizes = [8, 16], strides = [1, 1]} : vector<8x224xf32> to vector<8x16xf32>
    %173 = vector.extract_strided_slice %172 {offsets = [0, 0], sizes = [1, 16], strides = [1, 1]} : vector<8x16xf32> to vector<1x16xf32>
    %c0_119 = arith.constant 0 : index
    %c5_120 = arith.constant 5 : index
    %c0_121 = arith.constant 0 : index
    %174 = vector.load %arg8[%c0_119, %c5_120, %c0_121] : memref<8x14x16xf32, #tpu.memory_space<vmem>>, vector<1x1x16xf32>
    %175 = vector.shape_cast %174 : vector<1x1x16xf32> to vector<1x16xf32>
    %176 = vector.shape_cast %173 : vector<1x16xf32> to vector<1x1x16xf32>
    tpu.vector_store %arg8[%c0_119, %c5_120, %c0_121], %176 {strides = array<i32>} : memref<8x14x16xf32, #tpu.memory_space<vmem>>, vector<1x1x16xf32>,
    %177 = vector.extract_strided_slice %172 {offsets = [1, 0], sizes = [1, 16], strides = [1, 1]} : vector<8x16xf32> to vector<1x16xf32>
    %c1_122 = arith.constant 1 : index
    %c5_123 = arith.constant 5 : index
    %c0_124 = arith.constant 0 : index
    %178 = vector.load %arg8[%c1_122, %c5_123, %c0_124] : memref<8x14x16xf32, #tpu.memory_space<vmem>>, vector<1x1x16xf32>
    %179 = vector.shape_cast %178 : vector<1x1x16xf32> to vector<1x16xf32>
    %180 = vector.shape_cast %177 : vector<1x16xf32> to vector<1x1x16xf32>
    tpu.vector_store %arg8[%c1_122, %c5_123, %c0_124], %180 {strides = array<i32>} : memref<8x14x16xf32, #tpu.memory_space<vmem>>, vector<1x1x16xf32>,
    %181 = vector.extract_strided_slice %172 {offsets = [2, 0], sizes = [1, 16], strides = [1, 1]} : vector<8x16xf32> to vector<1x16xf32>
    %c2_125 = arith.constant 2 : index
    %c5_126 = arith.constant 5 : index
    %c0_127 = arith.constant 0 : index
    %182 = vector.load %arg8[%c2_125, %c5_126, %c0_127] : memref<8x14x16xf32, #tpu.memory_space<vmem>>, vector<1x1x16xf32>
    %183 = vector.shape_cast %182 : vector<1x1x16xf32> to vector<1x16xf32>
    %184 = vector.shape_cast %181 : vector<1x16xf32> to vector<1x1x16xf32>
    tpu.vector_store %arg8[%c2_125, %c5_126, %c0_127], %184 {strides = array<i32>} : memref<8x14x16xf32, #tpu.memory_space<vmem>>, vector<1x1x16xf32>,
    %185 = vector.extract_strided_slice %172 {offsets = [3, 0], sizes = [1, 16], strides = [1, 1]} : vector<8x16xf32> to vector<1x16xf32>
    %c3_128 = arith.constant 3 : index
    %c5_129 = arith.constant 5 : index
    %c0_130 = arith.constant 0 : index
    %186 = vector.load %arg8[%c3_128, %c5_129, %c0_130] : memref<8x14x16xf32, #tpu.memory_space<vmem>>, vector<1x1x16xf32>
    %187 = vector.shape_cast %186 : vector<1x1x16xf32> to vector<1x16xf32>
    %188 = vector.shape_cast %185 : vector<1x16xf32> to vector<1x1x16xf32>
    tpu.vector_store %arg8[%c3_128, %c5_129, %c0_130], %188 {strides = array<i32>} : memref<8x14x16xf32, #tpu.memory_space<vmem>>, vector<1x1x16xf32>,
    %189 = vector.extract_strided_slice %172 {offsets = [4, 0], sizes = [1, 16], strides = [1, 1]} : vector<8x16xf32> to vector<1x16xf32>
    %c4_131 = arith.constant 4 : index
    %c5_132 = arith.constant 5 : index
    %c0_133 = arith.constant 0 : index
    %190 = vector.load %arg8[%c4_131, %c5_132, %c0_133] : memref<8x14x16xf32, #tpu.memory_space<vmem>>, vector<1x1x16xf32>
    %191 = vector.shape_cast %190 : vector<1x1x16xf32> to vector<1x16xf32>
    %192 = vector.shape_cast %189 : vector<1x16xf32> to vector<1x1x16xf32>
    tpu.vector_store %arg8[%c4_131, %c5_132, %c0_133], %192 {strides = array<i32>} : memref<8x14x16xf32, #tpu.memory_space<vmem>>, vector<1x1x16xf32>,
    %193 = vector.extract_strided_slice %172 {offsets = [5, 0], sizes = [1, 16], strides = [1, 1]} : vector<8x16xf32> to vector<1x16xf32>
    %c5_134 = arith.constant 5 : index
    %c5_135 = arith.constant 5 : index
    %c0_136 = arith.constant 0 : index
    %194 = vector.load %arg8[%c5_134, %c5_135, %c0_136] : memref<8x14x16xf32, #tpu.memory_space<vmem>>, vector<1x1x16xf32>
    %195 = vector.shape_cast %194 : vector<1x1x16xf32> to vector<1x16xf32>
    %196 = vector.shape_cast %193 : vector<1x16xf32> to vector<1x1x16xf32>
    tpu.vector_store %arg8[%c5_134, %c5_135, %c0_136], %196 {strides = array<i32>} : memref<8x14x16xf32, #tpu.memory_space<vmem>>, vector<1x1x16xf32>,
    %197 = vector.extract_strided_slice %172 {offsets = [6, 0], sizes = [1, 16], strides = [1, 1]} : vector<8x16xf32> to vector<1x16xf32>
    %c6_137 = arith.constant 6 : index
    %c5_138 = arith.constant 5 : index
    %c0_139 = arith.constant 0 : index
    %198 = vector.load %arg8[%c6_137, %c5_138, %c0_139] : memref<8x14x16xf32, #tpu.memory_space<vmem>>, vector<1x1x16xf32>
    %199 = vector.shape_cast %198 : vector<1x1x16xf32> to vector<1x16xf32>
    %200 = vector.shape_cast %197 : vector<1x16xf32> to vector<1x1x16xf32>
    tpu.vector_store %arg8[%c6_137, %c5_138, %c0_139], %200 {strides = array<i32>} : memref<8x14x16xf32, #tpu.memory_space<vmem>>, vector<1x1x16xf32>,
    %201 = vector.extract_strided_slice %172 {offsets = [7, 0], sizes = [1, 16], strides = [1, 1]} : vector<8x16xf32> to vector<1x16xf32>
    %c7_140 = arith.constant 7 : index
    %c5_141 = arith.constant 5 : index
    %c0_142 = arith.constant 0 : index
    %202 = vector.load %arg8[%c7_140, %c5_141, %c0_142] : memref<8x14x16xf32, #tpu.memory_space<vmem>>, vector<1x1x16xf32>
    %203 = vector.shape_cast %202 : vector<1x1x16xf32> to vector<1x16xf32>
    %204 = vector.shape_cast %201 : vector<1x16xf32> to vector<1x1x16xf32>
    tpu.vector_store %arg8[%c7_140, %c5_141, %c0_142], %204 {strides = array<i32>} : memref<8x14x16xf32, #tpu.memory_space<vmem>>, vector<1x1x16xf32>,
    %205 = vector.extract_strided_slice %6 {offsets = [0, 96], sizes = [8, 16], strides = [1, 1]} : vector<8x224xf32> to vector<8x16xf32>
    %206 = vector.extract_strided_slice %205 {offsets = [0, 0], sizes = [1, 16], strides = [1, 1]} : vector<8x16xf32> to vector<1x16xf32>
    %c0_143 = arith.constant 0 : index
    %c6_144 = arith.constant 6 : index
    %c0_145 = arith.constant 0 : index
    %207 = vector.load %arg8[%c0_143, %c6_144, %c0_145] : memref<8x14x16xf32, #tpu.memory_space<vmem>>, vector<1x1x16xf32>
    %208 = vector.shape_cast %207 : vector<1x1x16xf32> to vector<1x16xf32>
    %209 = vector.shape_cast %206 : vector<1x16xf32> to vector<1x1x16xf32>
    tpu.vector_store %arg8[%c0_143, %c6_144, %c0_145], %209 {strides = array<i32>} : memref<8x14x16xf32, #tpu.memory_space<vmem>>, vector<1x1x16xf32>,
    %210 = vector.extract_strided_slice %205 {offsets = [1, 0], sizes = [1, 16], strides = [1, 1]} : vector<8x16xf32> to vector<1x16xf32>
    %c1_146 = arith.constant 1 : index
    %c6_147 = arith.constant 6 : index
    %c0_148 = arith.constant 0 : index
    %211 = vector.load %arg8[%c1_146, %c6_147, %c0_148] : memref<8x14x16xf32, #tpu.memory_space<vmem>>, vector<1x1x16xf32>
    %212 = vector.shape_cast %211 : vector<1x1x16xf32> to vector<1x16xf32>
    %213 = vector.shape_cast %210 : vector<1x16xf32> to vector<1x1x16xf32>
    tpu.vector_store %arg8[%c1_146, %c6_147, %c0_148], %213 {strides = array<i32>} : memref<8x14x16xf32, #tpu.memory_space<vmem>>, vector<1x1x16xf32>,
    %214 = vector.extract_strided_slice %205 {offsets = [2, 0], sizes = [1, 16], strides = [1, 1]} : vector<8x16xf32> to vector<1x16xf32>
    %c2_149 = arith.constant 2 : index
    %c6_150 = arith.constant 6 : index
    %c0_151 = arith.constant 0 : index
    %215 = vector.load %arg8[%c2_149, %c6_150, %c0_151] : memref<8x14x16xf32, #tpu.memory_space<vmem>>, vector<1x1x16xf32>
    %216 = vector.shape_cast %215 : vector<1x1x16xf32> to vector<1x16xf32>
    %217 = vector.shape_cast %214 : vector<1x16xf32> to vector<1x1x16xf32>
    tpu.vector_store %arg8[%c2_149, %c6_150, %c0_151], %217 {strides = array<i32>} : memref<8x14x16xf32, #tpu.memory_space<vmem>>, vector<1x1x16xf32>,
    %218 = vector.extract_strided_slice %205 {offsets = [3, 0], sizes = [1, 16], strides = [1, 1]} : vector<8x16xf32> to vector<1x16xf32>
    %c3_152 = arith.constant 3 : index
    %c6_153 = arith.constant 6 : index
    %c0_154 = arith.constant 0 : index
    %219 = vector.load %arg8[%c3_152, %c6_153, %c0_154] : memref<8x14x16xf32, #tpu.memory_space<vmem>>, vector<1x1x16xf32>
    %220 = vector.shape_cast %219 : vector<1x1x16xf32> to vector<1x16xf32>
    %221 = vector.shape_cast %218 : vector<1x16xf32> to vector<1x1x16xf32>
    tpu.vector_store %arg8[%c3_152, %c6_153, %c0_154], %221 {strides = array<i32>} : memref<8x14x16xf32, #tpu.memory_space<vmem>>, vector<1x1x16xf32>,
    %222 = vector.extract_strided_slice %205 {offsets = [4, 0], sizes = [1, 16], strides = [1, 1]} : vector<8x16xf32> to vector<1x16xf32>
    %c4_155 = arith.constant 4 : index
    %c6_156 = arith.constant 6 : index
    %c0_157 = arith.constant 0 : index
    %223 = vector.load %arg8[%c4_155, %c6_156, %c0_157] : memref<8x14x16xf32, #tpu.memory_space<vmem>>, vector<1x1x16xf32>
    %224 = vector.shape_cast %223 : vector<1x1x16xf32> to vector<1x16xf32>
    %225 = vector.shape_cast %222 : vector<1x16xf32> to vector<1x1x16xf32>
    tpu.vector_store %arg8[%c4_155, %c6_156, %c0_157], %225 {strides = array<i32>} : memref<8x14x16xf32, #tpu.memory_space<vmem>>, vector<1x1x16xf32>,
    %226 = vector.extract_strided_slice %205 {offsets = [5, 0], sizes = [1, 16], strides = [1, 1]} : vector<8x16xf32> to vector<1x16xf32>
    %c5_158 = arith.constant 5 : index
    %c6_159 = arith.constant 6 : index
    %c0_160 = arith.constant 0 : index
    %227 = vector.load %arg8[%c5_158, %c6_159, %c0_160] : memref<8x14x16xf32, #tpu.memory_space<vmem>>, vector<1x1x16xf32>
    %228 = vector.shape_cast %227 : vector<1x1x16xf32> to vector<1x16xf32>
    %229 = vector.shape_cast %226 : vector<1x16xf32> to vector<1x1x16xf32>
    tpu.vector_store %arg8[%c5_158, %c6_159, %c0_160], %229 {strides = array<i32>} : memref<8x14x16xf32, #tpu.memory_space<vmem>>, vector<1x1x16xf32>,
    %230 = vector.extract_strided_slice %205 {offsets = [6, 0], sizes = [1, 16], strides = [1, 1]} : vector<8x16xf32> to vector<1x16xf32>
    %c6_161 = arith.constant 6 : index
    %c6_162 = arith.constant 6 : index
    %c0_163 = arith.constant 0 : index
    %231 = vector.load %arg8[%c6_161, %c6_162, %c0_163] : memref<8x14x16xf32, #tpu.memory_space<vmem>>, vector<1x1x16xf32>
    %232 = vector.shape_cast %231 : vector<1x1x16xf32> to vector<1x16xf32>
    %233 = vector.shape_cast %230 : vector<1x16xf32> to vector<1x1x16xf32>
    tpu.vector_store %arg8[%c6_161, %c6_162, %c0_163], %233 {strides = array<i32>} : memref<8x14x16xf32, #tpu.memory_space<vmem>>, vector<1x1x16xf32>,
    %234 = vector.extract_strided_slice %205 {offsets = [7, 0], sizes = [1, 16], strides = [1, 1]} : vector<8x16xf32> to vector<1x16xf32>
    %c7_164 = arith.constant 7 : index
    %c6_165 = arith.constant 6 : index
    %c0_166 = arith.constant 0 : index
    %235 = vector.load %arg8[%c7_164, %c6_165, %c0_166] : memref<8x14x16xf32, #tpu.memory_space<vmem>>, vector<1x1x16xf32>
    %236 = vector.shape_cast %235 : vector<1x1x16xf32> to vector<1x16xf32>
    %237 = vector.shape_cast %234 : vector<1x16xf32> to vector<1x1x16xf32>
    tpu.vector_store %arg8[%c7_164, %c6_165, %c0_166], %237 {strides = array<i32>} : memref<8x14x16xf32, #tpu.memory_space<vmem>>, vector<1x1x16xf32>,
    %238 = vector.extract_strided_slice %6 {offsets = [0, 112], sizes = [8, 16], strides = [1, 1]} : vector<8x224xf32> to vector<8x16xf32>
    %239 = vector.extract_strided_slice %238 {offsets = [0, 0], sizes = [1, 16], strides = [1, 1]} : vector<8x16xf32> to vector<1x16xf32>
    %c0_167 = arith.constant 0 : index
    %c7_168 = arith.constant 7 : index
    %c0_169 = arith.constant 0 : index
    %240 = vector.load %arg8[%c0_167, %c7_168, %c0_169] : memref<8x14x16xf32, #tpu.memory_space<vmem>>, vector<1x1x16xf32>
    %241 = vector.shape_cast %240 : vector<1x1x16xf32> to vector<1x16xf32>
    %242 = vector.shape_cast %239 : vector<1x16xf32> to vector<1x1x16xf32>
    tpu.vector_store %arg8[%c0_167, %c7_168, %c0_169], %242 {strides = array<i32>} : memref<8x14x16xf32, #tpu.memory_space<vmem>>, vector<1x1x16xf32>,
    %243 = vector.extract_strided_slice %238 {offsets = [1, 0], sizes = [1, 16], strides = [1, 1]} : vector<8x16xf32> to vector<1x16xf32>
    %c1_170 = arith.constant 1 : index
    %c7_171 = arith.constant 7 : index
    %c0_172 = arith.constant 0 : index
    %244 = vector.load %arg8[%c1_170, %c7_171, %c0_172] : memref<8x14x16xf32, #tpu.memory_space<vmem>>, vector<1x1x16xf32>
    %245 = vector.shape_cast %244 : vector<1x1x16xf32> to vector<1x16xf32>
    %246 = vector.shape_cast %243 : vector<1x16xf32> to vector<1x1x16xf32>
    tpu.vector_store %arg8[%c1_170, %c7_171, %c0_172], %246 {strides = array<i32>} : memref<8x14x16xf32, #tpu.memory_space<vmem>>, vector<1x1x16xf32>,
    %247 = vector.extract_strided_slice %238 {offsets = [2, 0], sizes = [1, 16], strides = [1, 1]} : vector<8x16xf32> to vector<1x16xf32>
    %c2_173 = arith.constant 2 : index
    %c7_174 = arith.constant 7 : index
    %c0_175 = arith.constant 0 : index
    %248 = vector.load %arg8[%c2_173, %c7_174, %c0_175] : memref<8x14x16xf32, #tpu.memory_space<vmem>>, vector<1x1x16xf32>
    %249 = vector.shape_cast %248 : vector<1x1x16xf32> to vector<1x16xf32>
    %250 = vector.shape_cast %247 : vector<1x16xf32> to vector<1x1x16xf32>
    tpu.vector_store %arg8[%c2_173, %c7_174, %c0_175], %250 {strides = array<i32>} : memref<8x14x16xf32, #tpu.memory_space<vmem>>, vector<1x1x16xf32>,
    %251 = vector.extract_strided_slice %238 {offsets = [3, 0], sizes = [1, 16], strides = [1, 1]} : vector<8x16xf32> to vector<1x16xf32>
    %c3_176 = arith.constant 3 : index
    %c7_177 = arith.constant 7 : index
    %c0_178 = arith.constant 0 : index
    %252 = vector.load %arg8[%c3_176, %c7_177, %c0_178] : memref<8x14x16xf32, #tpu.memory_space<vmem>>, vector<1x1x16xf32>
    %253 = vector.shape_cast %252 : vector<1x1x16xf32> to vector<1x16xf32>
    %254 = vector.shape_cast %251 : vector<1x16xf32> to vector<1x1x16xf32>
    tpu.vector_store %arg8[%c3_176, %c7_177, %c0_178], %254 {strides = array<i32>} : memref<8x14x16xf32, #tpu.memory_space<vmem>>, vector<1x1x16xf32>,
    %255 = vector.extract_strided_slice %238 {offsets = [4, 0], sizes = [1, 16], strides = [1, 1]} : vector<8x16xf32> to vector<1x16xf32>
    %c4_179 = arith.constant 4 : index
    %c7_180 = arith.constant 7 : index
    %c0_181 = arith.constant 0 : index
    %256 = vector.load %arg8[%c4_179, %c7_180, %c0_181] : memref<8x14x16xf32, #tpu.memory_space<vmem>>, vector<1x1x16xf32>
    %257 = vector.shape_cast %256 : vector<1x1x16xf32> to vector<1x16xf32>
    %258 = vector.shape_cast %255 : vector<1x16xf32> to vector<1x1x16xf32>
    tpu.vector_store %arg8[%c4_179, %c7_180, %c0_181], %258 {strides = array<i32>} : memref<8x14x16xf32, #tpu.memory_space<vmem>>, vector<1x1x16xf32>,
    %259 = vector.extract_strided_slice %238 {offsets = [5, 0], sizes = [1, 16], strides = [1, 1]} : vector<8x16xf32> to vector<1x16xf32>
    %c5_182 = arith.constant 5 : index
    %c7_183 = arith.constant 7 : index
    %c0_184 = arith.constant 0 : index
    %260 = vector.load %arg8[%c5_182, %c7_183, %c0_184] : memref<8x14x16xf32, #tpu.memory_space<vmem>>, vector<1x1x16xf32>
    %261 = vector.shape_cast %260 : vector<1x1x16xf32> to vector<1x16xf32>
    %262 = vector.shape_cast %259 : vector<1x16xf32> to vector<1x1x16xf32>
    tpu.vector_store %arg8[%c5_182, %c7_183, %c0_184], %262 {strides = array<i32>} : memref<8x14x16xf32, #tpu.memory_space<vmem>>, vector<1x1x16xf32>,
    %263 = vector.extract_strided_slice %238 {offsets = [6, 0], sizes = [1, 16], strides = [1, 1]} : vector<8x16xf32> to vector<1x16xf32>
    %c6_185 = arith.constant 6 : index
    %c7_186 = arith.constant 7 : index
    %c0_187 = arith.constant 0 : index
    %264 = vector.load %arg8[%c6_185, %c7_186, %c0_187] : memref<8x14x16xf32, #tpu.memory_space<vmem>>, vector<1x1x16xf32>
    %265 = vector.shape_cast %264 : vector<1x1x16xf32> to vector<1x16xf32>
    %266 = vector.shape_cast %263 : vector<1x16xf32> to vector<1x1x16xf32>
    tpu.vector_store %arg8[%c6_185, %c7_186, %c0_187], %266 {strides = array<i32>} : memref<8x14x16xf32, #tpu.memory_space<vmem>>, vector<1x1x16xf32>,
    %267 = vector.extract_strided_slice %238 {offsets = [7, 0], sizes = [1, 16], strides = [1, 1]} : vector<8x16xf32> to vector<1x16xf32>
    %c7_188 = arith.constant 7 : index
    %c7_189 = arith.constant 7 : index
    %c0_190 = arith.constant 0 : index
    %268 = vector.load %arg8[%c7_188, %c7_189, %c0_190] : memref<8x14x16xf32, #tpu.memory_space<vmem>>, vector<1x1x16xf32>
    %269 = vector.shape_cast %268 : vector<1x1x16xf32> to vector<1x16xf32>
    %270 = vector.shape_cast %267 : vector<1x16xf32> to vector<1x1x16xf32>
    tpu.vector_store %arg8[%c7_188, %c7_189, %c0_190], %270 {strides = array<i32>} : memref<8x14x16xf32, #tpu.memory_space<vmem>>, vector<1x1x16xf32>,
    %271 = vector.extract_strided_slice %6 {offsets = [0, 128], sizes = [8, 16], strides = [1, 1]} : vector<8x224xf32> to vector<8x16xf32>
    %272 = vector.extract_strided_slice %271 {offsets = [0, 0], sizes = [1, 16], strides = [1, 1]} : vector<8x16xf32> to vector<1x16xf32>
    %c0_191 = arith.constant 0 : index
    %c8 = arith.constant 8 : index
    %c0_192 = arith.constant 0 : index
    %273 = vector.load %arg8[%c0_191, %c8, %c0_192] : memref<8x14x16xf32, #tpu.memory_space<vmem>>, vector<1x1x16xf32>
    %274 = vector.shape_cast %273 : vector<1x1x16xf32> to vector<1x16xf32>
    %275 = vector.shape_cast %272 : vector<1x16xf32> to vector<1x1x16xf32>
    tpu.vector_store %arg8[%c0_191, %c8, %c0_192], %275 {strides = array<i32>} : memref<8x14x16xf32, #tpu.memory_space<vmem>>, vector<1x1x16xf32>,
    %276 = vector.extract_strided_slice %271 {offsets = [1, 0], sizes = [1, 16], strides = [1, 1]} : vector<8x16xf32> to vector<1x16xf32>
    %c1_193 = arith.constant 1 : index
    %c8_194 = arith.constant 8 : index
    %c0_195 = arith.constant 0 : index
    %277 = vector.load %arg8[%c1_193, %c8_194, %c0_195] : memref<8x14x16xf32, #tpu.memory_space<vmem>>, vector<1x1x16xf32>
    %278 = vector.shape_cast %277 : vector<1x1x16xf32> to vector<1x16xf32>
    %279 = vector.shape_cast %276 : vector<1x16xf32> to vector<1x1x16xf32>
    tpu.vector_store %arg8[%c1_193, %c8_194, %c0_195], %279 {strides = array<i32>} : memref<8x14x16xf32, #tpu.memory_space<vmem>>, vector<1x1x16xf32>,
    %280 = vector.extract_strided_slice %271 {offsets = [2, 0], sizes = [1, 16], strides = [1, 1]} : vector<8x16xf32> to vector<1x16xf32>
    %c2_196 = arith.constant 2 : index
    %c8_197 = arith.constant 8 : index
    %c0_198 = arith.constant 0 : index
    %281 = vector.load %arg8[%c2_196, %c8_197, %c0_198] : memref<8x14x16xf32, #tpu.memory_space<vmem>>, vector<1x1x16xf32>
    %282 = vector.shape_cast %281 : vector<1x1x16xf32> to vector<1x16xf32>
    %283 = vector.shape_cast %280 : vector<1x16xf32> to vector<1x1x16xf32>
    tpu.vector_store %arg8[%c2_196, %c8_197, %c0_198], %283 {strides = array<i32>} : memref<8x14x16xf32, #tpu.memory_space<vmem>>, vector<1x1x16xf32>,
    %284 = vector.extract_strided_slice %271 {offsets = [3, 0], sizes = [1, 16], strides = [1, 1]} : vector<8x16xf32> to vector<1x16xf32>
    %c3_199 = arith.constant 3 : index
    %c8_200 = arith.constant 8 : index
    %c0_201 = arith.constant 0 : index
    %285 = vector.load %arg8[%c3_199, %c8_200, %c0_201] : memref<8x14x16xf32, #tpu.memory_space<vmem>>, vector<1x1x16xf32>
    %286 = vector.shape_cast %285 : vector<1x1x16xf32> to vector<1x16xf32>
    %287 = vector.shape_cast %284 : vector<1x16xf32> to vector<1x1x16xf32>
    tpu.vector_store %arg8[%c3_199, %c8_200, %c0_201], %287 {strides = array<i32>} : memref<8x14x16xf32, #tpu.memory_space<vmem>>, vector<1x1x16xf32>,
    %288 = vector.extract_strided_slice %271 {offsets = [4, 0], sizes = [1, 16], strides = [1, 1]} : vector<8x16xf32> to vector<1x16xf32>
    %c4_202 = arith.constant 4 : index
    %c8_203 = arith.constant 8 : index
    %c0_204 = arith.constant 0 : index
    %289 = vector.load %arg8[%c4_202, %c8_203, %c0_204] : memref<8x14x16xf32, #tpu.memory_space<vmem>>, vector<1x1x16xf32>
    %290 = vector.shape_cast %289 : vector<1x1x16xf32> to vector<1x16xf32>
    %291 = vector.shape_cast %288 : vector<1x16xf32> to vector<1x1x16xf32>
    tpu.vector_store %arg8[%c4_202, %c8_203, %c0_204], %291 {strides = array<i32>} : memref<8x14x16xf32, #tpu.memory_space<vmem>>, vector<1x1x16xf32>,
    %292 = vector.extract_strided_slice %271 {offsets = [5, 0], sizes = [1, 16], strides = [1, 1]} : vector<8x16xf32> to vector<1x16xf32>
    %c5_205 = arith.constant 5 : index
    %c8_206 = arith.constant 8 : index
    %c0_207 = arith.constant 0 : index
    %293 = vector.load %arg8[%c5_205, %c8_206, %c0_207] : memref<8x14x16xf32, #tpu.memory_space<vmem>>, vector<1x1x16xf32>
    %294 = vector.shape_cast %293 : vector<1x1x16xf32> to vector<1x16xf32>
    %295 = vector.shape_cast %292 : vector<1x16xf32> to vector<1x1x16xf32>
    tpu.vector_store %arg8[%c5_205, %c8_206, %c0_207], %295 {strides = array<i32>} : memref<8x14x16xf32, #tpu.memory_space<vmem>>, vector<1x1x16xf32>,
    %296 = vector.extract_strided_slice %271 {offsets = [6, 0], sizes = [1, 16], strides = [1, 1]} : vector<8x16xf32> to vector<1x16xf32>
    %c6_208 = arith.constant 6 : index
    %c8_209 = arith.constant 8 : index
    %c0_210 = arith.constant 0 : index
    %297 = vector.load %arg8[%c6_208, %c8_209, %c0_210] : memref<8x14x16xf32, #tpu.memory_space<vmem>>, vector<1x1x16xf32>
    %298 = vector.shape_cast %297 : vector<1x1x16xf32> to vector<1x16xf32>
    %299 = vector.shape_cast %296 : vector<1x16xf32> to vector<1x1x16xf32>
    tpu.vector_store %arg8[%c6_208, %c8_209, %c0_210], %299 {strides = array<i32>} : memref<8x14x16xf32, #tpu.memory_space<vmem>>, vector<1x1x16xf32>,
    %300 = vector.extract_strided_slice %271 {offsets = [7, 0], sizes = [1, 16], strides = [1, 1]} : vector<8x16xf32> to vector<1x16xf32>
    %c7_211 = arith.constant 7 : index
    %c8_212 = arith.constant 8 : index
    %c0_213 = arith.constant 0 : index
    %301 = vector.load %arg8[%c7_211, %c8_212, %c0_213] : memref<8x14x16xf32, #tpu.memory_space<vmem>>, vector<1x1x16xf32>
    %302 = vector.shape_cast %301 : vector<1x1x16xf32> to vector<1x16xf32>
    %303 = vector.shape_cast %300 : vector<1x16xf32> to vector<1x1x16xf32>
    tpu.vector_store %arg8[%c7_211, %c8_212, %c0_213], %303 {strides = array<i32>} : memref<8x14x16xf32, #tpu.memory_space<vmem>>, vector<1x1x16xf32>,
    %304 = vector.extract_strided_slice %6 {offsets = [0, 144], sizes = [8, 16], strides = [1, 1]} : vector<8x224xf32> to vector<8x16xf32>
    %305 = vector.extract_strided_slice %304 {offsets = [0, 0], sizes = [1, 16], strides = [1, 1]} : vector<8x16xf32> to vector<1x16xf32>
    %c0_214 = arith.constant 0 : index
    %c9 = arith.constant 9 : index
    %c0_215 = arith.constant 0 : index
    %306 = vector.load %arg8[%c0_214, %c9, %c0_215] : memref<8x14x16xf32, #tpu.memory_space<vmem>>, vector<1x1x16xf32>
    %307 = vector.shape_cast %306 : vector<1x1x16xf32> to vector<1x16xf32>
    %308 = vector.shape_cast %305 : vector<1x16xf32> to vector<1x1x16xf32>
    tpu.vector_store %arg8[%c0_214, %c9, %c0_215], %308 {strides = array<i32>} : memref<8x14x16xf32, #tpu.memory_space<vmem>>, vector<1x1x16xf32>,
    %309 = vector.extract_strided_slice %304 {offsets = [1, 0], sizes = [1, 16], strides = [1, 1]} : vector<8x16xf32> to vector<1x16xf32>
    %c1_216 = arith.constant 1 : index
    %c9_217 = arith.constant 9 : index
    %c0_218 = arith.constant 0 : index
    %310 = vector.load %arg8[%c1_216, %c9_217, %c0_218] : memref<8x14x16xf32, #tpu.memory_space<vmem>>, vector<1x1x16xf32>
    %311 = vector.shape_cast %310 : vector<1x1x16xf32> to vector<1x16xf32>
    %312 = vector.shape_cast %309 : vector<1x16xf32> to vector<1x1x16xf32>
    tpu.vector_store %arg8[%c1_216, %c9_217, %c0_218], %312 {strides = array<i32>} : memref<8x14x16xf32, #tpu.memory_space<vmem>>, vector<1x1x16xf32>,
    %313 = vector.extract_strided_slice %304 {offsets = [2, 0], sizes = [1, 16], strides = [1, 1]} : vector<8x16xf32> to vector<1x16xf32>
    %c2_219 = arith.constant 2 : index
    %c9_220 = arith.constant 9 : index
    %c0_221 = arith.constant 0 : index
    %314 = vector.load %arg8[%c2_219, %c9_220, %c0_221] : memref<8x14x16xf32, #tpu.memory_space<vmem>>, vector<1x1x16xf32>
    %315 = vector.shape_cast %314 : vector<1x1x16xf32> to vector<1x16xf32>
    %316 = vector.shape_cast %313 : vector<1x16xf32> to vector<1x1x16xf32>
    tpu.vector_store %arg8[%c2_219, %c9_220, %c0_221], %316 {strides = array<i32>} : memref<8x14x16xf32, #tpu.memory_space<vmem>>, vector<1x1x16xf32>,
    %317 = vector.extract_strided_slice %304 {offsets = [3, 0], sizes = [1, 16], strides = [1, 1]} : vector<8x16xf32> to vector<1x16xf32>
    %c3_222 = arith.constant 3 : index
    %c9_223 = arith.constant 9 : index
    %c0_224 = arith.constant 0 : index
    %318 = vector.load %arg8[%c3_222, %c9_223, %c0_224] : memref<8x14x16xf32, #tpu.memory_space<vmem>>, vector<1x1x16xf32>
    %319 = vector.shape_cast %318 : vector<1x1x16xf32> to vector<1x16xf32>
    %320 = vector.shape_cast %317 : vector<1x16xf32> to vector<1x1x16xf32>
    tpu.vector_store %arg8[%c3_222, %c9_223, %c0_224], %320 {strides = array<i32>} : memref<8x14x16xf32, #tpu.memory_space<vmem>>, vector<1x1x16xf32>,
    %321 = vector.extract_strided_slice %304 {offsets = [4, 0], sizes = [1, 16], strides = [1, 1]} : vector<8x16xf32> to vector<1x16xf32>
    %c4_225 = arith.constant 4 : index
    %c9_226 = arith.constant 9 : index
    %c0_227 = arith.constant 0 : index
    %322 = vector.load %arg8[%c4_225, %c9_226, %c0_227] : memref<8x14x16xf32, #tpu.memory_space<vmem>>, vector<1x1x16xf32>
    %323 = vector.shape_cast %322 : vector<1x1x16xf32> to vector<1x16xf32>
    %324 = vector.shape_cast %321 : vector<1x16xf32> to vector<1x1x16xf32>
    tpu.vector_store %arg8[%c4_225, %c9_226, %c0_227], %324 {strides = array<i32>} : memref<8x14x16xf32, #tpu.memory_space<vmem>>, vector<1x1x16xf32>,
    %325 = vector.extract_strided_slice %304 {offsets = [5, 0], sizes = [1, 16], strides = [1, 1]} : vector<8x16xf32> to vector<1x16xf32>
    %c5_228 = arith.constant 5 : index
    %c9_229 = arith.constant 9 : index
    %c0_230 = arith.constant 0 : index
    %326 = vector.load %arg8[%c5_228, %c9_229, %c0_230] : memref<8x14x16xf32, #tpu.memory_space<vmem>>, vector<1x1x16xf32>
    %327 = vector.shape_cast %326 : vector<1x1x16xf32> to vector<1x16xf32>
    %328 = vector.shape_cast %325 : vector<1x16xf32> to vector<1x1x16xf32>
    tpu.vector_store %arg8[%c5_228, %c9_229, %c0_230], %328 {strides = array<i32>} : memref<8x14x16xf32, #tpu.memory_space<vmem>>, vector<1x1x16xf32>,
    %329 = vector.extract_strided_slice %304 {offsets = [6, 0], sizes = [1, 16], strides = [1, 1]} : vector<8x16xf32> to vector<1x16xf32>
    %c6_231 = arith.constant 6 : index
    %c9_232 = arith.constant 9 : index
    %c0_233 = arith.constant 0 : index
    %330 = vector.load %arg8[%c6_231, %c9_232, %c0_233] : memref<8x14x16xf32, #tpu.memory_space<vmem>>, vector<1x1x16xf32>
    %331 = vector.shape_cast %330 : vector<1x1x16xf32> to vector<1x16xf32>
    %332 = vector.shape_cast %329 : vector<1x16xf32> to vector<1x1x16xf32>
    tpu.vector_store %arg8[%c6_231, %c9_232, %c0_233], %332 {strides = array<i32>} : memref<8x14x16xf32, #tpu.memory_space<vmem>>, vector<1x1x16xf32>,
    %333 = vector.extract_strided_slice %304 {offsets = [7, 0], sizes = [1, 16], strides = [1, 1]} : vector<8x16xf32> to vector<1x16xf32>
    %c7_234 = arith.constant 7 : index
    %c9_235 = arith.constant 9 : index
    %c0_236 = arith.constant 0 : index
    %334 = vector.load %arg8[%c7_234, %c9_235, %c0_236] : memref<8x14x16xf32, #tpu.memory_space<vmem>>, vector<1x1x16xf32>
    %335 = vector.shape_cast %334 : vector<1x1x16xf32> to vector<1x16xf32>
    %336 = vector.shape_cast %333 : vector<1x16xf32> to vector<1x1x16xf32>
    tpu.vector_store %arg8[%c7_234, %c9_235, %c0_236], %336 {strides = array<i32>} : memref<8x14x16xf32, #tpu.memory_space<vmem>>, vector<1x1x16xf32>,
    %337 = vector.extract_strided_slice %6 {offsets = [0, 160], sizes = [8, 16], strides = [1, 1]} : vector<8x224xf32> to vector<8x16xf32>
    %338 = vector.extract_strided_slice %337 {offsets = [0, 0], sizes = [1, 16], strides = [1, 1]} : vector<8x16xf32> to vector<1x16xf32>
    %c0_237 = arith.constant 0 : index
    %c10 = arith.constant 10 : index
    %c0_238 = arith.constant 0 : index
    %339 = vector.load %arg8[%c0_237, %c10, %c0_238] : memref<8x14x16xf32, #tpu.memory_space<vmem>>, vector<1x1x16xf32>
    %340 = vector.shape_cast %339 : vector<1x1x16xf32> to vector<1x16xf32>
    %341 = vector.shape_cast %338 : vector<1x16xf32> to vector<1x1x16xf32>
    tpu.vector_store %arg8[%c0_237, %c10, %c0_238], %341 {strides = array<i32>} : memref<8x14x16xf32, #tpu.memory_space<vmem>>, vector<1x1x16xf32>,
    %342 = vector.extract_strided_slice %337 {offsets = [1, 0], sizes = [1, 16], strides = [1, 1]} : vector<8x16xf32> to vector<1x16xf32>
    %c1_239 = arith.constant 1 : index
    %c10_240 = arith.constant 10 : index
    %c0_241 = arith.constant 0 : index
    %343 = vector.load %arg8[%c1_239, %c10_240, %c0_241] : memref<8x14x16xf32, #tpu.memory_space<vmem>>, vector<1x1x16xf32>
    %344 = vector.shape_cast %343 : vector<1x1x16xf32> to vector<1x16xf32>
    %345 = vector.shape_cast %342 : vector<1x16xf32> to vector<1x1x16xf32>
    tpu.vector_store %arg8[%c1_239, %c10_240, %c0_241], %345 {strides = array<i32>} : memref<8x14x16xf32, #tpu.memory_space<vmem>>, vector<1x1x16xf32>,
    %346 = vector.extract_strided_slice %337 {offsets = [2, 0], sizes = [1, 16], strides = [1, 1]} : vector<8x16xf32> to vector<1x16xf32>
    %c2_242 = arith.constant 2 : index
    %c10_243 = arith.constant 10 : index
    %c0_244 = arith.constant 0 : index
    %347 = vector.load %arg8[%c2_242, %c10_243, %c0_244] : memref<8x14x16xf32, #tpu.memory_space<vmem>>, vector<1x1x16xf32>
    %348 = vector.shape_cast %347 : vector<1x1x16xf32> to vector<1x16xf32>
    %349 = vector.shape_cast %346 : vector<1x16xf32> to vector<1x1x16xf32>
    tpu.vector_store %arg8[%c2_242, %c10_243, %c0_244], %349 {strides = array<i32>} : memref<8x14x16xf32, #tpu.memory_space<vmem>>, vector<1x1x16xf32>,
    %350 = vector.extract_strided_slice %337 {offsets = [3, 0], sizes = [1, 16], strides = [1, 1]} : vector<8x16xf32> to vector<1x16xf32>
    %c3_245 = arith.constant 3 : index
    %c10_246 = arith.constant 10 : index
    %c0_247 = arith.constant 0 : index
    %351 = vector.load %arg8[%c3_245, %c10_246, %c0_247] : memref<8x14x16xf32, #tpu.memory_space<vmem>>, vector<1x1x16xf32>
    %352 = vector.shape_cast %351 : vector<1x1x16xf32> to vector<1x16xf32>
    %353 = vector.shape_cast %350 : vector<1x16xf32> to vector<1x1x16xf32>
    tpu.vector_store %arg8[%c3_245, %c10_246, %c0_247], %353 {strides = array<i32>} : memref<8x14x16xf32, #tpu.memory_space<vmem>>, vector<1x1x16xf32>,
    %354 = vector.extract_strided_slice %337 {offsets = [4, 0], sizes = [1, 16], strides = [1, 1]} : vector<8x16xf32> to vector<1x16xf32>
    %c4_248 = arith.constant 4 : index
    %c10_249 = arith.constant 10 : index
    %c0_250 = arith.constant 0 : index
    %355 = vector.load %arg8[%c4_248, %c10_249, %c0_250] : memref<8x14x16xf32, #tpu.memory_space<vmem>>, vector<1x1x16xf32>
    %356 = vector.shape_cast %355 : vector<1x1x16xf32> to vector<1x16xf32>
    %357 = vector.shape_cast %354 : vector<1x16xf32> to vector<1x1x16xf32>
    tpu.vector_store %arg8[%c4_248, %c10_249, %c0_250], %357 {strides = array<i32>} : memref<8x14x16xf32, #tpu.memory_space<vmem>>, vector<1x1x16xf32>,
    %358 = vector.extract_strided_slice %337 {offsets = [5, 0], sizes = [1, 16], strides = [1, 1]} : vector<8x16xf32> to vector<1x16xf32>
    %c5_251 = arith.constant 5 : index
    %c10_252 = arith.constant 10 : index
    %c0_253 = arith.constant 0 : index
    %359 = vector.load %arg8[%c5_251, %c10_252, %c0_253] : memref<8x14x16xf32, #tpu.memory_space<vmem>>, vector<1x1x16xf32>
    %360 = vector.shape_cast %359 : vector<1x1x16xf32> to vector<1x16xf32>
    %361 = vector.shape_cast %358 : vector<1x16xf32> to vector<1x1x16xf32>
    tpu.vector_store %arg8[%c5_251, %c10_252, %c0_253], %361 {strides = array<i32>} : memref<8x14x16xf32, #tpu.memory_space<vmem>>, vector<1x1x16xf32>,
    %362 = vector.extract_strided_slice %337 {offsets = [6, 0], sizes = [1, 16], strides = [1, 1]} : vector<8x16xf32> to vector<1x16xf32>
    %c6_254 = arith.constant 6 : index
    %c10_255 = arith.constant 10 : index
    %c0_256 = arith.constant 0 : index
    %363 = vector.load %arg8[%c6_254, %c10_255, %c0_256] : memref<8x14x16xf32, #tpu.memory_space<vmem>>, vector<1x1x16xf32>
    %364 = vector.shape_cast %363 : vector<1x1x16xf32> to vector<1x16xf32>
    %365 = vector.shape_cast %362 : vector<1x16xf32> to vector<1x1x16xf32>
    tpu.vector_store %arg8[%c6_254, %c10_255, %c0_256], %365 {strides = array<i32>} : memref<8x14x16xf32, #tpu.memory_space<vmem>>, vector<1x1x16xf32>,
    %366 = vector.extract_strided_slice %337 {offsets = [7, 0], sizes = [1, 16], strides = [1, 1]} : vector<8x16xf32> to vector<1x16xf32>
    %c7_257 = arith.constant 7 : index
    %c10_258 = arith.constant 10 : index
    %c0_259 = arith.constant 0 : index
    %367 = vector.load %arg8[%c7_257, %c10_258, %c0_259] : memref<8x14x16xf32, #tpu.memory_space<vmem>>, vector<1x1x16xf32>
    %368 = vector.shape_cast %367 : vector<1x1x16xf32> to vector<1x16xf32>
    %369 = vector.shape_cast %366 : vector<1x16xf32> to vector<1x1x16xf32>
    tpu.vector_store %arg8[%c7_257, %c10_258, %c0_259], %369 {strides = array<i32>} : memref<8x14x16xf32, #tpu.memory_space<vmem>>, vector<1x1x16xf32>,
    %370 = vector.extract_strided_slice %6 {offsets = [0, 176], sizes = [8, 16], strides = [1, 1]} : vector<8x224xf32> to vector<8x16xf32>
    %371 = vector.extract_strided_slice %370 {offsets = [0, 0], sizes = [1, 16], strides = [1, 1]} : vector<8x16xf32> to vector<1x16xf32>
    %c0_260 = arith.constant 0 : index
    %c11 = arith.constant 11 : index
    %c0_261 = arith.constant 0 : index
    %372 = vector.load %arg8[%c0_260, %c11, %c0_261] : memref<8x14x16xf32, #tpu.memory_space<vmem>>, vector<1x1x16xf32>
    %373 = vector.shape_cast %372 : vector<1x1x16xf32> to vector<1x16xf32>
    %374 = vector.shape_cast %371 : vector<1x16xf32> to vector<1x1x16xf32>
    tpu.vector_store %arg8[%c0_260, %c11, %c0_261], %374 {strides = array<i32>} : memref<8x14x16xf32, #tpu.memory_space<vmem>>, vector<1x1x16xf32>,
    %375 = vector.extract_strided_slice %370 {offsets = [1, 0], sizes = [1, 16], strides = [1, 1]} : vector<8x16xf32> to vector<1x16xf32>
    %c1_262 = arith.constant 1 : index
    %c11_263 = arith.constant 11 : index
    %c0_264 = arith.constant 0 : index
    %376 = vector.load %arg8[%c1_262, %c11_263, %c0_264] : memref<8x14x16xf32, #tpu.memory_space<vmem>>, vector<1x1x16xf32>
    %377 = vector.shape_cast %376 : vector<1x1x16xf32> to vector<1x16xf32>
    %378 = vector.shape_cast %375 : vector<1x16xf32> to vector<1x1x16xf32>
    tpu.vector_store %arg8[%c1_262, %c11_263, %c0_264], %378 {strides = array<i32>} : memref<8x14x16xf32, #tpu.memory_space<vmem>>, vector<1x1x16xf32>,
    %379 = vector.extract_strided_slice %370 {offsets = [2, 0], sizes = [1, 16], strides = [1, 1]} : vector<8x16xf32> to vector<1x16xf32>
    %c2_265 = arith.constant 2 : index
    %c11_266 = arith.constant 11 : index
    %c0_267 = arith.constant 0 : index
    %380 = vector.load %arg8[%c2_265, %c11_266, %c0_267] : memref<8x14x16xf32, #tpu.memory_space<vmem>>, vector<1x1x16xf32>
    %381 = vector.shape_cast %380 : vector<1x1x16xf32> to vector<1x16xf32>
    %382 = vector.shape_cast %379 : vector<1x16xf32> to vector<1x1x16xf32>
    tpu.vector_store %arg8[%c2_265, %c11_266, %c0_267], %382 {strides = array<i32>} : memref<8x14x16xf32, #tpu.memory_space<vmem>>, vector<1x1x16xf32>,
    %383 = vector.extract_strided_slice %370 {offsets = [3, 0], sizes = [1, 16], strides = [1, 1]} : vector<8x16xf32> to vector<1x16xf32>
    %c3_268 = arith.constant 3 : index
    %c11_269 = arith.constant 11 : index
    %c0_270 = arith.constant 0 : index
    %384 = vector.load %arg8[%c3_268, %c11_269, %c0_270] : memref<8x14x16xf32, #tpu.memory_space<vmem>>, vector<1x1x16xf32>
    %385 = vector.shape_cast %384 : vector<1x1x16xf32> to vector<1x16xf32>
    %386 = vector.shape_cast %383 : vector<1x16xf32> to vector<1x1x16xf32>
    tpu.vector_store %arg8[%c3_268, %c11_269, %c0_270], %386 {strides = array<i32>} : memref<8x14x16xf32, #tpu.memory_space<vmem>>, vector<1x1x16xf32>,
    %387 = vector.extract_strided_slice %370 {offsets = [4, 0], sizes = [1, 16], strides = [1, 1]} : vector<8x16xf32> to vector<1x16xf32>
    %c4_271 = arith.constant 4 : index
    %c11_272 = arith.constant 11 : index
    %c0_273 = arith.constant 0 : index
    %388 = vector.load %arg8[%c4_271, %c11_272, %c0_273] : memref<8x14x16xf32, #tpu.memory_space<vmem>>, vector<1x1x16xf32>
    %389 = vector.shape_cast %388 : vector<1x1x16xf32> to vector<1x16xf32>
    %390 = vector.shape_cast %387 : vector<1x16xf32> to vector<1x1x16xf32>
    tpu.vector_store %arg8[%c4_271, %c11_272, %c0_273], %390 {strides = array<i32>} : memref<8x14x16xf32, #tpu.memory_space<vmem>>, vector<1x1x16xf32>,
    %391 = vector.extract_strided_slice %370 {offsets = [5, 0], sizes = [1, 16], strides = [1, 1]} : vector<8x16xf32> to vector<1x16xf32>
    %c5_274 = arith.constant 5 : index
    %c11_275 = arith.constant 11 : index
    %c0_276 = arith.constant 0 : index
    %392 = vector.load %arg8[%c5_274, %c11_275, %c0_276] : memref<8x14x16xf32, #tpu.memory_space<vmem>>, vector<1x1x16xf32>
    %393 = vector.shape_cast %392 : vector<1x1x16xf32> to vector<1x16xf32>
    %394 = vector.shape_cast %391 : vector<1x16xf32> to vector<1x1x16xf32>
    tpu.vector_store %arg8[%c5_274, %c11_275, %c0_276], %394 {strides = array<i32>} : memref<8x14x16xf32, #tpu.memory_space<vmem>>, vector<1x1x16xf32>,
    %395 = vector.extract_strided_slice %370 {offsets = [6, 0], sizes = [1, 16], strides = [1, 1]} : vector<8x16xf32> to vector<1x16xf32>
    %c6_277 = arith.constant 6 : index
    %c11_278 = arith.constant 11 : index
    %c0_279 = arith.constant 0 : index
    %396 = vector.load %arg8[%c6_277, %c11_278, %c0_279] : memref<8x14x16xf32, #tpu.memory_space<vmem>>, vector<1x1x16xf32>
    %397 = vector.shape_cast %396 : vector<1x1x16xf32> to vector<1x16xf32>
    %398 = vector.shape_cast %395 : vector<1x16xf32> to vector<1x1x16xf32>
    tpu.vector_store %arg8[%c6_277, %c11_278, %c0_279], %398 {strides = array<i32>} : memref<8x14x16xf32, #tpu.memory_space<vmem>>, vector<1x1x16xf32>,
    %399 = vector.extract_strided_slice %370 {offsets = [7, 0], sizes = [1, 16], strides = [1, 1]} : vector<8x16xf32> to vector<1x16xf32>
    %c7_280 = arith.constant 7 : index
    %c11_281 = arith.constant 11 : index
    %c0_282 = arith.constant 0 : index
    %400 = vector.load %arg8[%c7_280, %c11_281, %c0_282] : memref<8x14x16xf32, #tpu.memory_space<vmem>>, vector<1x1x16xf32>
    %401 = vector.shape_cast %400 : vector<1x1x16xf32> to vector<1x16xf32>
    %402 = vector.shape_cast %399 : vector<1x16xf32> to vector<1x1x16xf32>
    tpu.vector_store %arg8[%c7_280, %c11_281, %c0_282], %402 {strides = array<i32>} : memref<8x14x16xf32, #tpu.memory_space<vmem>>, vector<1x1x16xf32>,
    %403 = vector.extract_strided_slice %6 {offsets = [0, 192], sizes = [8, 16], strides = [1, 1]} : vector<8x224xf32> to vector<8x16xf32>
    %404 = vector.extract_strided_slice %403 {offsets = [0, 0], sizes = [1, 16], strides = [1, 1]} : vector<8x16xf32> to vector<1x16xf32>
    %c0_283 = arith.constant 0 : index
    %c12 = arith.constant 12 : index
    %c0_284 = arith.constant 0 : index
    %405 = vector.load %arg8[%c0_283, %c12, %c0_284] : memref<8x14x16xf32, #tpu.memory_space<vmem>>, vector<1x1x16xf32>
    %406 = vector.shape_cast %405 : vector<1x1x16xf32> to vector<1x16xf32>
    %407 = vector.shape_cast %404 : vector<1x16xf32> to vector<1x1x16xf32>
    tpu.vector_store %arg8[%c0_283, %c12, %c0_284], %407 {strides = array<i32>} : memref<8x14x16xf32, #tpu.memory_space<vmem>>, vector<1x1x16xf32>,
    %408 = vector.extract_strided_slice %403 {offsets = [1, 0], sizes = [1, 16], strides = [1, 1]} : vector<8x16xf32> to vector<1x16xf32>
    %c1_285 = arith.constant 1 : index
    %c12_286 = arith.constant 12 : index
    %c0_287 = arith.constant 0 : index
    %409 = vector.load %arg8[%c1_285, %c12_286, %c0_287] : memref<8x14x16xf32, #tpu.memory_space<vmem>>, vector<1x1x16xf32>
    %410 = vector.shape_cast %409 : vector<1x1x16xf32> to vector<1x16xf32>
    %411 = vector.shape_cast %408 : vector<1x16xf32> to vector<1x1x16xf32>
    tpu.vector_store %arg8[%c1_285, %c12_286, %c0_287], %411 {strides = array<i32>} : memref<8x14x16xf32, #tpu.memory_space<vmem>>, vector<1x1x16xf32>,
    %412 = vector.extract_strided_slice %403 {offsets = [2, 0], sizes = [1, 16], strides = [1, 1]} : vector<8x16xf32> to vector<1x16xf32>
    %c2_288 = arith.constant 2 : index
    %c12_289 = arith.constant 12 : index
    %c0_290 = arith.constant 0 : index
    %413 = vector.load %arg8[%c2_288, %c12_289, %c0_290] : memref<8x14x16xf32, #tpu.memory_space<vmem>>, vector<1x1x16xf32>
    %414 = vector.shape_cast %413 : vector<1x1x16xf32> to vector<1x16xf32>
    %415 = vector.shape_cast %412 : vector<1x16xf32> to vector<1x1x16xf32>
    tpu.vector_store %arg8[%c2_288, %c12_289, %c0_290], %415 {strides = array<i32>} : memref<8x14x16xf32, #tpu.memory_space<vmem>>, vector<1x1x16xf32>,
    %416 = vector.extract_strided_slice %403 {offsets = [3, 0], sizes = [1, 16], strides = [1, 1]} : vector<8x16xf32> to vector<1x16xf32>
    %c3_291 = arith.constant 3 : index
    %c12_292 = arith.constant 12 : index
    %c0_293 = arith.constant 0 : index
    %417 = vector.load %arg8[%c3_291, %c12_292, %c0_293] : memref<8x14x16xf32, #tpu.memory_space<vmem>>, vector<1x1x16xf32>
    %418 = vector.shape_cast %417 : vector<1x1x16xf32> to vector<1x16xf32>
    %419 = vector.shape_cast %416 : vector<1x16xf32> to vector<1x1x16xf32>
    tpu.vector_store %arg8[%c3_291, %c12_292, %c0_293], %419 {strides = array<i32>} : memref<8x14x16xf32, #tpu.memory_space<vmem>>, vector<1x1x16xf32>,
    %420 = vector.extract_strided_slice %403 {offsets = [4, 0], sizes = [1, 16], strides = [1, 1]} : vector<8x16xf32> to vector<1x16xf32>
    %c4_294 = arith.constant 4 : index
    %c12_295 = arith.constant 12 : index
    %c0_296 = arith.constant 0 : index
    %421 = vector.load %arg8[%c4_294, %c12_295, %c0_296] : memref<8x14x16xf32, #tpu.memory_space<vmem>>, vector<1x1x16xf32>
    %422 = vector.shape_cast %421 : vector<1x1x16xf32> to vector<1x16xf32>
    %423 = vector.shape_cast %420 : vector<1x16xf32> to vector<1x1x16xf32>
    tpu.vector_store %arg8[%c4_294, %c12_295, %c0_296], %423 {strides = array<i32>} : memref<8x14x16xf32, #tpu.memory_space<vmem>>, vector<1x1x16xf32>,
    %424 = vector.extract_strided_slice %403 {offsets = [5, 0], sizes = [1, 16], strides = [1, 1]} : vector<8x16xf32> to vector<1x16xf32>
    %c5_297 = arith.constant 5 : index
    %c12_298 = arith.constant 12 : index
    %c0_299 = arith.constant 0 : index
    %425 = vector.load %arg8[%c5_297, %c12_298, %c0_299] : memref<8x14x16xf32, #tpu.memory_space<vmem>>, vector<1x1x16xf32>
    %426 = vector.shape_cast %425 : vector<1x1x16xf32> to vector<1x16xf32>
    %427 = vector.shape_cast %424 : vector<1x16xf32> to vector<1x1x16xf32>
    tpu.vector_store %arg8[%c5_297, %c12_298, %c0_299], %427 {strides = array<i32>} : memref<8x14x16xf32, #tpu.memory_space<vmem>>, vector<1x1x16xf32>,
    %428 = vector.extract_strided_slice %403 {offsets = [6, 0], sizes = [1, 16], strides = [1, 1]} : vector<8x16xf32> to vector<1x16xf32>
    %c6_300 = arith.constant 6 : index
    %c12_301 = arith.constant 12 : index
    %c0_302 = arith.constant 0 : index
    %429 = vector.load %arg8[%c6_300, %c12_301, %c0_302] : memref<8x14x16xf32, #tpu.memory_space<vmem>>, vector<1x1x16xf32>
    %430 = vector.shape_cast %429 : vector<1x1x16xf32> to vector<1x16xf32>
    %431 = vector.shape_cast %428 : vector<1x16xf32> to vector<1x1x16xf32>
    tpu.vector_store %arg8[%c6_300, %c12_301, %c0_302], %431 {strides = array<i32>} : memref<8x14x16xf32, #tpu.memory_space<vmem>>, vector<1x1x16xf32>,
    %432 = vector.extract_strided_slice %403 {offsets = [7, 0], sizes = [1, 16], strides = [1, 1]} : vector<8x16xf32> to vector<1x16xf32>
    %c7_303 = arith.constant 7 : index
    %c12_304 = arith.constant 12 : index
    %c0_305 = arith.constant 0 : index
    %433 = vector.load %arg8[%c7_303, %c12_304, %c0_305] : memref<8x14x16xf32, #tpu.memory_space<vmem>>, vector<1x1x16xf32>
    %434 = vector.shape_cast %433 : vector<1x1x16xf32> to vector<1x16xf32>
    %435 = vector.shape_cast %432 : vector<1x16xf32> to vector<1x1x16xf32>
    tpu.vector_store %arg8[%c7_303, %c12_304, %c0_305], %435 {strides = array<i32>} : memref<8x14x16xf32, #tpu.memory_space<vmem>>, vector<1x1x16xf32>,
    %436 = vector.extract_strided_slice %6 {offsets = [0, 208], sizes = [8, 16], strides = [1, 1]} : vector<8x224xf32> to vector<8x16xf32>
    %437 = vector.extract_strided_slice %436 {offsets = [0, 0], sizes = [1, 16], strides = [1, 1]} : vector<8x16xf32> to vector<1x16xf32>
    %c0_306 = arith.constant 0 : index
    %c13 = arith.constant 13 : index
    %c0_307 = arith.constant 0 : index
    %438 = vector.load %arg8[%c0_306, %c13, %c0_307] : memref<8x14x16xf32, #tpu.memory_space<vmem>>, vector<1x1x16xf32>
    %439 = vector.shape_cast %438 : vector<1x1x16xf32> to vector<1x16xf32>
    %440 = vector.shape_cast %437 : vector<1x16xf32> to vector<1x1x16xf32>
    tpu.vector_store %arg8[%c0_306, %c13, %c0_307], %440 {strides = array<i32>} : memref<8x14x16xf32, #tpu.memory_space<vmem>>, vector<1x1x16xf32>,
    %441 = vector.extract_strided_slice %436 {offsets = [1, 0], sizes = [1, 16], strides = [1, 1]} : vector<8x16xf32> to vector<1x16xf32>
    %c1_308 = arith.constant 1 : index
    %c13_309 = arith.constant 13 : index
    %c0_310 = arith.constant 0 : index
    %442 = vector.load %arg8[%c1_308, %c13_309, %c0_310] : memref<8x14x16xf32, #tpu.memory_space<vmem>>, vector<1x1x16xf32>
    %443 = vector.shape_cast %442 : vector<1x1x16xf32> to vector<1x16xf32>
    %444 = vector.shape_cast %441 : vector<1x16xf32> to vector<1x1x16xf32>
    tpu.vector_store %arg8[%c1_308, %c13_309, %c0_310], %444 {strides = array<i32>} : memref<8x14x16xf32, #tpu.memory_space<vmem>>, vector<1x1x16xf32>,
    %445 = vector.extract_strided_slice %436 {offsets = [2, 0], sizes = [1, 16], strides = [1, 1]} : vector<8x16xf32> to vector<1x16xf32>
    %c2_311 = arith.constant 2 : index
    %c13_312 = arith.constant 13 : index
    %c0_313 = arith.constant 0 : index
    %446 = vector.load %arg8[%c2_311, %c13_312, %c0_313] : memref<8x14x16xf32, #tpu.memory_space<vmem>>, vector<1x1x16xf32>
    %447 = vector.shape_cast %446 : vector<1x1x16xf32> to vector<1x16xf32>
    %448 = vector.shape_cast %445 : vector<1x16xf32> to vector<1x1x16xf32>
    tpu.vector_store %arg8[%c2_311, %c13_312, %c0_313], %448 {strides = array<i32>} : memref<8x14x16xf32, #tpu.memory_space<vmem>>, vector<1x1x16xf32>,
    %449 = vector.extract_strided_slice %436 {offsets = [3, 0], sizes = [1, 16], strides = [1, 1]} : vector<8x16xf32> to vector<1x16xf32>
    %c3_314 = arith.constant 3 : index
    %c13_315 = arith.constant 13 : index
    %c0_316 = arith.constant 0 : index
    %450 = vector.load %arg8[%c3_314, %c13_315, %c0_316] : memref<8x14x16xf32, #tpu.memory_space<vmem>>, vector<1x1x16xf32>
    %451 = vector.shape_cast %450 : vector<1x1x16xf32> to vector<1x16xf32>
    %452 = vector.shape_cast %449 : vector<1x16xf32> to vector<1x1x16xf32>
    tpu.vector_store %arg8[%c3_314, %c13_315, %c0_316], %452 {strides = array<i32>} : memref<8x14x16xf32, #tpu.memory_space<vmem>>, vector<1x1x16xf32>,
    %453 = vector.extract_strided_slice %436 {offsets = [4, 0], sizes = [1, 16], strides = [1, 1]} : vector<8x16xf32> to vector<1x16xf32>
    %c4_317 = arith.constant 4 : index
    %c13_318 = arith.constant 13 : index
    %c0_319 = arith.constant 0 : index
    %454 = vector.load %arg8[%c4_317, %c13_318, %c0_319] : memref<8x14x16xf32, #tpu.memory_space<vmem>>, vector<1x1x16xf32>
    %455 = vector.shape_cast %454 : vector<1x1x16xf32> to vector<1x16xf32>
    %456 = vector.shape_cast %453 : vector<1x16xf32> to vector<1x1x16xf32>
    tpu.vector_store %arg8[%c4_317, %c13_318, %c0_319], %456 {strides = array<i32>} : memref<8x14x16xf32, #tpu.memory_space<vmem>>, vector<1x1x16xf32>,
    %457 = vector.extract_strided_slice %436 {offsets = [5, 0], sizes = [1, 16], strides = [1, 1]} : vector<8x16xf32> to vector<1x16xf32>
    %c5_320 = arith.constant 5 : index
    %c13_321 = arith.constant 13 : index
    %c0_322 = arith.constant 0 : index
    %458 = vector.load %arg8[%c5_320, %c13_321, %c0_322] : memref<8x14x16xf32, #tpu.memory_space<vmem>>, vector<1x1x16xf32>
    %459 = vector.shape_cast %458 : vector<1x1x16xf32> to vector<1x16xf32>
    %460 = vector.shape_cast %457 : vector<1x16xf32> to vector<1x1x16xf32>
    tpu.vector_store %arg8[%c5_320, %c13_321, %c0_322], %460 {strides = array<i32>} : memref<8x14x16xf32, #tpu.memory_space<vmem>>, vector<1x1x16xf32>,
    %461 = vector.extract_strided_slice %436 {offsets = [6, 0], sizes = [1, 16], strides = [1, 1]} : vector<8x16xf32> to vector<1x16xf32>
    %c6_323 = arith.constant 6 : index
    %c13_324 = arith.constant 13 : index
    %c0_325 = arith.constant 0 : index
    %462 = vector.load %arg8[%c6_323, %c13_324, %c0_325] : memref<8x14x16xf32, #tpu.memory_space<vmem>>, vector<1x1x16xf32>
    %463 = vector.shape_cast %462 : vector<1x1x16xf32> to vector<1x16xf32>
    %464 = vector.shape_cast %461 : vector<1x16xf32> to vector<1x1x16xf32>
    tpu.vector_store %arg8[%c6_323, %c13_324, %c0_325], %464 {strides = array<i32>} : memref<8x14x16xf32, #tpu.memory_space<vmem>>, vector<1x1x16xf32>,
    %465 = vector.extract_strided_slice %436 {offsets = [7, 0], sizes = [1, 16], strides = [1, 1]} : vector<8x16xf32> to vector<1x16xf32>
    %c7_326 = arith.constant 7 : index
    %c13_327 = arith.constant 13 : index
    %c0_328 = arith.constant 0 : index
    %466 = vector.load %arg8[%c7_326, %c13_327, %c0_328] : memref<8x14x16xf32, #tpu.memory_space<vmem>>, vector<1x1x16xf32>
    %467 = vector.shape_cast %466 : vector<1x1x16xf32> to vector<1x16xf32>
    %468 = vector.shape_cast %465 : vector<1x16xf32> to vector<1x1x16xf32>
    tpu.vector_store %arg8[%c7_326, %c13_327, %c0_328], %468 {strides = array<i32>} : memref<8x14x16xf32, #tpu.memory_space<vmem>>, vector<1x1x16xf32>,
    %c0_329 = arith.constant 0 : index
    %c0_330 = arith.constant 0 : index
    %469 = vector.load %arg5[%c0_329, %c0_330] : memref<28x14xf32, #tpu.memory_space<vmem>>, vector<28x14xf32>
    %c0_331 = arith.constant 0 : index
    %c0_332 = arith.constant 0 : index
    %470 = vector.load %arg6[%c0_331, %c0_332] : memref<16x28xf32, #tpu.memory_space<vmem>>, vector<16x28xf32>
    %c0_333 = arith.constant 0 : index
    %c0_334 = arith.constant 0 : index
    %c0_335 = arith.constant 0 : index
    %471 = vector.load %arg8[%c0_333, %c0_334, %c0_335] : memref<8x14x16xf32, #tpu.memory_space<vmem>>, vector<1x14x16xf32>
    %472 = vector.shape_cast %471 : vector<1x14x16xf32> to vector<14x16xf32>
    %cst_336 = arith.constant dense<0.000000e+00> : vector<28x16xf32>
    %473 = tpu.matmul %469, %472, %cst_336 {dimension_numbers = #tpu.dot_dimension_numbers<[1], [0], [0], [1], [0, 0, 1, 1], [], []>} : vector<28x14xf32>, vector<14x16xf32>, vector<28x16xf32> -> vector<28x16xf32>
    %cst_337 = arith.constant dense<0.000000e+00> : vector<28x28xf32>
    %474 = tpu.matmul %473, %470, %cst_337 {dimension_numbers = #tpu.dot_dimension_numbers<[1], [0], [0], [1], [0, 0, 1, 1], [], []>} : vector<28x16xf32>, vector<16x28xf32>, vector<28x28xf32> -> vector<28x28xf32>
    %c0_338 = arith.constant 0 : index
    %c0_339 = arith.constant 0 : index
    %c0_340 = arith.constant 0 : index
    %c0_341 = arith.constant 0 : index
    %475 = vector.load %arg2[%c0_338, %c0_339, %c0_340, %c0_341] : memref<1x8x28x28xf32, #tpu.memory_space<vmem>>, vector<1x1x28x28xf32>
    %476 = vector.shape_cast %475 : vector<1x1x28x28xf32> to vector<28x28xf32>
    %cst_342 = arith.constant 1.200000e+00 : f32
    %477 = vector.broadcast %cst_342 : f32 to vector<28x28xf32>
    %478 = arith.mulf %477, %476 : vector<28x28xf32>
    %479 = arith.addf %478, %474 : vector<28x28xf32>
    %cst_343 = arith.constant 0.000000e+00 : f32
    %480 = vector.broadcast %cst_343 : f32 to vector<28x28xf32>
    %481 = arith.maximumf %479, %480 : vector<28x28xf32>
    %c0_344 = arith.constant 0 : index
    %c0_345 = arith.constant 0 : index
    %c0_346 = arith.constant 0 : index
    %c0_347 = arith.constant 0 : index
    %482 = vector.load %arg7[%c0_344, %c0_345, %c0_346, %c0_347] : memref<1x8x28x28xf32, #tpu.memory_space<vmem>>, vector<1x1x28x28xf32>
    %483 = vector.shape_cast %482 : vector<1x1x28x28xf32> to vector<28x28xf32>
    %484 = vector.shape_cast %481 : vector<28x28xf32> to vector<1x1x28x28xf32>
    tpu.vector_store %arg7[%c0_344, %c0_345, %c0_346, %c0_347], %484 {strides = array<i32>} : memref<1x8x28x28xf32, #tpu.memory_space<vmem>>, vector<1x1x28x28xf32>,
    %c1_348 = arith.constant 1 : index
    %c0_349 = arith.constant 0 : index
    %c0_350 = arith.constant 0 : index
    %485 = vector.load %arg8[%c1_348, %c0_349, %c0_350] : memref<8x14x16xf32, #tpu.memory_space<vmem>>, vector<1x14x16xf32>
    %486 = vector.shape_cast %485 : vector<1x14x16xf32> to vector<14x16xf32>
    %cst_351 = arith.constant dense<0.000000e+00> : vector<28x16xf32>
    %487 = tpu.matmul %469, %486, %cst_351 {dimension_numbers = #tpu.dot_dimension_numbers<[1], [0], [0], [1], [0, 0, 1, 1], [], []>} : vector<28x14xf32>, vector<14x16xf32>, vector<28x16xf32> -> vector<28x16xf32>
    %cst_352 = arith.constant dense<0.000000e+00> : vector<28x28xf32>
    %488 = tpu.matmul %487, %470, %cst_352 {dimension_numbers = #tpu.dot_dimension_numbers<[1], [0], [0], [1], [0, 0, 1, 1], [], []>} : vector<28x16xf32>, vector<16x28xf32>, vector<28x28xf32> -> vector<28x28xf32>
    %c0_353 = arith.constant 0 : index
    %c1_354 = arith.constant 1 : index
    %c0_355 = arith.constant 0 : index
    %c0_356 = arith.constant 0 : index
    %489 = vector.load %arg2[%c0_353, %c1_354, %c0_355, %c0_356] : memref<1x8x28x28xf32, #tpu.memory_space<vmem>>, vector<1x1x28x28xf32>
    %490 = vector.shape_cast %489 : vector<1x1x28x28xf32> to vector<28x28xf32>
    %cst_357 = arith.constant 1.200000e+00 : f32
    %491 = vector.broadcast %cst_357 : f32 to vector<28x28xf32>
    %492 = arith.mulf %491, %490 : vector<28x28xf32>
    %493 = arith.addf %492, %488 : vector<28x28xf32>
    %cst_358 = arith.constant 0.000000e+00 : f32
    %494 = vector.broadcast %cst_358 : f32 to vector<28x28xf32>
    %495 = arith.maximumf %493, %494 : vector<28x28xf32>
    %c0_359 = arith.constant 0 : index
    %c1_360 = arith.constant 1 : index
    %c0_361 = arith.constant 0 : index
    %c0_362 = arith.constant 0 : index
    %496 = vector.load %arg7[%c0_359, %c1_360, %c0_361, %c0_362] : memref<1x8x28x28xf32, #tpu.memory_space<vmem>>, vector<1x1x28x28xf32>
    %497 = vector.shape_cast %496 : vector<1x1x28x28xf32> to vector<28x28xf32>
    %498 = vector.shape_cast %495 : vector<28x28xf32> to vector<1x1x28x28xf32>
    tpu.vector_store %arg7[%c0_359, %c1_360, %c0_361, %c0_362], %498 {strides = array<i32>} : memref<1x8x28x28xf32, #tpu.memory_space<vmem>>, vector<1x1x28x28xf32>,
    %c2_363 = arith.constant 2 : index
    %c0_364 = arith.constant 0 : index
    %c0_365 = arith.constant 0 : index
    %499 = vector.load %arg8[%c2_363, %c0_364, %c0_365] : memref<8x14x16xf32, #tpu.memory_space<vmem>>, vector<1x14x16xf32>
    %500 = vector.shape_cast %499 : vector<1x14x16xf32> to vector<14x16xf32>
    %cst_366 = arith.constant dense<0.000000e+00> : vector<28x16xf32>
    %501 = tpu.matmul %469, %500, %cst_366 {dimension_numbers = #tpu.dot_dimension_numbers<[1], [0], [0], [1], [0, 0, 1, 1], [], []>} : vector<28x14xf32>, vector<14x16xf32>, vector<28x16xf32> -> vector<28x16xf32>
    %cst_367 = arith.constant dense<0.000000e+00> : vector<28x28xf32>
    %502 = tpu.matmul %501, %470, %cst_367 {dimension_numbers = #tpu.dot_dimension_numbers<[1], [0], [0], [1], [0, 0, 1, 1], [], []>} : vector<28x16xf32>, vector<16x28xf32>, vector<28x28xf32> -> vector<28x28xf32>
    %c0_368 = arith.constant 0 : index
    %c2_369 = arith.constant 2 : index
    %c0_370 = arith.constant 0 : index
    %c0_371 = arith.constant 0 : index
    %503 = vector.load %arg2[%c0_368, %c2_369, %c0_370, %c0_371] : memref<1x8x28x28xf32, #tpu.memory_space<vmem>>, vector<1x1x28x28xf32>
    %504 = vector.shape_cast %503 : vector<1x1x28x28xf32> to vector<28x28xf32>
    %cst_372 = arith.constant 1.200000e+00 : f32
    %505 = vector.broadcast %cst_372 : f32 to vector<28x28xf32>
    %506 = arith.mulf %505, %504 : vector<28x28xf32>
    %507 = arith.addf %506, %502 : vector<28x28xf32>
    %cst_373 = arith.constant 0.000000e+00 : f32
    %508 = vector.broadcast %cst_373 : f32 to vector<28x28xf32>
    %509 = arith.maximumf %507, %508 : vector<28x28xf32>
    %c0_374 = arith.constant 0 : index
    %c2_375 = arith.constant 2 : index
    %c0_376 = arith.constant 0 : index
    %c0_377 = arith.constant 0 : index
    %510 = vector.load %arg7[%c0_374, %c2_375, %c0_376, %c0_377] : memref<1x8x28x28xf32, #tpu.memory_space<vmem>>, vector<1x1x28x28xf32>
    %511 = vector.shape_cast %510 : vector<1x1x28x28xf32> to vector<28x28xf32>
    %512 = vector.shape_cast %509 : vector<28x28xf32> to vector<1x1x28x28xf32>
    tpu.vector_store %arg7[%c0_374, %c2_375, %c0_376, %c0_377], %512 {strides = array<i32>} : memref<1x8x28x28xf32, #tpu.memory_space<vmem>>, vector<1x1x28x28xf32>,
    %c3_378 = arith.constant 3 : index
    %c0_379 = arith.constant 0 : index
    %c0_380 = arith.constant 0 : index
    %513 = vector.load %arg8[%c3_378, %c0_379, %c0_380] : memref<8x14x16xf32, #tpu.memory_space<vmem>>, vector<1x14x16xf32>
    %514 = vector.shape_cast %513 : vector<1x14x16xf32> to vector<14x16xf32>
    %cst_381 = arith.constant dense<0.000000e+00> : vector<28x16xf32>
    %515 = tpu.matmul %469, %514, %cst_381 {dimension_numbers = #tpu.dot_dimension_numbers<[1], [0], [0], [1], [0, 0, 1, 1], [], []>} : vector<28x14xf32>, vector<14x16xf32>, vector<28x16xf32> -> vector<28x16xf32>
    %cst_382 = arith.constant dense<0.000000e+00> : vector<28x28xf32>
    %516 = tpu.matmul %515, %470, %cst_382 {dimension_numbers = #tpu.dot_dimension_numbers<[1], [0], [0], [1], [0, 0, 1, 1], [], []>} : vector<28x16xf32>, vector<16x28xf32>, vector<28x28xf32> -> vector<28x28xf32>
    %c0_383 = arith.constant 0 : index
    %c3_384 = arith.constant 3 : index
    %c0_385 = arith.constant 0 : index
    %c0_386 = arith.constant 0 : index
    %517 = vector.load %arg2[%c0_383, %c3_384, %c0_385, %c0_386] : memref<1x8x28x28xf32, #tpu.memory_space<vmem>>, vector<1x1x28x28xf32>
    %518 = vector.shape_cast %517 : vector<1x1x28x28xf32> to vector<28x28xf32>
    %cst_387 = arith.constant 1.200000e+00 : f32
    %519 = vector.broadcast %cst_387 : f32 to vector<28x28xf32>
    %520 = arith.mulf %519, %518 : vector<28x28xf32>
    %521 = arith.addf %520, %516 : vector<28x28xf32>
    %cst_388 = arith.constant 0.000000e+00 : f32
    %522 = vector.broadcast %cst_388 : f32 to vector<28x28xf32>
    %523 = arith.maximumf %521, %522 : vector<28x28xf32>
    %c0_389 = arith.constant 0 : index
    %c3_390 = arith.constant 3 : index
    %c0_391 = arith.constant 0 : index
    %c0_392 = arith.constant 0 : index
    %524 = vector.load %arg7[%c0_389, %c3_390, %c0_391, %c0_392] : memref<1x8x28x28xf32, #tpu.memory_space<vmem>>, vector<1x1x28x28xf32>
    %525 = vector.shape_cast %524 : vector<1x1x28x28xf32> to vector<28x28xf32>
    %526 = vector.shape_cast %523 : vector<28x28xf32> to vector<1x1x28x28xf32>
    tpu.vector_store %arg7[%c0_389, %c3_390, %c0_391, %c0_392], %526 {strides = array<i32>} : memref<1x8x28x28xf32, #tpu.memory_space<vmem>>, vector<1x1x28x28xf32>,
    %c4_393 = arith.constant 4 : index
    %c0_394 = arith.constant 0 : index
    %c0_395 = arith.constant 0 : index
    %527 = vector.load %arg8[%c4_393, %c0_394, %c0_395] : memref<8x14x16xf32, #tpu.memory_space<vmem>>, vector<1x14x16xf32>
    %528 = vector.shape_cast %527 : vector<1x14x16xf32> to vector<14x16xf32>
    %cst_396 = arith.constant dense<0.000000e+00> : vector<28x16xf32>
    %529 = tpu.matmul %469, %528, %cst_396 {dimension_numbers = #tpu.dot_dimension_numbers<[1], [0], [0], [1], [0, 0, 1, 1], [], []>} : vector<28x14xf32>, vector<14x16xf32>, vector<28x16xf32> -> vector<28x16xf32>
    %cst_397 = arith.constant dense<0.000000e+00> : vector<28x28xf32>
    %530 = tpu.matmul %529, %470, %cst_397 {dimension_numbers = #tpu.dot_dimension_numbers<[1], [0], [0], [1], [0, 0, 1, 1], [], []>} : vector<28x16xf32>, vector<16x28xf32>, vector<28x28xf32> -> vector<28x28xf32>
    %c0_398 = arith.constant 0 : index
    %c4_399 = arith.constant 4 : index
    %c0_400 = arith.constant 0 : index
    %c0_401 = arith.constant 0 : index
    %531 = vector.load %arg2[%c0_398, %c4_399, %c0_400, %c0_401] : memref<1x8x28x28xf32, #tpu.memory_space<vmem>>, vector<1x1x28x28xf32>
    %532 = vector.shape_cast %531 : vector<1x1x28x28xf32> to vector<28x28xf32>
    %cst_402 = arith.constant 1.200000e+00 : f32
    %533 = vector.broadcast %cst_402 : f32 to vector<28x28xf32>
    %534 = arith.mulf %533, %532 : vector<28x28xf32>
    %535 = arith.addf %534, %530 : vector<28x28xf32>
    %cst_403 = arith.constant 0.000000e+00 : f32
    %536 = vector.broadcast %cst_403 : f32 to vector<28x28xf32>
    %537 = arith.maximumf %535, %536 : vector<28x28xf32>
    %c0_404 = arith.constant 0 : index
    %c4_405 = arith.constant 4 : index
    %c0_406 = arith.constant 0 : index
    %c0_407 = arith.constant 0 : index
    %538 = vector.load %arg7[%c0_404, %c4_405, %c0_406, %c0_407] : memref<1x8x28x28xf32, #tpu.memory_space<vmem>>, vector<1x1x28x28xf32>
    %539 = vector.shape_cast %538 : vector<1x1x28x28xf32> to vector<28x28xf32>
    %540 = vector.shape_cast %537 : vector<28x28xf32> to vector<1x1x28x28xf32>
    tpu.vector_store %arg7[%c0_404, %c4_405, %c0_406, %c0_407], %540 {strides = array<i32>} : memref<1x8x28x28xf32, #tpu.memory_space<vmem>>, vector<1x1x28x28xf32>,
    %c5_408 = arith.constant 5 : index
    %c0_409 = arith.constant 0 : index
    %c0_410 = arith.constant 0 : index
    %541 = vector.load %arg8[%c5_408, %c0_409, %c0_410] : memref<8x14x16xf32, #tpu.memory_space<vmem>>, vector<1x14x16xf32>
    %542 = vector.shape_cast %541 : vector<1x14x16xf32> to vector<14x16xf32>
    %cst_411 = arith.constant dense<0.000000e+00> : vector<28x16xf32>
    %543 = tpu.matmul %469, %542, %cst_411 {dimension_numbers = #tpu.dot_dimension_numbers<[1], [0], [0], [1], [0, 0, 1, 1], [], []>} : vector<28x14xf32>, vector<14x16xf32>, vector<28x16xf32> -> vector<28x16xf32>
    %cst_412 = arith.constant dense<0.000000e+00> : vector<28x28xf32>
    %544 = tpu.matmul %543, %470, %cst_412 {dimension_numbers = #tpu.dot_dimension_numbers<[1], [0], [0], [1], [0, 0, 1, 1], [], []>} : vector<28x16xf32>, vector<16x28xf32>, vector<28x28xf32> -> vector<28x28xf32>
    %c0_413 = arith.constant 0 : index
    %c5_414 = arith.constant 5 : index
    %c0_415 = arith.constant 0 : index
    %c0_416 = arith.constant 0 : index
    %545 = vector.load %arg2[%c0_413, %c5_414, %c0_415, %c0_416] : memref<1x8x28x28xf32, #tpu.memory_space<vmem>>, vector<1x1x28x28xf32>
    %546 = vector.shape_cast %545 : vector<1x1x28x28xf32> to vector<28x28xf32>
    %cst_417 = arith.constant 1.200000e+00 : f32
    %547 = vector.broadcast %cst_417 : f32 to vector<28x28xf32>
    %548 = arith.mulf %547, %546 : vector<28x28xf32>
    %549 = arith.addf %548, %544 : vector<28x28xf32>
    %cst_418 = arith.constant 0.000000e+00 : f32
    %550 = vector.broadcast %cst_418 : f32 to vector<28x28xf32>
    %551 = arith.maximumf %549, %550 : vector<28x28xf32>
    %c0_419 = arith.constant 0 : index
    %c5_420 = arith.constant 5 : index
    %c0_421 = arith.constant 0 : index
    %c0_422 = arith.constant 0 : index
    %552 = vector.load %arg7[%c0_419, %c5_420, %c0_421, %c0_422] : memref<1x8x28x28xf32, #tpu.memory_space<vmem>>, vector<1x1x28x28xf32>
    %553 = vector.shape_cast %552 : vector<1x1x28x28xf32> to vector<28x28xf32>
    %554 = vector.shape_cast %551 : vector<28x28xf32> to vector<1x1x28x28xf32>
    tpu.vector_store %arg7[%c0_419, %c5_420, %c0_421, %c0_422], %554 {strides = array<i32>} : memref<1x8x28x28xf32, #tpu.memory_space<vmem>>, vector<1x1x28x28xf32>,
    %c6_423 = arith.constant 6 : index
    %c0_424 = arith.constant 0 : index
    %c0_425 = arith.constant 0 : index
    %555 = vector.load %arg8[%c6_423, %c0_424, %c0_425] : memref<8x14x16xf32, #tpu.memory_space<vmem>>, vector<1x14x16xf32>
    %556 = vector.shape_cast %555 : vector<1x14x16xf32> to vector<14x16xf32>
    %cst_426 = arith.constant dense<0.000000e+00> : vector<28x16xf32>
    %557 = tpu.matmul %469, %556, %cst_426 {dimension_numbers = #tpu.dot_dimension_numbers<[1], [0], [0], [1], [0, 0, 1, 1], [], []>} : vector<28x14xf32>, vector<14x16xf32>, vector<28x16xf32> -> vector<28x16xf32>
    %cst_427 = arith.constant dense<0.000000e+00> : vector<28x28xf32>
    %558 = tpu.matmul %557, %470, %cst_427 {dimension_numbers = #tpu.dot_dimension_numbers<[1], [0], [0], [1], [0, 0, 1, 1], [], []>} : vector<28x16xf32>, vector<16x28xf32>, vector<28x28xf32> -> vector<28x28xf32>
    %c0_428 = arith.constant 0 : index
    %c6_429 = arith.constant 6 : index
    %c0_430 = arith.constant 0 : index
    %c0_431 = arith.constant 0 : index
    %559 = vector.load %arg2[%c0_428, %c6_429, %c0_430, %c0_431] : memref<1x8x28x28xf32, #tpu.memory_space<vmem>>, vector<1x1x28x28xf32>
    %560 = vector.shape_cast %559 : vector<1x1x28x28xf32> to vector<28x28xf32>
    %cst_432 = arith.constant 1.200000e+00 : f32
    %561 = vector.broadcast %cst_432 : f32 to vector<28x28xf32>
    %562 = arith.mulf %561, %560 : vector<28x28xf32>
    %563 = arith.addf %562, %558 : vector<28x28xf32>
    %cst_433 = arith.constant 0.000000e+00 : f32
    %564 = vector.broadcast %cst_433 : f32 to vector<28x28xf32>
    %565 = arith.maximumf %563, %564 : vector<28x28xf32>
    %c0_434 = arith.constant 0 : index
    %c6_435 = arith.constant 6 : index
    %c0_436 = arith.constant 0 : index
    %c0_437 = arith.constant 0 : index
    %566 = vector.load %arg7[%c0_434, %c6_435, %c0_436, %c0_437] : memref<1x8x28x28xf32, #tpu.memory_space<vmem>>, vector<1x1x28x28xf32>
    %567 = vector.shape_cast %566 : vector<1x1x28x28xf32> to vector<28x28xf32>
    %568 = vector.shape_cast %565 : vector<28x28xf32> to vector<1x1x28x28xf32>
    tpu.vector_store %arg7[%c0_434, %c6_435, %c0_436, %c0_437], %568 {strides = array<i32>} : memref<1x8x28x28xf32, #tpu.memory_space<vmem>>, vector<1x1x28x28xf32>,
    %c7_438 = arith.constant 7 : index
    %c0_439 = arith.constant 0 : index
    %c0_440 = arith.constant 0 : index
    %569 = vector.load %arg8[%c7_438, %c0_439, %c0_440] : memref<8x14x16xf32, #tpu.memory_space<vmem>>, vector<1x14x16xf32>
    %570 = vector.shape_cast %569 : vector<1x14x16xf32> to vector<14x16xf32>
    %cst_441 = arith.constant dense<0.000000e+00> : vector<28x16xf32>
    %571 = tpu.matmul %469, %570, %cst_441 {dimension_numbers = #tpu.dot_dimension_numbers<[1], [0], [0], [1], [0, 0, 1, 1], [], []>} : vector<28x14xf32>, vector<14x16xf32>, vector<28x16xf32> -> vector<28x16xf32>
    %cst_442 = arith.constant dense<0.000000e+00> : vector<28x28xf32>
    %572 = tpu.matmul %571, %470, %cst_442 {dimension_numbers = #tpu.dot_dimension_numbers<[1], [0], [0], [1], [0, 0, 1, 1], [], []>} : vector<28x16xf32>, vector<16x28xf32>, vector<28x28xf32> -> vector<28x28xf32>
    %c0_443 = arith.constant 0 : index
    %c7_444 = arith.constant 7 : index
    %c0_445 = arith.constant 0 : index
    %c0_446 = arith.constant 0 : index
    %573 = vector.load %arg2[%c0_443, %c7_444, %c0_445, %c0_446] : memref<1x8x28x28xf32, #tpu.memory_space<vmem>>, vector<1x1x28x28xf32>
    %574 = vector.shape_cast %573 : vector<1x1x28x28xf32> to vector<28x28xf32>
    %cst_447 = arith.constant 1.200000e+00 : f32
    %575 = vector.broadcast %cst_447 : f32 to vector<28x28xf32>
    %576 = arith.mulf %575, %574 : vector<28x28xf32>
    %577 = arith.addf %576, %572 : vector<28x28xf32>
    %cst_448 = arith.constant 0.000000e+00 : f32
    %578 = vector.broadcast %cst_448 : f32 to vector<28x28xf32>
    %579 = arith.maximumf %577, %578 : vector<28x28xf32>
    %c0_449 = arith.constant 0 : index
    %c7_450 = arith.constant 7 : index
    %c0_451 = arith.constant 0 : index
    %c0_452 = arith.constant 0 : index
    %580 = vector.load %arg7[%c0_449, %c7_450, %c0_451, %c0_452] : memref<1x8x28x28xf32, #tpu.memory_space<vmem>>, vector<1x1x28x28xf32>
    %581 = vector.shape_cast %580 : vector<1x1x28x28xf32> to vector<28x28xf32>
    %582 = vector.shape_cast %579 : vector<28x28xf32> to vector<1x1x28x28xf32>
    tpu.vector_store %arg7[%c0_449, %c7_450, %c0_451, %c0_452], %582 {strides = array<i32>} : memref<1x8x28x28xf32, #tpu.memory_space<vmem>>, vector<1x1x28x28xf32>,
    return
  }
  func.func @transform_0(%arg0: i32) -> (i32, i32, i32) {
    %c0_i32 = arith.constant 0 : i32
    %c0_i32_0 = arith.constant 0 : i32
    %c0_i32_1 = arith.constant 0 : i32
    return %arg0, %c0_i32, %c0_i32_0 : i32, i32, i32
  }
  func.func @transform_1(%arg0: i32) -> (i32, i32, i32, i32) {
    %c0_i32 = arith.constant 0 : i32
    %c0_i32_0 = arith.constant 0 : i32
    %c0_i32_1 = arith.constant 0 : i32
    %c0_i32_2 = arith.constant 0 : i32
    return %arg0, %c0_i32, %c0_i32_0, %c0_i32_1 : i32, i32, i32, i32
  }
  func.func @transform_2(%arg0: i32) -> (i32, i32) {
    %c0_i32 = arith.constant 0 : i32
    %c0_i32_0 = arith.constant 0 : i32
    %c0_i32_1 = arith.constant 0 : i32
    return %c0_i32, %c0_i32_0 : i32, i32
  }
  func.func @transform_3(%arg0: i32) -> (i32, i32) {
    %c0_i32 = arith.constant 0 : i32
    %c0_i32_0 = arith.constant 0 : i32
    %c0_i32_1 = arith.constant 0 : i32
    return %c0_i32, %c0_i32_0 : i32, i32
  }
  func.func @transform_4(%arg0: i32) -> (i32, i32) {
    %c0_i32 = arith.constant 0 : i32
    %c0_i32_0 = arith.constant 0 : i32
    %c0_i32_1 = arith.constant 0 : i32
    return %c0_i32, %c0_i32_0 : i32, i32
  }
  func.func @transform_5(%arg0: i32) -> (i32, i32) {
    %c0_i32 = arith.constant 0 : i32
    %c0_i32_0 = arith.constant 0 : i32
    %c0_i32_1 = arith.constant 0 : i32
    return %c0_i32, %c0_i32_0 : i32, i32
  }
  func.func @transform_6(%arg0: i32) -> (i32, i32, i32, i32) {
    %c0_i32 = arith.constant 0 : i32
    %c0_i32_0 = arith.constant 0 : i32
    %c0_i32_1 = arith.constant 0 : i32
    %c0_i32_2 = arith.constant 0 : i32
    return %arg0, %c0_i32, %c0_i32_0, %c0_i32_1 : i32, i32, i32, i32
  }
}

</mosaic_0001>

<bundles_post_ra>
// kernel: tpu_custom_call.1
= control target key start
LH: loop header
LB: loop body
LE: loop exit
PB: predicated region body
PF: predicated region fallthrough
CT: control target
= control target key end

     0   :  { %s2772_s21 = smov 0   ;;  %s3190_s0 = inlined_call_operand.vmem [shape: f32[2,36,224], index: 0, kind: input, shape index: {}]   ;;  %s3191_s1 = inlined_call_operand.vmem [shape: f32[2,8,28,28], index: 1, kind: input, shape index: {}]   ;;  %s3192_s2 = inlined_call_operand.vmem [shape: f32[8,36], index: 2, kind: input, shape index: {}]   ;;  %s3193_s3 = inlined_call_operand.vmem [shape: f32[8,1], index: 3, kind: input, shape index: {}]   ;;  %s3194_s4 = inlined_call_operand.vmem [shape: f32[28,14], index: 4, kind: input, shape index: {}]   ;;  %s3195_s5 = inlined_call_operand.vmem [shape: f32[16,28], index: 5, kind: input, shape index: {}]   ;;  %s3196_s6 = inlined_call_operand.vmem [shape: f32[2,8,28,28], index: 6, kind: output, shape index: {}]  }
   0x1 LB: > { %s2296_s22 = sadd.s32 4294967295, %s2726_s21   ;;  %p2300_p0 = scmp.ge.s32.totalorder %s2726_s21, 1  ;;  %s2726_s21 = sphi %s2772_s21, %s16_s21  }
   0x2   : > { %p222_p1 = scmp.lt.s32.totalorder %s2726_s21, 3 }
   0x4   : > { %p223_p2 = pnand %p2300_p0, %p222_p1 }
   0x5   : > { %p257_p3 = scmp.lt.s32.totalorder (!%p223_p2), %s2296_s22, 1  ;;  %s2730_s7 = smov (!%p223_p2), 96  }
   0x6   : > { %226 = sbr.rel (%p223_p2) target bundleno = 842 (0x34a), region = 44  ;;  %s2731_s8 = smov (!%p223_p2), 112  }
   0x7   : > { %s2732_s9 = smov (!%p223_p2), 64   ;;  %s2733_s10 = smov (!%p223_p2), 80  }
   0x8   : > { %s2734_s11 = smov (!%p223_p2), 48   ;;  %s2735_s16 = smov (!%p223_p2), 32  }
   0x9   : > { %s2736_s17 = smov (!%p223_p2), 16  }
   0xb   : > { %v2728_v0 = vmov 0.0   ;;  %v2729_v1 = vmov 0   ;;  %v283_v2 = vld [vmem:[%s3193_s3] sm:$0xff]  ;;  %s3198_s22 = smov (!%p257_p3, %s2296_s22), 1  ;;  %vm293_vm0 = vcmask 1043456   ;;  %vm289_vm1 = vcmask 293888  }
   0xc   : > { %364 = vmatprep.mubr.f32.mxu0 %v2728_v0  ;;  %2719 = vset.pattern.permute.xlu0 %v2729_v1  ;;  %s2701_s25 = smul.u32 80, %s3198_s22  ;;  %v272_v13 = vld [vmem:[%s3192_s2] sm:$0xff]  ;;  %vm371_vm2 = vcmask 122880   ;;  %vm374_vm3 = vcmask 123905   ;;  %vm377_vm4 = vcmask 124930   ;;  %vm380_vm5 = vcmask 125955  }
   0xd   : > { %286 = vperm.xlu0 %2719, %v283_v2   ;;  %vm383_vm6 = vcmask 126980   ;;  %vm386_vm7 = vcmask 128005   ;;  %vm389_vm8 = vcmask 129030   ;;  %vm392_vm9 = vcmask 130055   ;;  %v2811_v19 = vld [vmem:[%s3194_s4] sm:$0xff]  ;;  %v2818_v20 = vld [vmem:[%s3194_s4 + $0x10] sm:$0xff] }
   0xe   : > { %s261_s28 = scalar_lea.vmem %s3190_s0, %s2701_s25  ;;  %vm544_vm10 = vcmask 113664   ;;  %vm557_vm11 = vcmask 1045504   ;;  %v2925_v35 = vld [vmem:[%s3194_s4 + $0x8] sm:$0xff]  ;;  %v2930_v36 = vld [vmem:[%s3194_s4 + $0x18] sm:$0xf]  ;;  %v3016_v52 = vld [vmem:[%s3195_s5] sm:$0xff] }
   0xf   : > { %v282_v3 = vld [vmem:[%s261_s28 + $0x48] sm:$0xf]  ;;  %v281_v4 = vld [vmem:[%s261_s28 + $0x40] sm:$0xf]  ;;  %v280_v5 = vld [vmem:[%s261_s28 + $0x38] sm:$0xff]  ;;  %2544 = vmatprep.mubr.msk.f32.mxu1 %vm544_vm10, %v2818_v20  ;;  %vm646_vm12 = vcmask 130048  }
  0x10   : > { %2306 = vmatprep.subr.msk.mxu0 %vm293_vm0, %v282_v3  ;;  %v279_v6 = vld [vmem:[%s261_s28 + $0x30] sm:$0xff]  ;;  %v278_v7 = vld [vmem:[%s261_s28 + $0x28] sm:$0xff]  ;;  %v277_v8 = vld [vmem:[%s261_s28 + $0x20] sm:$0xff]  ;;  %vm760_vm13 = vcmask 228352   ;;  %vm764_vm14 = vcmask 224256  }
  0x11   : > { %2307 = vmatpush1.msk.msra.mxu0 %vm293_vm0, %v281_v4  ;;  %v276_v9 = vld [vmem:[%s261_s28 + $0x18] sm:$0xff]  ;;  %v275_v10 = vld [vmem:[%s261_s28 + $0x10] sm:$0xff]  ;;  %v274_v11 = vld [vmem:[%s261_s28 + $0x8] sm:$0xff] }
  0x12   : > { %324 = vmatprep.subr.mxu0 %v280_v5  ;;  %v273_v12 = vld [vmem:[%s261_s28] sm:$0xff]  ;;  %v3009_v51 = vld [vmem:[%s3195_s5 + $0x8] sm:$0xff]  ;;  %s2439_s28 = sshll.u32 %s3198_s22, 8 }
  0x13   : > { %325 = vmatpush1.msra.mxu0 %v279_v6 }
  0x14   : > { %326 = vmatprep.subr.mxu0 %v278_v7 }
  0x15   : > { %327 = vmatpush1.msra.mxu0 %v277_v8 }
  0x16   : > { %328 = vmatprep.subr.mxu0 %v276_v9 }
  0x17   : > { %329 = vmatpush1.msra.mxu0 %v275_v10 }
  0x18   : > { %330 = vmatprep.subr.mxu0 %v274_v11 }
  0x19   : > { %331 = vmatpush1.msra.mxu0 %v273_v12 }
  0x1a   : > { %2308 = vmatmul.mubr.msk.f32.vlgmr.msra.gmra.mxu0 %vm289_vm1, %v272_v13 }
  0x1b   : > { %2541 = vmatprep.mubr.msk.f32.mxu0 %vm544_vm10, %v2811_v19 }
  0x88   : > { %v287_v14 = vpop.permute.xlu0 %286 }
  0xda   : > { %v366_v15 = vpop.f32.mrf.mxu0 }
  0xdb   : > { %v367_v16 = vadd.f32 %v366_v15, %v287_v14 }
  0xdc   : > { %v368_v17 = vpop.f32.mrf.mxu0 }
  0xdd   : > { %v369_v18 = vadd.f32 %v368_v17, %v287_v14  ;;  %406 = vrot.lane.b32.xlu1 %v367_v16, %s2730_s7  ;;  %395 = vrot.lane.b32.xlu0 %v367_v16, %s2731_s8  ;;  %372 = vst.msk [vmem:[#allocation2] sm:$0x1] %vm371_vm2, %v367_v16 }
  0xde   : > { %375 = vst.msk [vmem:[#allocation2 + $0xf] sm:$0x2] %vm374_vm3, %v367_v16 }
  0xdf   : > { %378 = vst.msk [vmem:[#allocation2 + $0x1e] sm:$0x4] %vm377_vm4, %v367_v16  ;;  %474 = vst.msk [vmem:[#allocation2 + $0x26] sm:$0x4] %vm377_vm4, %v369_v18 }
  0xe0   : > { %381 = vst.msk [vmem:[#allocation2 + $0x2d] sm:$0x8] %vm380_vm5, %v367_v16  ;;  %475 = vst.msk [vmem:[#allocation2 + $0x35] sm:$0x8] %vm380_vm5, %v369_v18 }
  0xe1   : > { %384 = vst.msk [vmem:[#allocation2 + $0x3c] sm:$0x10] %vm383_vm6, %v367_v16  ;;  %476 = vst.msk [vmem:[#allocation2 + $0x44] sm:$0x10] %vm383_vm6, %v369_v18  ;;  %428 = vrot.lane.b32.xlu1 %v367_v16, %s2732_s9  ;;  %417 = vrot.lane.b32.xlu0 %v367_v16, %s2733_s10 }
  0xe2   : > { %387 = vst.msk [vmem:[#allocation2 + $0x4b] sm:$0x20] %vm386_vm7, %v367_v16  ;;  %477 = vst.msk [vmem:[#allocation2 + $0x53] sm:$0x20] %vm386_vm7, %v369_v18 }
  0xe3   : > { %390 = vst.msk [vmem:[#allocation2 + $0x5a] sm:$0x40] %vm389_vm8, %v367_v16  ;;  %478 = vst.msk [vmem:[#allocation2 + $0x62] sm:$0x40] %vm389_vm8, %v369_v18 }
  0xe4   : > { %393 = vst.msk [vmem:[#allocation2 + $0x69] sm:$0x80] %vm392_vm9, %v367_v16  ;;  %479 = vst.msk [vmem:[#allocation2 + $0x71] sm:$0x80] %vm392_vm9, %v369_v18 }
  0xe5   : > { %472 = vst.msk [vmem:[#allocation2 + $0x8] sm:$0x1] %vm371_vm2, %v369_v18  ;;  %492 = vrot.lane.b32.xlu1 %v369_v18, %s2730_s7  ;;  %439 = vrot.lane.b32.xlu0 %v367_v16, %s2734_s11  ;;  %s3084_s7 = scalar_lea.vmem %s3191_s1, %s2439_s28 }
  0xe6   : > { %473 = vst.msk [vmem:[#allocation2 + $0x17] sm:$0x2] %vm374_vm3, %v369_v18 }
  0xe9   : > { %503 = vrot.lane.b32.xlu1 %v369_v18, %s2733_s10  ;;  %481 = vrot.lane.b32.xlu0 %v369_v18, %s2731_s8 }
  0xed   : > { %525 = vrot.lane.b32.xlu1 %v369_v18, %s2734_s11  ;;  %514 = vrot.lane.b32.xlu0 %v369_v18, %s2732_s9  ;;  %s3093_s9 = scalar_lea.vmem %s3196_s6, %s2439_s28 }
  0xf1   : > { %450 = vrot.lane.b32.xlu1 %v367_v16, %s2735_s16  ;;  %461 = vrot.lane.b32.xlu0 %v367_v16, %s2736_s17 }
 0x14f   : > { %v407_v21 = vpop.permute.xlu1 %406  ;;  %v396_v22 = vpop.permute.xlu0 %395 }
 0x150   : > { %409 = vst.msk [vmem:[#allocation2 + $0x2] sm:$0x1] %vm371_vm2, %v407_v21  ;;  %398 = vst.msk [vmem:[#allocation2 + $0x1] sm:$0x1] %vm371_vm2, %v396_v22 }
 0x151   : > { %410 = vst.msk [vmem:[#allocation2 + $0x11] sm:$0x2] %vm374_vm3, %v407_v21  ;;  %399 = vst.msk [vmem:[#allocation2 + $0x10] sm:$0x2] %vm374_vm3, %v396_v22 }
 0x152   : > { %411 = vst.msk [vmem:[#allocation2 + $0x20] sm:$0x4] %vm377_vm4, %v407_v21  ;;  %400 = vst.msk [vmem:[#allocation2 + $0x1f] sm:$0x4] %vm377_vm4, %v396_v22 }
 0x153   : > { %412 = vst.msk [vmem:[#allocation2 + $0x2f] sm:$0x8] %vm380_vm5, %v407_v21  ;;  %401 = vst.msk [vmem:[#allocation2 + $0x2e] sm:$0x8] %vm380_vm5, %v396_v22  ;;  %v429_v23 = vpop.permute.xlu1 %428  ;;  %v418_v24 = vpop.permute.xlu0 %417 }
 0x154   : > { %413 = vst.msk [vmem:[#allocation2 + $0x3e] sm:$0x10] %vm383_vm6, %v407_v21  ;;  %402 = vst.msk [vmem:[#allocation2 + $0x3d] sm:$0x10] %vm383_vm6, %v396_v22 }
 0x155   : > { %414 = vst.msk [vmem:[#allocation2 + $0x4d] sm:$0x20] %vm386_vm7, %v407_v21  ;;  %403 = vst.msk [vmem:[#allocation2 + $0x4c] sm:$0x20] %vm386_vm7, %v396_v22 }
 0x156   : > { %415 = vst.msk [vmem:[#allocation2 + $0x5c] sm:$0x40] %vm389_vm8, %v407_v21  ;;  %404 = vst.msk [vmem:[#allocation2 + $0x5b] sm:$0x40] %vm389_vm8, %v396_v22 }
 0x157   : > { %416 = vst.msk [vmem:[#allocation2 + $0x6b] sm:$0x80] %vm392_vm9, %v407_v21  ;;  %405 = vst.msk [vmem:[#allocation2 + $0x6a] sm:$0x80] %vm392_vm9, %v396_v22  ;;  %v493_v25 = vpop.permute.xlu1 %492  ;;  %v440_v26 = vpop.permute.xlu0 %439  ;;  %v745_v21 = vld [vmem:[%s3084_s7 + $0x8] sm:$0xff]  ;;  %v744_v22 = vld [vmem:[%s3084_s7] sm:$0xff] }
 0x158   : > { %431 = vst.msk [vmem:[#allocation2 + $0x4] sm:$0x1] %vm371_vm2, %v429_v23  ;;  %420 = vst.msk [vmem:[#allocation2 + $0x3] sm:$0x1] %vm371_vm2, %v418_v24 }
 0x159   : > { %432 = vst.msk [vmem:[#allocation2 + $0x13] sm:$0x2] %vm374_vm3, %v429_v23  ;;  %421 = vst.msk [vmem:[#allocation2 + $0x12] sm:$0x2] %vm374_vm3, %v418_v24 }
 0x15a   : > { %433 = vst.msk [vmem:[#allocation2 + $0x22] sm:$0x4] %vm377_vm4, %v429_v23  ;;  %422 = vst.msk [vmem:[#allocation2 + $0x21] sm:$0x4] %vm377_vm4, %v418_v24 }
 0x15b   : > { %434 = vst.msk [vmem:[#allocation2 + $0x31] sm:$0x8] %vm380_vm5, %v429_v23  ;;  %423 = vst.msk [vmem:[#allocation2 + $0x30] sm:$0x8] %vm380_vm5, %v418_v24  ;;  %v504_v27 = vpop.permute.xlu1 %503  ;;  %v482_v28 = vpop.permute.xlu0 %481 }
 0x15c   : > { %435 = vst.msk [vmem:[#allocation2 + $0x40] sm:$0x10] %vm383_vm6, %v429_v23  ;;  %424 = vst.msk [vmem:[#allocation2 + $0x3f] sm:$0x10] %vm383_vm6, %v418_v24 }
 0x15d   : > { %436 = vst.msk [vmem:[#allocation2 + $0x4f] sm:$0x20] %vm386_vm7, %v429_v23  ;;  %425 = vst.msk [vmem:[#allocation2 + $0x4e] sm:$0x20] %vm386_vm7, %v418_v24 }
 0x15e   : > { %437 = vst.msk [vmem:[#allocation2 + $0x5e] sm:$0x40] %vm389_vm8, %v429_v23  ;;  %426 = vst.msk [vmem:[#allocation2 + $0x5d] sm:$0x40] %vm389_vm8, %v418_v24 }
 0x15f   : > { %438 = vst.msk [vmem:[#allocation2 + $0x6d] sm:$0x80] %vm392_vm9, %v429_v23  ;;  %427 = vst.msk [vmem:[#allocation2 + $0x6c] sm:$0x80] %vm392_vm9, %v418_v24  ;;  %v526_v29 = vpop.permute.xlu1 %525  ;;  %v515_v30 = vpop.permute.xlu0 %514  ;;  %v749_v23 = vmul.f32 1.2, %v745_v21 }
 0x160   : > { %495 = vst.msk [vmem:[#allocation2 + $0xa] sm:$0x1] %vm371_vm2, %v493_v25  ;;  %442 = vst.msk [vmem:[#allocation2 + $0x5] sm:$0x1] %vm371_vm2, %v440_v26  ;;  %v747_v24 = vld [vmem:[%s3084_s7 + $0x18] sm:$0xf] }
 0x161   : > { %496 = vst.msk [vmem:[#allocation2 + $0x19] sm:$0x2] %vm374_vm3, %v493_v25  ;;  %443 = vst.msk [vmem:[#allocation2 + $0x14] sm:$0x2] %vm374_vm3, %v440_v26 }
 0x162   : > { %497 = vst.msk [vmem:[#allocation2 + $0x28] sm:$0x4] %vm377_vm4, %v493_v25  ;;  %444 = vst.msk [vmem:[#allocation2 + $0x23] sm:$0x4] %vm377_vm4, %v440_v26 }
 0x163   : > { %498 = vst.msk [vmem:[#allocation2 + $0x37] sm:$0x8] %vm380_vm5, %v493_v25  ;;  %445 = vst.msk [vmem:[#allocation2 + $0x32] sm:$0x8] %vm380_vm5, %v440_v26  ;;  %v451_v31 = vpop.permute.xlu1 %450  ;;  %v462_v32 = vpop.permute.xlu0 %461 }
 0x164   : > { %499 = vst.msk [vmem:[#allocation2 + $0x46] sm:$0x10] %vm383_vm6, %v493_v25  ;;  %446 = vst.msk [vmem:[#allocation2 + $0x41] sm:$0x10] %vm383_vm6, %v440_v26 }
 0x165   : > { %500 = vst.msk [vmem:[#allocation2 + $0x55] sm:$0x20] %vm386_vm7, %v493_v25  ;;  %447 = vst.msk [vmem:[#allocation2 + $0x50] sm:$0x20] %vm386_vm7, %v440_v26 }
 0x166   : > { %501 = vst.msk [vmem:[#allocation2 + $0x64] sm:$0x40] %vm389_vm8, %v493_v25  ;;  %448 = vst.msk [vmem:[#allocation2 + $0x5f] sm:$0x40] %vm389_vm8, %v440_v26 }
 0x167   : > { %502 = vst.msk [vmem:[#allocation2 + $0x73] sm:$0x80] %vm392_vm9, %v493_v25  ;;  %449 = vst.msk [vmem:[#allocation2 + $0x6e] sm:$0x80] %vm392_vm9, %v440_v26  ;;  %v748_v25 = vmul.f32 1.2, %v744_v22 }
 0x168   : > { %506 = vst.msk [vmem:[#allocation2 + $0xb] sm:$0x1] %vm371_vm2, %v504_v27  ;;  %484 = vst.msk [vmem:[#allocation2 + $0x9] sm:$0x1] %vm371_vm2, %v482_v28  ;;  %v2363_v22 = vld [vmem:[%s3084_s7 + $0x70] sm:$0xff] }
 0x169   : > { %507 = vst.msk [vmem:[#allocation2 + $0x1a] sm:$0x2] %vm374_vm3, %v504_v27  ;;  %485 = vst.msk [vmem:[#allocation2 + $0x18] sm:$0x2] %vm374_vm3, %v482_v28 }
 0x16a   : > { %508 = vst.msk [vmem:[#allocation2 + $0x29] sm:$0x4] %vm377_vm4, %v504_v27  ;;  %486 = vst.msk [vmem:[#allocation2 + $0x27] sm:$0x4] %vm377_vm4, %v482_v28 }
 0x16b   : > { %509 = vst.msk [vmem:[#allocation2 + $0x38] sm:$0x8] %vm380_vm5, %v504_v27  ;;  %487 = vst.msk [vmem:[#allocation2 + $0x36] sm:$0x8] %vm380_vm5, %v482_v28 }
 0x16c   : > { %510 = vst.msk [vmem:[#allocation2 + $0x47] sm:$0x10] %vm383_vm6, %v504_v27  ;;  %488 = vst.msk [vmem:[#allocation2 + $0x45] sm:$0x10] %vm383_vm6, %v482_v28 }
 0x16d   : > { %511 = vst.msk [vmem:[#allocation2 + $0x56] sm:$0x20] %vm386_vm7, %v504_v27  ;;  %489 = vst.msk [vmem:[#allocation2 + $0x54] sm:$0x20] %vm386_vm7, %v482_v28 }
 0x16e   : > { %512 = vst.msk [vmem:[#allocation2 + $0x65] sm:$0x40] %vm389_vm8, %v504_v27  ;;  %490 = vst.msk [vmem:[#allocation2 + $0x63] sm:$0x40] %vm389_vm8, %v482_v28 }
 0x16f   : > { %513 = vst.msk [vmem:[#allocation2 + $0x74] sm:$0x80] %vm392_vm9, %v504_v27  ;;  %491 = vst.msk [vmem:[#allocation2 + $0x72] sm:$0x80] %vm392_vm9, %v482_v28  ;;  %v746_v27 = vld [vmem:[%s3084_s7 + $0x10] sm:$0xff] }
 0x170   : > { %528 = vst.msk [vmem:[#allocation2 + $0xd] sm:$0x1] %vm371_vm2, %v526_v29  ;;  %517 = vst.msk [vmem:[#allocation2 + $0xc] sm:$0x1] %vm371_vm2, %v515_v30 }
 0x171   : > { %529 = vst.msk [vmem:[#allocation2 + $0x1c] sm:$0x2] %vm374_vm3, %v526_v29  ;;  %518 = vst.msk [vmem:[#allocation2 + $0x1b] sm:$0x2] %vm374_vm3, %v515_v30 }
 0x172   : > { %530 = vst.msk [vmem:[#allocation2 + $0x2b] sm:$0x4] %vm377_vm4, %v526_v29  ;;  %519 = vst.msk [vmem:[#allocation2 + $0x2a] sm:$0x4] %vm377_vm4, %v515_v30 }
 0x173   : > { %531 = vst.msk [vmem:[#allocation2 + $0x3a] sm:$0x8] %vm380_vm5, %v526_v29  ;;  %520 = vst.msk [vmem:[#allocation2 + $0x39] sm:$0x8] %vm380_vm5, %v515_v30 }
 0x174   : > { %532 = vst.msk [vmem:[#allocation2 + $0x49] sm:$0x10] %vm383_vm6, %v526_v29  ;;  %521 = vst.msk [vmem:[#allocation2 + $0x48] sm:$0x10] %vm383_vm6, %v515_v30 }
 0x175   : > { %533 = vst.msk [vmem:[#allocation2 + $0x58] sm:$0x20] %vm386_vm7, %v526_v29  ;;  %522 = vst.msk [vmem:[#allocation2 + $0x57] sm:$0x20] %vm386_vm7, %v515_v30 }
 0x176   : > { %534 = vst.msk [vmem:[#allocation2 + $0x67] sm:$0x40] %vm389_vm8, %v526_v29  ;;  %523 = vst.msk [vmem:[#allocation2 + $0x66] sm:$0x40] %vm389_vm8, %v515_v30 }
 0x177   : > { %535 = vst.msk [vmem:[#allocation2 + $0x76] sm:$0x80] %vm392_vm9, %v526_v29  ;;  %524 = vst.msk [vmem:[#allocation2 + $0x75] sm:$0x80] %vm392_vm9, %v515_v30  ;;  %v543_v33 = vld [vmem:[#allocation2 + $0x8] sm:$0x3f] }
 0x178   : > { %453 = vst.msk [vmem:[#allocation2 + $0x6] sm:$0x1] %vm371_vm2, %v451_v31  ;;  %464 = vst.msk [vmem:[#allocation2 + $0x7] sm:$0x1] %vm371_vm2, %v462_v32  ;;  %2537 = vmatprep.subr.msk.mxu0 %vm557_vm11, %v543_v33  ;;  %2697 = vmatprep.subr.msk.mxu1 %vm557_vm11, %v543_v33  ;;  %v767_v37 = vld [vmem:[#allocation2 + $0x18] sm:$0x3f] }
 0x179   : > { %454 = vst.msk [vmem:[#allocation2 + $0x15] sm:$0x2] %vm374_vm3, %v451_v31  ;;  %465 = vst.msk [vmem:[#allocation2 + $0x16] sm:$0x2] %vm374_vm3, %v462_v32  ;;  %2538 = vmatpush3.msk.msra.mxu0 %vm557_vm11, %v543_v33  ;;  %2699 = vmatpush3.msk.msra.mxu1 %vm557_vm11, %v543_v33  ;;  %v976_v39 = vld [vmem:[#allocation2 + $0x28] sm:$0x3f] }
 0x17a   : > { %455 = vst.msk [vmem:[#allocation2 + $0x24] sm:$0x4] %vm377_vm4, %v451_v31  ;;  %466 = vst.msk [vmem:[#allocation2 + $0x25] sm:$0x4] %vm377_vm4, %v462_v32  ;;  %v1185_v41 = vld [vmem:[#allocation2 + $0x38] sm:$0x3f] }
 0x17b   : > { %456 = vst.msk [vmem:[#allocation2 + $0x33] sm:$0x8] %vm380_vm5, %v451_v31  ;;  %467 = vst.msk [vmem:[#allocation2 + $0x34] sm:$0x8] %vm380_vm5, %v462_v32  ;;  %v1394_v43 = vld [vmem:[#allocation2 + $0x48] sm:$0x3f] }
 0x17c   : > { %457 = vst.msk [vmem:[#allocation2 + $0x42] sm:$0x10] %vm383_vm6, %v451_v31  ;;  %468 = vst.msk [vmem:[#allocation2 + $0x43] sm:$0x10] %vm383_vm6, %v462_v32  ;;  %v1603_v45 = vld [vmem:[#allocation2 + $0x58] sm:$0x3f] }
 0x17d   : > { %458 = vst.msk [vmem:[#allocation2 + $0x51] sm:$0x20] %vm386_vm7, %v451_v31  ;;  %469 = vst.msk [vmem:[#allocation2 + $0x52] sm:$0x20] %vm386_vm7, %v462_v32  ;;  %v1812_v47 = vld [vmem:[#allocation2 + $0x68] sm:$0x3f] }
 0x17e   : > { %459 = vst.msk [vmem:[#allocation2 + $0x60] sm:$0x40] %vm389_vm8, %v451_v31  ;;  %470 = vst.msk [vmem:[#allocation2 + $0x61] sm:$0x40] %vm389_vm8, %v462_v32  ;;  %v2021_v49 = vld [vmem:[#allocation2 + $0x78] sm:$0x3f] }
 0x17f   : > { %460 = vst.msk [vmem:[#allocation2 + $0x6f] sm:$0x80] %vm392_vm9, %v451_v31  ;;  %471 = vst.msk [vmem:[#allocation2 + $0x70] sm:$0x80] %vm392_vm9, %v462_v32  ;;  %v542_v34 = vld [vmem:[#allocation2] sm:$0xff]  ;;  %v2328_v31 = vld [vmem:[%s3084_s7 + $0x28] sm:$0xff] }
 0x180   : > { %2539 = vmatprep.subr.mxu0 %v542_v34  ;;  %2698 = vmatprep.subr.mxu1 %v542_v34  ;;  %v766_v38 = vld [vmem:[#allocation2 + $0x10] sm:$0xff]  ;;  %v751_v29 = vmul.f32 1.2, %v747_v24 }
 0x181   : > { %2540 = vmatpush3.msra.mxu0 %v542_v34  ;;  %2700 = vmatpush3.msra.mxu1 %v542_v34  ;;  %v975_v40 = vld [vmem:[#allocation2 + $0x20] sm:$0xff]  ;;  %v750_v34 = vmul.f32 1.2, %v746_v27  ;;  %v2379_v27 = vld [vmem:[%s3084_s7 + $0x88] sm:$0xff] }
 0x182   : > { %2542 = vmatmul.mubr.msk.f32.vlgmr.msra.gmra.mxu0 %vm544_vm10, %v2925_v35  ;;  %2557 = vmatprep.subr.msk.mxu0 %vm557_vm11, %v767_v37  ;;  %v1184_v42 = vld [vmem:[#allocation2 + $0x30] sm:$0xff] }
 0x183   : > { %2558 = vmatpush3.msk.msra.mxu0 %vm557_vm11, %v767_v37  ;;  %2545 = vmatmul.mubr.msk.f32.vlgmr.msra.gmra.mxu1 %vm544_vm10, %v2930_v36  ;;  %v1393_v44 = vld [vmem:[#allocation2 + $0x40] sm:$0xff] }
 0x184   : > { %2559 = vmatprep.subr.mxu0 %v766_v38  ;;  %2561 = vmatprep.mubr.msk.f32.mxu0 %vm544_vm10, %v2811_v19  ;;  %v1602_v46 = vld [vmem:[#allocation2 + $0x50] sm:$0xff] }
 0x185   : > { %2560 = vmatpush3.msra.mxu0 %v766_v38  ;;  %v1811_v48 = vld [vmem:[#allocation2 + $0x60] sm:$0xff]  ;;  %2547 = vmatprep.subr.mxu1 %v3009_v51 }
 0x186   : > { %2562 = vmatmul.mubr.msk.f32.vlgmr.msra.gmra.mxu0 %vm544_vm10, %v2925_v35  ;;  %2577 = vmatprep.subr.msk.mxu0 %vm557_vm11, %v976_v39  ;;  %v2020_v50 = vld [vmem:[#allocation2 + $0x70] sm:$0xff] }
 0x187   : > { %2578 = vmatpush3.msk.msra.mxu0 %vm557_vm11, %v976_v39  ;;  %2564 = vmatprep.mubr.msk.f32.mxu0 %vm544_vm10, %v2818_v20  ;;  %v959_v39 = vmul.f32 1.2, %v2328_v31 }
 0x188   : > { %2579 = vmatprep.subr.mxu0 %v975_v40  ;;  %2548 = vmatpush3.msra.mxu1 %v3009_v51 }
 0x189   : > { %2580 = vmatpush3.msra.mxu0 %v975_v40  ;;  %2549 = vmatprep.subr.mxu1 %v3016_v52 }
 0x18a   : > { %2565 = vmatmul.mubr.msk.f32.gmra.mxu0 %vm544_vm10, %v2930_v36  ;;  %2597 = vmatprep.subr.msk.mxu0 %vm557_vm11, %v1185_v41 }
 0x18b   : > { %2581 = vmatprep.mubr.msk.f32.mxu0 %vm544_vm10, %v2811_v19  ;;  %2550 = vmatpush3.msra.mxu1 %v3016_v52 }
 0x18c   : > { %2567 = vmatprep.subr.mxu1 %v3009_v51 }
 0x18e   : > { %2582 = vmatmul.mubr.msk.f32.vlgmr.msra.gmra.mxu0 %vm544_vm10, %v2925_v35 }
 0x18f   : > { %2598 = vmatpush3.msk.msra.mxu0 %vm557_vm11, %v1185_v41  ;;  %2584 = vmatprep.mubr.msk.f32.mxu0 %vm544_vm10, %v2818_v20  ;;  %v2330_v41 = vld [vmem:[%s3084_s7 + $0x38] sm:$0xf] }
 0x190   : > { %2599 = vmatprep.subr.mxu0 %v1184_v42 }
 0x191   : > { %2600 = vmatpush3.msra.mxu0 %v1184_v42 }
 0x192   : > { %2617 = vmatprep.subr.msk.mxu0 %vm557_vm11, %v1394_v43  ;;  %2585 = vmatmul.mubr.msk.f32.gmra.mxu0 %vm544_vm10, %v2930_v36 }
 0x193   : > { %2601 = vmatprep.mubr.msk.f32.mxu0 %vm544_vm10, %v2811_v19 }
 0x196   : > { %2602 = vmatmul.mubr.msk.f32.vlgmr.msra.gmra.mxu0 %vm544_vm10, %v2925_v35 }
 0x197   : > { %2618 = vmatpush3.msk.msra.mxu0 %vm557_vm11, %v1394_v43  ;;  %2604 = vmatprep.mubr.msk.f32.mxu0 %vm544_vm10, %v2818_v20 }
 0x198   : > { %2619 = vmatprep.subr.mxu0 %v1393_v44 }
 0x199   : > { %2620 = vmatpush3.msra.mxu0 %v1393_v44 }
 0x19a   : > { %2637 = vmatprep.subr.msk.mxu0 %vm557_vm11, %v1603_v45  ;;  %2605 = vmatmul.mubr.msk.f32.gmra.mxu0 %vm544_vm10, %v2930_v36 }
 0x19b   : > { %2621 = vmatprep.mubr.msk.f32.mxu0 %vm544_vm10, %v2811_v19 }
 0x19e   : > { %2622 = vmatmul.mubr.msk.f32.vlgmr.msra.gmra.mxu0 %vm544_vm10, %v2925_v35 }
 0x19f   : > { %2638 = vmatpush3.msk.msra.mxu0 %vm557_vm11, %v1603_v45  ;;  %2624 = vmatprep.mubr.msk.f32.mxu0 %vm544_vm10, %v2818_v20 }
 0x1a0   : > { %2639 = vmatprep.subr.mxu0 %v1602_v46 }
 0x1a1   : > { %2640 = vmatpush3.msra.mxu0 %v1602_v46  ;;  %v2329_v46 = vld [vmem:[%s3084_s7 + $0x30] sm:$0xff] }
 0x1a2   : > { %2657 = vmatprep.subr.msk.mxu0 %vm557_vm11, %v1812_v47  ;;  %2625 = vmatmul.mubr.msk.f32.gmra.mxu0 %vm544_vm10, %v2930_v36 }
 0x1a3   : > { %2641 = vmatprep.mubr.msk.f32.mxu0 %vm544_vm10, %v2811_v19 }
 0x1a6   : > { %2642 = vmatmul.mubr.msk.f32.vlgmr.msra.gmra.mxu0 %vm544_vm10, %v2925_v35 }
 0x1a7   : > { %2658 = vmatpush3.msk.msra.mxu0 %vm557_vm11, %v1812_v47  ;;  %2644 = vmatprep.mubr.msk.f32.mxu0 %vm544_vm10, %v2818_v20 }
 0x1a8   : > { %2659 = vmatprep.subr.mxu0 %v1811_v48 }
 0x1a9   : > { %2660 = vmatpush3.msra.mxu0 %v1811_v48 }
 0x1aa   : > { %2677 = vmatprep.subr.msk.mxu0 %vm557_vm11, %v2021_v49  ;;  %2645 = vmatmul.mubr.msk.f32.gmra.mxu0 %vm544_vm10, %v2930_v36 }
 0x1ab   : > { %2661 = vmatprep.mubr.msk.f32.mxu0 %vm544_vm10, %v2811_v19 }
 0x1ae   : > { %2662 = vmatmul.mubr.msk.f32.vlgmr.msra.gmra.mxu0 %vm544_vm10, %v2925_v35 }
 0x1af   : > { %2678 = vmatpush3.msk.msra.mxu0 %vm557_vm11, %v2021_v49  ;;  %2664 = vmatprep.mubr.msk.f32.mxu0 %vm544_vm10, %v2818_v20  ;;  %v961_v49 = vmul.f32 1.2, %v2330_v41 }
 0x1b0   : > { %2679 = vmatprep.subr.mxu0 %v2020_v50 }
 0x1b1   : > { %2680 = vmatpush3.msra.mxu0 %v2020_v50 }
 0x1b2   : > { %2665 = vmatmul.mubr.msk.f32.gmra.mxu0 %vm544_vm10, %v2930_v36 }
 0x1b3   : > { %2681 = vmatprep.mubr.msk.f32.mxu0 %vm544_vm10, %v2811_v19 }
 0x1b6   : > { %2682 = vmatmul.mubr.msk.f32.vlgmr.msra.gmra.mxu0 %vm544_vm10, %v2925_v35 }
 0x1b7   : > { %2684 = vmatprep.mubr.msk.f32.mxu0 %vm544_vm10, %v2818_v20 }
 0x1ba   : > { %2685 = vmatmul.mubr.msk.f32.gmra.mxu0 %vm544_vm10, %v2930_v36  ;;  %v2327_v36 = vld [vmem:[%s3084_s7 + $0x20] sm:$0xff] }
 0x1bb   : > { %v958_v44 = vmul.f32 1.2, %v2327_v36 }
 0x242   : > { %v2543_v53 = vpop.f32.mrf.mxu0 }
 0x243   : > { %v2546_v54 = vpop.f32.mrf.mxu1 }
 0x244   : > { %v627_v55 = vpop.f32.mrf.mxu0 }
 0x245   : > { %2551 = vmatprep.mubr.msk.f32.mxu1 %vm646_vm12, %v627_v55  ;;  %v637_v56 = vpop.f32.mrf.mxu1 }
 0x246   : > { %2552 = vmatmul.mubr.msk.f32.vlgmr.msra.gmra.mxu1 %vm646_vm12, %v2543_v53  ;;  %v2563_v57 = vpop.f32.mrf.mxu0 }
 0x247   : > { %2568 = vmatpush3.msra.mxu1 %v3009_v51  ;;  %2554 = vmatprep.mubr.msk.f32.mxu1 %vm646_vm12, %v637_v56  ;;  %v2344_v56 = vld [vmem:[%s3084_s7 + $0x40] sm:$0xff] }
 0x248   : > { %2569 = vmatprep.subr.mxu1 %v3016_v52  ;;  %v837_v58 = vpop.f32.mrf.mxu0 }
 0x249   : > { %2570 = vmatpush3.msra.mxu1 %v3016_v52 }
 0x24a   : > { %2555 = vmatmul.mubr.msk.f32.gmra.mxu1 %vm646_vm12, %v2546_v54  ;;  %v2566_v59 = vpop.f32.mrf.mxu0  ;;  %2587 = vmatprep.subr.mxu1 %v3009_v51  ;;  %v960_v54 = vmul.f32 1.2, %v2329_v46 }
 0x24b   : > { %2571 = vmatprep.mubr.msk.f32.mxu1 %vm646_vm12, %v837_v58 }
 0x24c   : > { %v847_v60 = vpop.f32.mrf.mxu0 }
 0x24e   : > { %2572 = vmatmul.mubr.msk.f32.vlgmr.msra.gmra.mxu1 %vm646_vm12, %v2563_v57  ;;  %v2583_v61 = vpop.f32.mrf.mxu0 }
 0x24f   : > { %2588 = vmatpush3.msra.mxu1 %v3009_v51  ;;  %2574 = vmatprep.mubr.msk.f32.mxu1 %vm646_vm12, %v847_v60 }
 0x250   : > { %2589 = vmatprep.subr.mxu1 %v3016_v52  ;;  %v1046_v62 = vpop.f32.mrf.mxu0 }
 0x251   : > { %2590 = vmatpush3.msra.mxu1 %v3016_v52 }
 0x252   : > { %2575 = vmatmul.mubr.msk.f32.gmra.mxu1 %vm646_vm12, %v2566_v59  ;;  %v2586_v63 = vpop.f32.mrf.mxu0  ;;  %2607 = vmatprep.subr.mxu1 %v3009_v51 }
 0x253   : > { %2591 = vmatprep.mubr.msk.f32.mxu1 %vm646_vm12, %v1046_v62 }
 0x254   : > { %v1056_v0 = vpop.f32.mrf.mxu0 }
 0x256   : > { %2592 = vmatmul.mubr.msk.f32.vlgmr.msra.gmra.mxu1 %vm646_vm12, %v2583_v61  ;;  %v2603_v1 = vpop.f32.mrf.mxu0  ;;  %v2347_v61 = vld [vmem:[%s3084_s7 + $0x58] sm:$0xf] }
 0x257   : > { %2608 = vmatpush3.msra.mxu1 %v3009_v51  ;;  %2594 = vmatprep.mubr.msk.f32.mxu1 %vm646_vm12, %v1056_v0  ;;  %v1167_v0 = vmul.f32 1.2, %v2344_v56 }
 0x258   : > { %2609 = vmatprep.subr.mxu1 %v3016_v52  ;;  %v1255_v2 = vpop.f32.mrf.mxu0 }
 0x259   : > { %2610 = vmatpush3.msra.mxu1 %v3016_v52 }
 0x25a   : > { %2595 = vmatmul.mubr.msk.f32.gmra.mxu1 %vm646_vm12, %v2586_v63  ;;  %v2606_v3 = vpop.f32.mrf.mxu0  ;;  %2627 = vmatprep.subr.mxu1 %v3009_v51 }
 0x25b   : > { %2611 = vmatprep.mubr.msk.f32.mxu1 %vm646_vm12, %v1255_v2  ;;  %v2346_v2 = vld [vmem:[%s3084_s7 + $0x50] sm:$0xff] }
 0x25c   : > { %v1265_v4 = vpop.f32.mrf.mxu0 }
 0x25e   : > { %2612 = vmatmul.mubr.msk.f32.vlgmr.msra.gmra.mxu1 %vm646_vm12, %v2603_v1  ;;  %v2623_v5 = vpop.f32.mrf.mxu0 }
 0x25f   : > { %2628 = vmatpush3.msra.mxu1 %v3009_v51  ;;  %2614 = vmatprep.mubr.msk.f32.mxu1 %vm646_vm12, %v1265_v4 }
 0x260   : > { %2629 = vmatprep.subr.mxu1 %v3016_v52  ;;  %v1464_v6 = vpop.f32.mrf.mxu0 }
 0x261   : > { %2630 = vmatpush3.msra.mxu1 %v3016_v52 }
 0x262   : > { %2615 = vmatmul.mubr.msk.f32.gmra.mxu1 %vm646_vm12, %v2606_v3  ;;  %v2626_v7 = vpop.f32.mrf.mxu0  ;;  %2647 = vmatprep.subr.mxu1 %v3009_v51 }
 0x263   : > { %2631 = vmatprep.mubr.msk.f32.mxu1 %vm646_vm12, %v1464_v6 }
 0x264   : > { %v1474_v8 = vpop.f32.mrf.mxu0 }
 0x266   : > { %2632 = vmatmul.mubr.msk.f32.vlgmr.msra.gmra.mxu1 %vm646_vm12, %v2623_v5  ;;  %v2643_v9 = vpop.f32.mrf.mxu0  ;;  %v1170_v5 = vmul.f32 1.2, %v2347_v61 }
 0x267   : > { %2648 = vmatpush3.msra.mxu1 %v3009_v51  ;;  %2634 = vmatprep.mubr.msk.f32.mxu1 %vm646_vm12, %v1474_v8 }
 0x268   : > { %2649 = vmatprep.subr.mxu1 %v3016_v52  ;;  %v1673_v10 = vpop.f32.mrf.mxu0 }
 0x269   : > { %2650 = vmatpush3.msra.mxu1 %v3016_v52 }
 0x26a   : > { %2635 = vmatmul.mubr.msk.f32.gmra.mxu1 %vm646_vm12, %v2626_v7  ;;  %v2646_v11 = vpop.f32.mrf.mxu0  ;;  %2667 = vmatprep.subr.mxu1 %v3009_v51  ;;  %v2362_v7 = vld [vmem:[%s3084_s7 + $0x68] sm:$0xff] }
 0x26b   : > { %2651 = vmatprep.mubr.msk.f32.mxu1 %vm646_vm12, %v1673_v10  ;;  %v1169_v10 = vmul.f32 1.2, %v2346_v2 }
 0x26c   : > { %v1683_v12 = vpop.f32.mrf.mxu0 }
 0x26e   : > { %2652 = vmatmul.mubr.msk.f32.vlgmr.msra.gmra.mxu1 %vm646_vm12, %v2643_v9  ;;  %v2663_v13 = vpop.f32.mrf.mxu0 }
 0x26f   : > { %2668 = vmatpush3.msra.mxu1 %v3009_v51  ;;  %2654 = vmatprep.mubr.msk.f32.mxu1 %vm646_vm12, %v1683_v12  ;;  %v2361_v12 = vld [vmem:[%s3084_s7 + $0x60] sm:$0xff] }
 0x270   : > { %2669 = vmatprep.subr.mxu1 %v3016_v52  ;;  %v1882_v14 = vpop.f32.mrf.mxu0 }
 0x271   : > { %2670 = vmatpush3.msra.mxu1 %v3016_v52 }
 0x272   : > { %2655 = vmatmul.mubr.msk.f32.gmra.mxu1 %vm646_vm12, %v2646_v11  ;;  %v2666_v15 = vpop.f32.mrf.mxu0  ;;  %2687 = vmatprep.subr.mxu1 %v3009_v51 }
 0x273   : > { %2671 = vmatprep.mubr.msk.f32.mxu1 %vm646_vm12, %v1882_v14 }
 0x274   : > { %v1892_v16 = vpop.f32.mrf.mxu0 }
 0x276   : > { %2672 = vmatmul.mubr.msk.f32.vlgmr.msra.gmra.mxu1 %vm646_vm12, %v2663_v13  ;;  %v2683_v17 = vpop.f32.mrf.mxu0 }
 0x277   : > { %2688 = vmatpush3.msra.mxu1 %v3009_v51  ;;  %2674 = vmatprep.mubr.msk.f32.mxu1 %vm646_vm12, %v1892_v16  ;;  %v2345_v51 = vld [vmem:[%s3084_s7 + $0x48] sm:$0xff] }
 0x278   : > { %2689 = vmatprep.subr.mxu1 %v3016_v52  ;;  %v2091_v18 = vpop.f32.mrf.mxu0  ;;  %v1168_v59 = vmul.f32 1.2, %v2345_v51 }
 0x279   : > { %2690 = vmatpush3.msra.mxu1 %v3016_v52 }
 0x27a   : > { %2675 = vmatmul.mubr.msk.f32.gmra.mxu1 %vm646_vm12, %v2666_v15  ;;  %v2686_v19 = vpop.f32.mrf.mxu0  ;;  %v1377_v15 = vmul.f32 1.2, %v2362_v7 }
 0x27b   : > { %2691 = vmatprep.mubr.msk.f32.mxu1 %vm646_vm12, %v2091_v18 }
 0x27c   : > { %v2101_v20 = vpop.f32.mrf.mxu0 }
 0x27e   : > { %2692 = vmatmul.mubr.msk.f32.vlgmr.msra.gmra.mxu1 %vm646_vm12, %v2683_v17  ;;  %v2364_v17 = vld [vmem:[%s3084_s7 + $0x78] sm:$0xf] }
 0x27f   : > { %2694 = vmatprep.mubr.msk.f32.mxu1 %vm646_vm12, %v2101_v20  ;;  %v1376_v20 = vmul.f32 1.2, %v2361_v12 }
 0x282   : > { %2695 = vmatmul.mubr.msk.f32.gmra.mxu1 %vm646_vm12, %v2686_v19 }
 0x306   : > { %v2553_v26 = vpop.f32.mrf.mxu1 }
 0x307   : > { %v753_v28 = vadd.f32 %v2553_v26, %v749_v23 }
 0x308   : > { %v725_v30 = vpop.f32.mrf.mxu1 }
 0x309   : > { %v757_v32 = vmax.f32 %v753_v28, 0.0  ;;  %v752_v33 = vadd.f32 %v748_v25, %v725_v30  ;;  %v1379_v25 = vmul.f32 1.2, %v2364_v17  ;;  %v1378_v30 = vmul.f32 1.2, %v2363_v22 }
 0x30a   : > { %v2556_v35 = vpop.f32.mrf.mxu1 }
 0x30b   : > { %762 = vst.msk [vmem:[%s3093_s9 + $0x8] sm:$0xff] %vm760_vm13, %v757_v32  ;;  %v756_v37 = vmax.f32 %v752_v33, 0.0  ;;  %v755_v38 = vadd.f32 %v2556_v35, %v751_v29  ;;  %v2378_v32 = vld [vmem:[%s3084_s7 + $0x80] sm:$0xff]  ;;  %v1586_v35 = vmul.f32 1.2, %v2379_v27 }
 0x30c   : > { %v735_v40 = vpop.f32.mrf.mxu1 }
 0x30d   : > { %761 = vst.msk [vmem:[%s3093_s9] sm:$0xff] %vm760_vm13, %v756_v37  ;;  %v759_v42 = vmax.f32 %v755_v38, 0.0  ;;  %v754_v43 = vadd.f32 %v750_v34, %v735_v40  ;;  %v2381_v37 = vld [vmem:[%s3084_s7 + $0x98] sm:$0xf]  ;;  %v1585_v40 = vmul.f32 1.2, %v2378_v32 }
 0x30e   : > { %v2573_v45 = vpop.f32.mrf.mxu1 }
 0x30f   : > { %765 = vst.msk [vmem:[%s3093_s9 + $0x18] sm:$0xf] %vm764_vm14, %v759_v42  ;;  %v758_v47 = vmax.f32 %v754_v43, 0.0  ;;  %v963_v48 = vadd.f32 %v2573_v45, %v959_v39  ;;  %v2380_v42 = vld [vmem:[%s3084_s7 + $0x90] sm:$0xff]  ;;  %v1588_v45 = vmul.f32 1.2, %v2381_v37 }
 0x310   : > { %v934_v50 = vpop.f32.mrf.mxu1 }
 0x311   : > { %763 = vst.msk [vmem:[%s3093_s9 + $0x10] sm:$0xff] %vm760_vm13, %v758_v47  ;;  %v967_v52 = vmax.f32 %v963_v48, 0.0  ;;  %v962_v53 = vadd.f32 %v958_v44, %v934_v50  ;;  %v2396_v47 = vld [vmem:[%s3084_s7 + $0xa8] sm:$0xff]  ;;  %v1587_v50 = vmul.f32 1.2, %v2380_v42 }
 0x312   : > { %v2576_v55 = vpop.f32.mrf.mxu1 }
 0x313   : > { %2332 = vst.msk [vmem:[%s3093_s9 + $0x28] sm:$0xff] %vm760_vm13, %v967_v52  ;;  %v966_v57 = vmax.f32 %v962_v53, 0.0  ;;  %v965_v58 = vadd.f32 %v2576_v55, %v961_v49  ;;  %v2395_v52 = vld [vmem:[%s3084_s7 + $0xa0] sm:$0xff]  ;;  %v1795_v55 = vmul.f32 1.2, %v2396_v47 }
 0x314   : > { %v944_v60 = vpop.f32.mrf.mxu1 }
 0x315   : > { %2331 = vst.msk [vmem:[%s3093_s9 + $0x20] sm:$0xff] %vm760_vm13, %v966_v57  ;;  %v969_v62 = vmax.f32 %v965_v58, 0.0  ;;  %v964_v63 = vadd.f32 %v960_v54, %v944_v60  ;;  %v2398_v57 = vld [vmem:[%s3084_s7 + $0xb8] sm:$0xf]  ;;  %v1794_v60 = vmul.f32 1.2, %v2395_v52 }
 0x316   : > { %v2593_v1 = vpop.f32.mrf.mxu1 }
 0x317   : > { %2334 = vst.msk [vmem:[%s3093_s9 + $0x38] sm:$0xf] %vm764_vm14, %v969_v62  ;;  %v968_v3 = vmax.f32 %v964_v63, 0.0  ;;  %v1172_v4 = vadd.f32 %v2593_v1, %v1168_v59  ;;  %v2397_v62 = vld [vmem:[%s3084_s7 + $0xb0] sm:$0xff]  ;;  %v1797_v1 = vmul.f32 1.2, %v2398_v57 }
 0x318   : > { %v1143_v6 = vpop.f32.mrf.mxu1 }
 0x319   : > { %2333 = vst.msk [vmem:[%s3093_s9 + $0x30] sm:$0xff] %vm760_vm13, %v968_v3  ;;  %v1176_v8 = vmax.f32 %v1172_v4, 0.0  ;;  %v1171_v9 = vadd.f32 %v1167_v0, %v1143_v6  ;;  %v2413_v3 = vld [vmem:[%s3084_s7 + $0xc8] sm:$0xff]  ;;  %v1796_v6 = vmul.f32 1.2, %v2397_v62 }
 0x31a   : > { %v2596_v11 = vpop.f32.mrf.mxu1 }
 0x31b   : > { %2349 = vst.msk [vmem:[%s3093_s9 + $0x48] sm:$0xff] %vm760_vm13, %v1176_v8  ;;  %v1175_v13 = vmax.f32 %v1171_v9, 0.0  ;;  %v1174_v14 = vadd.f32 %v2596_v11, %v1170_v5  ;;  %v2412_v8 = vld [vmem:[%s3084_s7 + $0xc0] sm:$0xff]  ;;  %v2004_v11 = vmul.f32 1.2, %v2413_v3 }
 0x31c   : > { %v1153_v16 = vpop.f32.mrf.mxu1 }
 0x31d   : > { %2348 = vst.msk [vmem:[%s3093_s9 + $0x40] sm:$0xff] %vm760_vm13, %v1175_v13  ;;  %v1178_v18 = vmax.f32 %v1174_v14, 0.0  ;;  %v1173_v19 = vadd.f32 %v1169_v10, %v1153_v16  ;;  %v2415_v13 = vld [vmem:[%s3084_s7 + $0xd8] sm:$0xf]  ;;  %v2003_v16 = vmul.f32 1.2, %v2412_v8 }
 0x31e   : > { %v2613_v21 = vpop.f32.mrf.mxu1 }
 0x31f   : > { %2351 = vst.msk [vmem:[%s3093_s9 + $0x58] sm:$0xf] %vm764_vm14, %v1178_v18  ;;  %v1177_v23 = vmax.f32 %v1173_v19, 0.0  ;;  %v1381_v24 = vadd.f32 %v2613_v21, %v1377_v15  ;;  %v2414_v18 = vld [vmem:[%s3084_s7 + $0xd0] sm:$0xff]  ;;  %v2006_v21 = vmul.f32 1.2, %v2415_v13 }
 0x320   : > { %v1352_v26 = vpop.f32.mrf.mxu1 }
 0x321   : > { %2350 = vst.msk [vmem:[%s3093_s9 + $0x50] sm:$0xff] %vm760_vm13, %v1177_v23  ;;  %v1385_v28 = vmax.f32 %v1381_v24, 0.0  ;;  %v1380_v29 = vadd.f32 %v1376_v20, %v1352_v26  ;;  %v2430_v23 = vld [vmem:[%s3084_s7 + $0xe8] sm:$0xff]  ;;  %v2005_v26 = vmul.f32 1.2, %v2414_v18 }
 0x322   : > { %v2616_v31 = vpop.f32.mrf.mxu1 }
 0x323   : > { %2366 = vst.msk [vmem:[%s3093_s9 + $0x68] sm:$0xff] %vm760_vm13, %v1385_v28  ;;  %v1384_v33 = vmax.f32 %v1380_v29, 0.0  ;;  %v1383_v34 = vadd.f32 %v2616_v31, %v1379_v25  ;;  %v2429_v28 = vld [vmem:[%s3084_s7 + $0xe0] sm:$0xff]  ;;  %v2213_v31 = vmul.f32 1.2, %v2430_v23 }
 0x324   : > { %v1362_v36 = vpop.f32.mrf.mxu1 }
 0x325   : > { %2365 = vst.msk [vmem:[%s3093_s9 + $0x60] sm:$0xff] %vm760_vm13, %v1384_v33  ;;  %v1387_v38 = vmax.f32 %v1383_v34, 0.0  ;;  %v1382_v39 = vadd.f32 %v1378_v30, %v1362_v36  ;;  %v2432_v33 = vld [vmem:[%s3084_s7 + $0xf8] sm:$0xf]  ;;  %v2212_v36 = vmul.f32 1.2, %v2429_v28 }
 0x326   : > { %v2633_v41 = vpop.f32.mrf.mxu1 }
 0x327   : > { %2368 = vst.msk [vmem:[%s3093_s9 + $0x78] sm:$0xf] %vm764_vm14, %v1387_v38  ;;  %v1386_v43 = vmax.f32 %v1382_v39, 0.0  ;;  %v1590_v44 = vadd.f32 %v2633_v41, %v1586_v35  ;;  %v2431_v38 = vld [vmem:[%s3084_s7 + $0xf0] sm:$0xff]  ;;  %v2215_v41 = vmul.f32 1.2, %v2432_v33 }
 0x328   : > { %v1561_v46 = vpop.f32.mrf.mxu1 }
 0x329   : > { %2367 = vst.msk [vmem:[%s3093_s9 + $0x70] sm:$0xff] %vm760_vm13, %v1386_v43  ;;  %v1594_v48 = vmax.f32 %v1590_v44, 0.0  ;;  %v1589_v49 = vadd.f32 %v1585_v40, %v1561_v46 }
 0x32a   : > { %v2636_v51 = vpop.f32.mrf.mxu1 }
 0x32b   : > { %2383 = vst.msk [vmem:[%s3093_s9 + $0x88] sm:$0xff] %vm760_vm13, %v1594_v48  ;;  %v1593_v53 = vmax.f32 %v1589_v49, 0.0  ;;  %v1592_v54 = vadd.f32 %v2636_v51, %v1588_v45  ;;  %v2214_v45 = vmul.f32 1.2, %v2431_v38 }
 0x32c   : > { %v1571_v56 = vpop.f32.mrf.mxu1 }
 0x32d   : > { %2382 = vst.msk [vmem:[%s3093_s9 + $0x80] sm:$0xff] %vm760_vm13, %v1593_v53  ;;  %v1596_v58 = vmax.f32 %v1592_v54, 0.0  ;;  %v1591_v59 = vadd.f32 %v1587_v50, %v1571_v56 }
 0x32e   : > { %v2653_v61 = vpop.f32.mrf.mxu1 }
 0x32f   : > { %2385 = vst.msk [vmem:[%s3093_s9 + $0x98] sm:$0xf] %vm764_vm14, %v1596_v58  ;;  %v1595_v63 = vmax.f32 %v1591_v59, 0.0  ;;  %v1799_v0 = vadd.f32 %v2653_v61, %v1795_v55 }
 0x330   : > { %v1770_v2 = vpop.f32.mrf.mxu1 }
 0x331   : > { %2384 = vst.msk [vmem:[%s3093_s9 + $0x90] sm:$0xff] %vm760_vm13, %v1595_v63  ;;  %v1803_v4 = vmax.f32 %v1799_v0, 0.0  ;;  %v1798_v5 = vadd.f32 %v1794_v60, %v1770_v2 }
 0x332   : > { %v2656_v7 = vpop.f32.mrf.mxu1 }
 0x333   : > { %2400 = vst.msk [vmem:[%s3093_s9 + $0xa8] sm:$0xff] %vm760_vm13, %v1803_v4  ;;  %v1802_v9 = vmax.f32 %v1798_v5, 0.0  ;;  %v1801_v10 = vadd.f32 %v2656_v7, %v1797_v1 }
 0x334   : > { %v1780_v12 = vpop.f32.mrf.mxu1 }
 0x335   : > { %2399 = vst.msk [vmem:[%s3093_s9 + $0xa0] sm:$0xff] %vm760_vm13, %v1802_v9  ;;  %v1805_v14 = vmax.f32 %v1801_v10, 0.0  ;;  %v1800_v15 = vadd.f32 %v1796_v6, %v1780_v12 }
 0x336   : > { %v2673_v17 = vpop.f32.mrf.mxu1 }
 0x337   : > { %2402 = vst.msk [vmem:[%s3093_s9 + $0xb8] sm:$0xf] %vm764_vm14, %v1805_v14  ;;  %v1804_v19 = vmax.f32 %v1800_v15, 0.0  ;;  %v2008_v20 = vadd.f32 %v2673_v17, %v2004_v11 }
 0x338   : > { %v1979_v22 = vpop.f32.mrf.mxu1 }
 0x339   : > { %2401 = vst.msk [vmem:[%s3093_s9 + $0xb0] sm:$0xff] %vm760_vm13, %v1804_v19  ;;  %v2012_v24 = vmax.f32 %v2008_v20, 0.0  ;;  %v2007_v25 = vadd.f32 %v2003_v16, %v1979_v22 }
 0x33a   : > { %v2676_v27 = vpop.f32.mrf.mxu1 }
 0x33b   : > { %2417 = vst.msk [vmem:[%s3093_s9 + $0xc8] sm:$0xff] %vm760_vm13, %v2012_v24  ;;  %v2011_v29 = vmax.f32 %v2007_v25, 0.0  ;;  %v2010_v30 = vadd.f32 %v2676_v27, %v2006_v21 }
 0x33c   : > { %v1989_v32 = vpop.f32.mrf.mxu1 }
 0x33d   : > { %2416 = vst.msk [vmem:[%s3093_s9 + $0xc0] sm:$0xff] %vm760_vm13, %v2011_v29  ;;  %v2014_v34 = vmax.f32 %v2010_v30, 0.0  ;;  %v2009_v35 = vadd.f32 %v2005_v26, %v1989_v32 }
 0x33e   : > { %v2693_v37 = vpop.f32.mrf.mxu1 }
 0x33f   : > { %2419 = vst.msk [vmem:[%s3093_s9 + $0xd8] sm:$0xf] %vm764_vm14, %v2014_v34  ;;  %v2013_v39 = vmax.f32 %v2009_v35, 0.0  ;;  %v2217_v40 = vadd.f32 %v2693_v37, %v2213_v31 }
 0x340   : > { %v2188_v42 = vpop.f32.mrf.mxu1 }
 0x341   : > { %2418 = vst.msk [vmem:[%s3093_s9 + $0xd0] sm:$0xff] %vm760_vm13, %v2013_v39  ;;  %v2221_v43 = vmax.f32 %v2217_v40, 0.0  ;;  %v2216_v44 = vadd.f32 %v2212_v36, %v2188_v42 }
 0x342   : > { %v2696_v46 = vpop.f32.mrf.mxu1 }
 0x343   : > { %2434 = vst.msk [vmem:[%s3093_s9 + $0xe8] sm:$0xff] %vm760_vm13, %v2221_v43  ;;  %v2220_v47 = vmax.f32 %v2216_v44, 0.0  ;;  %v2219_v48 = vadd.f32 %v2696_v46, %v2215_v41 }
 0x344   : > { %v2198_v49 = vpop.f32.mrf.mxu1 }
 0x345   : > { %2433 = vst.msk [vmem:[%s3093_s9 + $0xe0] sm:$0xff] %vm760_vm13, %v2220_v47  ;;  %v2223_v50 = vmax.f32 %v2219_v48, 0.0  ;;  %v2218_v51 = vadd.f32 %v2214_v45, %v2198_v49 }
 0x347   : > { %2436 = vst.msk [vmem:[%s3093_s9 + $0xf8] sm:$0xf] %vm764_vm14, %v2223_v50  ;;  %v2222_v52 = vmax.f32 %v2218_v51, 0.0 }
 0x349   : > { %2435 = vst.msk [vmem:[%s3093_s9 + $0xf0] sm:$0xff] %vm760_vm13, %v2222_v52 }
 0x34a PF: > { %s16_s21 = sadd.s32 1, %s2726_s21  }
 0x34b   : > { %p13_p4 = scmp.ge.s32.totalorder %s16_s21, 4  }
 0x34d   :  { %15 = sbr.rel (!%p13_p4) target bundleno = 1 (0x1), region = 98 }

</bundles_post_ra>
